<compile_context>
chip_gen: v5e
topology: v5e:2x2
jax: 0.10.0
libtpu: 0.0.40
codegen_flags: <defaults>
</compile_context>

<pallas_src>
import functools

import jax
import jax.numpy as jnp
from jax.experimental import pallas as pl
from jax.experimental.pallas import tpu as pltpu


def _conv_out(s, k, stride):
    return (s - k) // stride + 1


# Fixed parity-block layout constants (all sublane extents are multiples of 8).
_W1E = 8          # even-parity w-block width (input s2d grid & conv1 output)
_W1O = 16         # odd-parity  w-block width
_W1W = _W1E + _W1O   # = 24, total w extent of conv1 patches / output
_W2W = 8          # w extent of conv2 / conv3 outputs (valid cols: s2 / s3)
_NOP = 128        # padded output lane width


# ----------------------------------------------------------------------------
# Fused forward kernel.  One grid step == `bb` images.
#   a0_ref : (bb, h1n, 24, 16*C0) f32  space-to-depth(4) input with h rows ordered
#            [even | odd] and w columns packed [even block (8) | odd block (16)].
#   All weights are pre-packed bf16 matmul matrices; biases are f32 (1, N).
# ----------------------------------------------------------------------------
def _dqn_kernel(a0_ref, w1_ref, b1_ref, w2_ref, b2_ref, w3_ref, b3_ref,
                wf1_ref, bf1_ref, wf2_ref, bf2_ref, o_ref,
                *, bb, he, h1n, s2, s3):
    f32, bf16 = jnp.float32, jnp.bfloat16

    # ---------------- conv1 (k=8, stride=4) --------------------------------
    # Stride-4 conv == 2x2-tap stride-1 conv over the s2d(4) grid; the parity
    # blocking turns every tap into contiguous slices (garbage only ever lands
    # in padded rows/cols that are never consumed downstream).
    a = a0_ref[...]                                        # (bb, h1n, 24, sc)
    sc = a.shape[-1]
    a_i1 = jnp.concatenate([a[:, he:2 * he], a[:, 1:he + 1]], axis=1)  # rows ho+1

    def _wtap(src, j):                                     # cols wo+j
        if j == 0:
            return src
        return jnp.concatenate(
            [src[:, :, _W1E:2 * _W1E, :], src[:, :, 1:1 + _W1O, :]], axis=2)

    taps1 = [_wtap(src, j) for src in (a, a_i1) for j in (0, 1)]
    patch1 = jnp.concatenate(taps1, axis=-1)               # (bb, h1n, 24, 4*sc)
    m1 = bb * h1n * _W1W
    p1 = patch1.reshape(m1, 4 * sc).astype(bf16)           # single cast / layer
    h1 = jnp.dot(p1, w1_ref[...], preferred_element_type=f32)
    h1 = jnp.maximum(h1 + b1_ref[...], 0.0)                # single bias add
    h1 = h1.reshape(bb, h1n, _W1W, 32)

    # ---------------- conv2 (k=4, stride=2) --------------------------------
    taps2 = []
    for kh in range(4):
        rs = (kh % 2) * he + kh // 2
        for kw in range(4):
            cs = (kw % 2) * _W1E + kw // 2
            taps2.append(h1[:, rs:rs + s2, cs:cs + _W2W, :])   # (bb, s2, 8, 32)
    patch2 = jnp.concatenate(taps2, axis=-1)                   # (bb, s2, 8, 512)
    m2 = bb * s2 * _W2W
    p2 = patch2.reshape(m2, 16 * 32).astype(bf16)
    h2 = jnp.dot(p2, w2_ref[...], preferred_element_type=f32)
    h2 = jnp.maximum(h2 + b2_ref[...], 0.0).reshape(bb, s2, _W2W, 64)

    # ---------------- conv3 (k=3, stride=1) --------------------------------
    h2x = jnp.concatenate([h2, h2], axis=2)                    # keeps slices in-bounds
    taps3 = []
    for kh in range(3):
        for kw in range(3):
            taps3.append(h2x[:, kh:kh + s3, kw:kw + _W2W, :])  # (bb, s3, 8, 64)
    patch3 = jnp.concatenate(taps3, axis=-1)                   # (bb, s3, 8, 576)
    m3 = bb * s3 * _W2W
    p3 = patch3.reshape(m3, 9 * 64).astype(bf16)
    h3 = jnp.dot(p3, w3_ref[...], preferred_element_type=f32)
    h3 = jnp.maximum(h3 + b3_ref[...], 0.0).reshape(bb, s3, _W2W, 64)

    # ---------------- flatten + fc1 + fc2 ----------------------------------
    pieces = [h3[:, hh, ww, :] for hh in range(s3) for ww in range(s3)]
    flat = jnp.concatenate(pieces, axis=-1).astype(bf16)       # (bb, 64*s3*s3)
    hfc = jnp.dot(flat, wf1_ref[...], preferred_element_type=f32) + bf1_ref[...]
    hfc = jnp.maximum(hfc, 0.0)                                # (bb, 512)
    y = jnp.dot(hfc.astype(bf16), wf2_ref[...], preferred_element_type=f32)
    o_ref[0] = y + bf2_ref[...]                                # dense (bb, 128) store


# ----------------------------------------------------------------------------
# One-time parameter packing (PyTorch layouts -> kernel matmul layouts, bf16).
# ----------------------------------------------------------------------------
def prepare_params(params, img_size):
    bf16, f32 = jnp.bfloat16, jnp.float32
    s1 = _conv_out(img_size, 8, 4)
    s2 = _conv_out(s1, 4, 2)
    s3 = _conv_out(s2, 3, 1)

    w1 = params["w1"]                         # (32, C0, 8, 8)
    c0 = w1.shape[1]
    # rows ordered (i, j, kh%4, kw%4, c): taps (i, j) over the s2d(4) grid.
    w1m = (w1.transpose(1, 2, 3, 0)
             .reshape(c0, 2, 4, 2, 4, 32)
             .transpose(1, 3, 2, 4, 0, 5)
             .reshape(64 * c0, 32)).astype(bf16)

    w2 = params["w2"]                         # (64, 32, 4, 4) -> rows (kh, kw, c)
    w2m = w2.transpose(2, 3, 1, 0).reshape(16 * 32, 64).astype(bf16)

    w3 = params["w3"]                         # (64, 64, 3, 3) -> rows (kh, kw, c)
    w3m = w3.transpose(2, 3, 1, 0).reshape(9 * 64, 64).astype(bf16)

    wfc1 = params["wfc1"]                     # (512, 64*s3*s3), torch flat = (c, h, w)
    wf1m = (wfc1.T.reshape(64, s3, s3, 512)
                  .transpose(1, 2, 0, 3)
                  .reshape(64 * s3 * s3, 512)).astype(bf16)   # rows ordered (h, w, c)

    wfc2 = params["wfc2"]                     # (No, 512)
    n_out = wfc2.shape[0]
    assert n_out <= _NOP
    wf2m = jnp.pad(wfc2.T, ((0, 0), (0, _NOP - n_out))).astype(bf16)
    bf2 = jnp.pad(params["bfc2"], (0, _NOP - n_out)).reshape(1, -1).astype(f32)

    return dict(
        w1m=w1m, b1=params["b1"].reshape(1, -1).astype(f32),
        w2m=w2m, b2=params["b2"].reshape(1, -1).astype(f32),
        w3m=w3m, b3=params["b3"].reshape(1, -1).astype(f32),
        wf1m=wf1m, bf1=params["bfc1"].reshape(1, -1).astype(f32),
        wf2m=wf2m, bf2=bf2,
    )


# ----------------------------------------------------------------------------
# Per-call input prep: NCHW -> space-to-depth(4), rows ordered [even|odd],
# w columns packed [even block (8) | odd block (16)], batch padded to bb*nblocks.
# ----------------------------------------------------------------------------
def _prepare_input(state, b_pad):
    b, c0, h, w = state.shape
    x = state.astype(jnp.float32).transpose(0, 2, 3, 1)           # NHWC
    hr, wr = h // 4, w // 4
    x = (x.reshape(b, hr, 4, wr, 4, c0)
          .transpose(0, 1, 3, 2, 4, 5)
          .reshape(b, hr, wr, 16 * c0))                           # s2d(4)
    x = (x.reshape(b, hr // 2, 2, wr, 16 * c0)                    # h parity blocks
          .transpose(0, 2, 1, 3, 4)
          .reshape(b, hr, wr, 16 * c0))
    xe = x[:, :, 0::2, :]                                         # w parity blocks
    xo = x[:, :, 1::2, :]
    xe = jnp.pad(xe, ((0, 0), (0, 0), (0, _W1E - xe.shape[2]), (0, 0)))
    xo = jnp.pad(xo, ((0, 0), (0, 0), (0, _W1O - xo.shape[2]), (0, 0)))
    a0 = jnp.concatenate([xe, xo], axis=2)                        # (B, hr, 24, 16*c0)
    if b_pad > b:
        a0 = jnp.pad(a0, ((0, b_pad - b), (0, 0), (0, 0), (0, 0)))
    return a0


# ----------------------------------------------------------------------------
# Fused forward.
# ----------------------------------------------------------------------------
def dqn_forward(prepared, state, num_actions):
    if state.ndim == 3:                       # match PyTorch's unsqueeze(0)
        state = state[None]
    b, _, h, w = state.shape
    assert h == w and h % 8 == 0, "layout assumes square images, img_size % 8 == 0"
    s1 = _conv_out(h, 8, 4)
    s2 = _conv_out(s1, 4, 2)
    s3 = _conv_out(s2, 3, 1)
    hr = h // 4
    he = hr // 2
    assert s3 >= 1 and (s1 + 1) // 2 <= _W1E and s2 + 1 <= he and s2 <= _W2W
    # TODO(synk): the parity-block constants above cover img_size=48-class models;
    # other sizes would need the block widths re-derived.

    # Batch blocking: bb images per grid step, grid kept >= 2 when possible.
    bb = 8 if b >= 16 else max(1, (b + 1) // 2)
    nblocks = -(-b // bb)
    b_pad = nblocks * bb

    a0 = _prepare_input(state, b_pad)
    _, h1n, w1w, sc = a0.shape

    w1m, b1 = prepared["w1m"], prepared["b1"]
    w2m, b2 = prepared["w2m"], prepared["b2"]
    w3m, b3 = prepared["w3m"], prepared["b3"]
    wf1m, bf1 = prepared["wf1m"], prepared["bf1"]
    wf2m, bf2 = prepared["wf2m"], prepared["bf2"]

    kernel = functools.partial(_dqn_kernel, bb=bb, he=he, h1n=h1n, s2=s2, s3=s3)

    def _bcast(arr):                          # resident across the whole grid
        nd = arr.ndim
        return pl.BlockSpec(arr.shape, lambda g, _nd=nd: (0,) * _nd)

    out = pl.pallas_call(
        kernel,
        out_shape=jax.ShapeDtypeStruct((nblocks, bb, _NOP), jnp.float32),
        grid_spec=pltpu.PrefetchScalarGridSpec(
            num_scalar_prefetch=0,
            grid=(nblocks,),
            in_specs=[
                pl.BlockSpec((bb, h1n, w1w, sc), lambda g: (g, 0, 0, 0)),
                _bcast(w1m), _bcast(b1),
                _bcast(w2m), _bcast(b2),
                _bcast(w3m), _bcast(b3),
                _bcast(wf1m), _bcast(bf1),
                _bcast(wf2m), _bcast(bf2),
            ],
            out_specs=pl.BlockSpec((1, bb, _NOP), lambda g: (g, 0, 0)),
        ),
        compiler_params=pltpu.CompilerParams(
            dimension_semantics=("parallel",),
        ),
    )(a0, w1m, b1, w2m, b2, w3m, b3, wf1m, bf1, wf2m, bf2)
    return out.reshape(b_pad, _NOP)[:b, :num_actions]


# ----------------------------------------------------------------------------
# Deterministic PyTorch-style parameter init (original torch layouts).
# ----------------------------------------------------------------------------
def init_dqn_params(key, frame_stack_size, img_size, output_layer_size):
    s1 = _conv_out(img_size, 8, 4)
    s2 = _conv_out(s1, 4, 2)
    s3 = _conv_out(s2, 3, 1)
    linear_input_size = 64 * s3 * s3

    shapes = {
        "w1": (32, frame_stack_size, 8, 8), "b1": (32,),
        "w2": (64, 32, 4, 4),               "b2": (64,),
        "w3": (64, 64, 3, 3),               "b3": (64,),
        "wfc1": (512, linear_input_size),   "bfc1": (512,),
        "wfc2": (output_layer_size, 512),   "bfc2": (output_layer_size,),
    }
    fan_in = {
        "w1": frame_stack_size * 64, "b1": frame_stack_size * 64,
        "w2": 32 * 16,               "b2": 32 * 16,
        "w3": 64 * 9,                "b3": 64 * 9,
        "wfc1": linear_input_size,   "bfc1": linear_input_size,
        "wfc2": 512,                 "bfc2": 512,
    }
    params = {}
    keys = jax.random.split(key, len(shapes))
    for k_, name in zip(keys, sorted(shapes)):
        bound = 1.0 / jnp.sqrt(jnp.float32(fan_in[name]))
        params[name] = jax.random.uniform(
            k_, shapes[name], jnp.float32, minval=-bound, maxval=bound)
    return params, linear_input_size


# ----------------------------------------------------------------------------
# Pure-JAX reference (original f32 params) for correctness checking.
# ----------------------------------------------------------------------------
def _ref_conv_relu(x, w, b, stride):
    y = jax.lax.conv_general_dilated(
        x, w, window_strides=(stride, stride), padding="VALID",
        dimension_numbers=("NCHW", "OIHW", "NCHW"))
    return jax.nn.relu(y + b[None, :, None, None])


def dqn_reference(params, state):
    if state.ndim == 3:
        state = state[None]
    x = _ref_conv_relu(state, params["w1"], params["b1"], 4)
    x = _ref_conv_relu(x, params["w2"], params["b2"], 2)
    x = _ref_conv_relu(x, params["w3"], params["b3"], 1)
    flat = x.reshape(state.shape[0], -1)
    h = jax.nn.relu(flat @ params["wfc1"].T + params["bfc1"])
    return h @ params["wfc2"].T + params["bfc2"]


# TODO(synk): torch.optim.Adam / StepLR and the .device plumbing are training-side
# state, not part of the forward pass, so they are intentionally not translated.

# ----------------------------------------------------------------------------
if __name__ == "__main__":
    frame_stack_size = 4
    img_size = 48          # conv outputs: 48 -> 11 -> 4 -> 2, linear_input = 64*2*2 = 256
    output_layer_size = 5
    batch = 5              # exercises batch-blocking (bb=3, grid=2) and batch padding

    key = jax.random.PRNGKey(0)
    kparams, kx = jax.random.split(key)
    params, _ = init_dqn_params(kparams, frame_stack_size, img_size, output_layer_size)
    prepared = prepare_params(params, img_size)

    state = jax.random.uniform(
        kx, (batch, frame_stack_size, img_size, img_size), jnp.float32)

    fwd = jax.jit(dqn_forward, static_argnames=("num_actions",))
    out = fwd(prepared, state, num_actions=output_layer_size)
    jax.block_until_ready(out)

    assert out.shape == (batch, output_layer_size), out.shape

    ref = dqn_reference(params, state)
    if not bool(jnp.allclose(out, ref, atol=5e-2, rtol=5e-2)):
        max_err = float(jnp.max(jnp.abs(out - ref)))
        raise AssertionError(f"mismatch vs reference, max abs err = {max_err}")

    print("KERNEL_OK")
</pallas_src>

<mosaic_0001>
module attributes {stable_mosaic.version = 11 : i64} {
  func.func @_dqn_kernel(%arg0: i32, %arg1: memref<3x12x24x64xf32, #tpu.memory_space<vmem>>, %arg2: memref<256x32xbf16, #tpu.memory_space<vmem>>, %arg3: memref<1x32xf32, #tpu.memory_space<vmem>>, %arg4: memref<512x64xbf16, #tpu.memory_space<vmem>>, %arg5: memref<1x64xf32, #tpu.memory_space<vmem>>, %arg6: memref<576x64xbf16, #tpu.memory_space<vmem>>, %arg7: memref<1x64xf32, #tpu.memory_space<vmem>>, %arg8: memref<256x512xbf16, #tpu.memory_space<vmem>>, %arg9: memref<1x512xf32, #tpu.memory_space<vmem>>, %arg10: memref<512x128xbf16, #tpu.memory_space<vmem>>, %arg11: memref<1x128xf32, #tpu.memory_space<vmem>>, %arg12: memref<1x3x128xf32, #tpu.memory_space<vmem>>) attributes {dimension_semantics = [#tpu.dimension_semantics<parallel>], iteration_bounds = array<i64: 2>, scalar_prefetch = 0 : i64, scratch_operands = 0 : i64, tpu.core_type = #tpu.core_type<tc>, window_params = [{transform_indices = @transform_0, window_bounds = array<i64: 3, 12, 24, 64>}, {pipeline_mode = #tpu.pipeline_mode<synchronous>, transform_indices = @transform_1, window_bounds = array<i64: 256, 32>}, {pipeline_mode = #tpu.pipeline_mode<synchronous>, transform_indices = @transform_2, window_bounds = array<i64: 1, 32>}, {pipeline_mode = #tpu.pipeline_mode<synchronous>, transform_indices = @transform_3, window_bounds = array<i64: 512, 64>}, {pipeline_mode = #tpu.pipeline_mode<synchronous>, transform_indices = @transform_4, window_bounds = array<i64: 1, 64>}, {pipeline_mode = #tpu.pipeline_mode<synchronous>, transform_indices = @transform_5, window_bounds = array<i64: 576, 64>}, {pipeline_mode = #tpu.pipeline_mode<synchronous>, transform_indices = @transform_6, window_bounds = array<i64: 1, 64>}, {pipeline_mode = #tpu.pipeline_mode<synchronous>, transform_indices = @transform_7, window_bounds = array<i64: 256, 512>}, {pipeline_mode = #tpu.pipeline_mode<synchronous>, transform_indices = @transform_8, window_bounds = array<i64: 1, 512>}, {pipeline_mode = #tpu.pipeline_mode<synchronous>, transform_indices = @transform_9, window_bounds = array<i64: 512, 128>}, {pipeline_mode = #tpu.pipeline_mode<synchronous>, transform_indices = @transform_10, window_bounds = array<i64: 1, 128>}, {transform_indices = @transform_11, window_bounds = array<i64: 1, 3, 128>}]} {
    %c0 = arith.constant 0 : index
    %c0_0 = arith.constant 0 : index
    %c0_1 = arith.constant 0 : index
    %c0_2 = arith.constant 0 : index
    %0 = vector.load %arg1[%c0, %c0_0, %c0_1, %c0_2] : memref<3x12x24x64xf32, #tpu.memory_space<vmem>>, vector<3x12x24x64xf32>
    %1 = vector.extract_strided_slice %0 {offsets = [0, 6, 0, 0], sizes = [3, 6, 24, 64], strides = [1, 1, 1, 1]} : vector<3x12x24x64xf32> to vector<3x6x24x64xf32>
    %2 = vector.extract_strided_slice %0 {offsets = [0, 1, 0, 0], sizes = [3, 6, 24, 64], strides = [1, 1, 1, 1]} : vector<3x12x24x64xf32> to vector<3x6x24x64xf32>
    %3 = tpu.concatenate %1, %2 in 1 : vector<3x6x24x64xf32>, vector<3x6x24x64xf32> -> vector<3x12x24x64xf32>
    %4 = vector.extract_strided_slice %0 {offsets = [0, 0, 8, 0], sizes = [3, 12, 8, 64], strides = [1, 1, 1, 1]} : vector<3x12x24x64xf32> to vector<3x12x8x64xf32>
    %5 = vector.extract_strided_slice %0 {offsets = [0, 0, 1, 0], sizes = [3, 12, 16, 64], strides = [1, 1, 1, 1]} : vector<3x12x24x64xf32> to vector<3x12x16x64xf32>
    %6 = tpu.concatenate %4, %5 in 2 : vector<3x12x8x64xf32>, vector<3x12x16x64xf32> -> vector<3x12x24x64xf32>
    %7 = vector.extract_strided_slice %3 {offsets = [0, 0, 8, 0], sizes = [3, 12, 8, 64], strides = [1, 1, 1, 1]} : vector<3x12x24x64xf32> to vector<3x12x8x64xf32>
    %8 = vector.extract_strided_slice %3 {offsets = [0, 0, 1, 0], sizes = [3, 12, 16, 64], strides = [1, 1, 1, 1]} : vector<3x12x24x64xf32> to vector<3x12x16x64xf32>
    %9 = tpu.concatenate %7, %8 in 2 : vector<3x12x8x64xf32>, vector<3x12x16x64xf32> -> vector<3x12x24x64xf32>
    %10 = tpu.concatenate %0, %6, %3, %9 in 3 : vector<3x12x24x64xf32>, vector<3x12x24x64xf32>, vector<3x12x24x64xf32>, vector<3x12x24x64xf32> -> vector<3x12x24x256xf32>
    %11 = vector.shape_cast %10 : vector<3x12x24x256xf32> to vector<864x256xf32>
    %12 = arith.truncf %11 : vector<864x256xf32> to vector<864x256xbf16>
    %c0_3 = arith.constant 0 : index
    %c0_4 = arith.constant 0 : index
    %13 = vector.load %arg2[%c0_3, %c0_4] : memref<256x32xbf16, #tpu.memory_space<vmem>>, vector<256x32xbf16>
    %cst = arith.constant dense<0.000000e+00> : vector<864x32xf32>
    %14 = tpu.matmul %12, %13, %cst {dimension_numbers = #tpu.dot_dimension_numbers<[1], [0], [0], [1], [0, 0, 1, 1], [], []>} : vector<864x256xbf16>, vector<256x32xbf16>, vector<864x32xf32> -> vector<864x32xf32>
    %c0_5 = arith.constant 0 : index
    %c0_6 = arith.constant 0 : index
    %15 = vector.load %arg3[%c0_5, %c0_6] : memref<1x32xf32, #tpu.memory_space<vmem>>, vector<1x32xf32>
    %16 = vector.broadcast %15 : vector<1x32xf32> to vector<864x32xf32>
    %17 = arith.addf %14, %16 : vector<864x32xf32>
    %cst_7 = arith.constant 0.000000e+00 : f32
    %18 = vector.broadcast %cst_7 : f32 to vector<864x32xf32>
    %19 = arith.maximumf %17, %18 : vector<864x32xf32>
    %20 = vector.shape_cast %19 : vector<864x32xf32> to vector<3x12x24x32xf32>
    %21 = vector.extract_strided_slice %20 {offsets = [0, 0, 0, 0], sizes = [3, 4, 8, 32], strides = [1, 1, 1, 1]} : vector<3x12x24x32xf32> to vector<3x4x8x32xf32>
    %22 = vector.extract_strided_slice %20 {offsets = [0, 0, 8, 0], sizes = [3, 4, 8, 32], strides = [1, 1, 1, 1]} : vector<3x12x24x32xf32> to vector<3x4x8x32xf32>
    %23 = vector.extract_strided_slice %20 {offsets = [0, 0, 1, 0], sizes = [3, 4, 8, 32], strides = [1, 1, 1, 1]} : vector<3x12x24x32xf32> to vector<3x4x8x32xf32>
    %24 = vector.extract_strided_slice %20 {offsets = [0, 0, 9, 0], sizes = [3, 4, 8, 32], strides = [1, 1, 1, 1]} : vector<3x12x24x32xf32> to vector<3x4x8x32xf32>
    %25 = vector.extract_strided_slice %20 {offsets = [0, 6, 0, 0], sizes = [3, 4, 8, 32], strides = [1, 1, 1, 1]} : vector<3x12x24x32xf32> to vector<3x4x8x32xf32>
    %26 = vector.extract_strided_slice %20 {offsets = [0, 6, 8, 0], sizes = [3, 4, 8, 32], strides = [1, 1, 1, 1]} : vector<3x12x24x32xf32> to vector<3x4x8x32xf32>
    %27 = vector.extract_strided_slice %20 {offsets = [0, 6, 1, 0], sizes = [3, 4, 8, 32], strides = [1, 1, 1, 1]} : vector<3x12x24x32xf32> to vector<3x4x8x32xf32>
    %28 = vector.extract_strided_slice %20 {offsets = [0, 6, 9, 0], sizes = [3, 4, 8, 32], strides = [1, 1, 1, 1]} : vector<3x12x24x32xf32> to vector<3x4x8x32xf32>
    %29 = vector.extract_strided_slice %20 {offsets = [0, 1, 0, 0], sizes = [3, 4, 8, 32], strides = [1, 1, 1, 1]} : vector<3x12x24x32xf32> to vector<3x4x8x32xf32>
    %30 = vector.extract_strided_slice %20 {offsets = [0, 1, 8, 0], sizes = [3, 4, 8, 32], strides = [1, 1, 1, 1]} : vector<3x12x24x32xf32> to vector<3x4x8x32xf32>
    %31 = vector.extract_strided_slice %20 {offsets = [0, 1, 1, 0], sizes = [3, 4, 8, 32], strides = [1, 1, 1, 1]} : vector<3x12x24x32xf32> to vector<3x4x8x32xf32>
    %32 = vector.extract_strided_slice %20 {offsets = [0, 1, 9, 0], sizes = [3, 4, 8, 32], strides = [1, 1, 1, 1]} : vector<3x12x24x32xf32> to vector<3x4x8x32xf32>
    %33 = vector.extract_strided_slice %20 {offsets = [0, 7, 0, 0], sizes = [3, 4, 8, 32], strides = [1, 1, 1, 1]} : vector<3x12x24x32xf32> to vector<3x4x8x32xf32>
    %34 = vector.extract_strided_slice %20 {offsets = [0, 7, 8, 0], sizes = [3, 4, 8, 32], strides = [1, 1, 1, 1]} : vector<3x12x24x32xf32> to vector<3x4x8x32xf32>
    %35 = vector.extract_strided_slice %20 {offsets = [0, 7, 1, 0], sizes = [3, 4, 8, 32], strides = [1, 1, 1, 1]} : vector<3x12x24x32xf32> to vector<3x4x8x32xf32>
    %36 = vector.extract_strided_slice %20 {offsets = [0, 7, 9, 0], sizes = [3, 4, 8, 32], strides = [1, 1, 1, 1]} : vector<3x12x24x32xf32> to vector<3x4x8x32xf32>
    %37 = tpu.concatenate %21, %22, %23, %24, %25, %26, %27, %28, %29, %30, %31, %32, %33, %34, %35, %36 in 3 : vector<3x4x8x32xf32>, vector<3x4x8x32xf32>, vector<3x4x8x32xf32>, vector<3x4x8x32xf32>, vector<3x4x8x32xf32>, vector<3x4x8x32xf32>, vector<3x4x8x32xf32>, vector<3x4x8x32xf32>, vector<3x4x8x32xf32>, vector<3x4x8x32xf32>, vector<3x4x8x32xf32>, vector<3x4x8x32xf32>, vector<3x4x8x32xf32>, vector<3x4x8x32xf32>, vector<3x4x8x32xf32>, vector<3x4x8x32xf32> -> vector<3x4x8x512xf32>
    %38 = vector.shape_cast %37 : vector<3x4x8x512xf32> to vector<96x512xf32>
    %39 = arith.truncf %38 : vector<96x512xf32> to vector<96x512xbf16>
    %c0_8 = arith.constant 0 : index
    %c0_9 = arith.constant 0 : index
    %40 = vector.load %arg4[%c0_8, %c0_9] : memref<512x64xbf16, #tpu.memory_space<vmem>>, vector<512x64xbf16>
    %cst_10 = arith.constant dense<0.000000e+00> : vector<96x64xf32>
    %41 = tpu.matmul %39, %40, %cst_10 {dimension_numbers = #tpu.dot_dimension_numbers<[1], [0], [0], [1], [0, 0, 1, 1], [], []>} : vector<96x512xbf16>, vector<512x64xbf16>, vector<96x64xf32> -> vector<96x64xf32>
    %c0_11 = arith.constant 0 : index
    %c0_12 = arith.constant 0 : index
    %42 = vector.load %arg5[%c0_11, %c0_12] : memref<1x64xf32, #tpu.memory_space<vmem>>, vector<1x64xf32>
    %43 = vector.broadcast %42 : vector<1x64xf32> to vector<96x64xf32>
    %44 = arith.addf %41, %43 : vector<96x64xf32>
    %cst_13 = arith.constant 0.000000e+00 : f32
    %45 = vector.broadcast %cst_13 : f32 to vector<96x64xf32>
    %46 = arith.maximumf %44, %45 : vector<96x64xf32>
    %47 = vector.shape_cast %46 : vector<96x64xf32> to vector<3x4x8x64xf32>
    %48 = tpu.concatenate %47, %47 in 2 : vector<3x4x8x64xf32>, vector<3x4x8x64xf32> -> vector<3x4x16x64xf32>
    %49 = vector.extract_strided_slice %48 {offsets = [0, 0, 0, 0], sizes = [3, 2, 8, 64], strides = [1, 1, 1, 1]} : vector<3x4x16x64xf32> to vector<3x2x8x64xf32>
    %50 = vector.extract_strided_slice %48 {offsets = [0, 0, 1, 0], sizes = [3, 2, 8, 64], strides = [1, 1, 1, 1]} : vector<3x4x16x64xf32> to vector<3x2x8x64xf32>
    %51 = vector.extract_strided_slice %48 {offsets = [0, 0, 2, 0], sizes = [3, 2, 8, 64], strides = [1, 1, 1, 1]} : vector<3x4x16x64xf32> to vector<3x2x8x64xf32>
    %52 = vector.extract_strided_slice %48 {offsets = [0, 1, 0, 0], sizes = [3, 2, 8, 64], strides = [1, 1, 1, 1]} : vector<3x4x16x64xf32> to vector<3x2x8x64xf32>
    %53 = vector.extract_strided_slice %48 {offsets = [0, 1, 1, 0], sizes = [3, 2, 8, 64], strides = [1, 1, 1, 1]} : vector<3x4x16x64xf32> to vector<3x2x8x64xf32>
    %54 = vector.extract_strided_slice %48 {offsets = [0, 1, 2, 0], sizes = [3, 2, 8, 64], strides = [1, 1, 1, 1]} : vector<3x4x16x64xf32> to vector<3x2x8x64xf32>
    %55 = vector.extract_strided_slice %48 {offsets = [0, 2, 0, 0], sizes = [3, 2, 8, 64], strides = [1, 1, 1, 1]} : vector<3x4x16x64xf32> to vector<3x2x8x64xf32>
    %56 = vector.extract_strided_slice %48 {offsets = [0, 2, 1, 0], sizes = [3, 2, 8, 64], strides = [1, 1, 1, 1]} : vector<3x4x16x64xf32> to vector<3x2x8x64xf32>
    %57 = vector.extract_strided_slice %48 {offsets = [0, 2, 2, 0], sizes = [3, 2, 8, 64], strides = [1, 1, 1, 1]} : vector<3x4x16x64xf32> to vector<3x2x8x64xf32>
    %58 = tpu.concatenate %49, %50, %51, %52, %53, %54, %55, %56, %57 in 3 : vector<3x2x8x64xf32>, vector<3x2x8x64xf32>, vector<3x2x8x64xf32>, vector<3x2x8x64xf32>, vector<3x2x8x64xf32>, vector<3x2x8x64xf32>, vector<3x2x8x64xf32>, vector<3x2x8x64xf32>, vector<3x2x8x64xf32> -> vector<3x2x8x576xf32>
    %59 = vector.shape_cast %58 : vector<3x2x8x576xf32> to vector<48x576xf32>
    %60 = arith.truncf %59 : vector<48x576xf32> to vector<48x576xbf16>
    %c0_14 = arith.constant 0 : index
    %c0_15 = arith.constant 0 : index
    %61 = vector.load %arg6[%c0_14, %c0_15] : memref<576x64xbf16, #tpu.memory_space<vmem>>, vector<576x64xbf16>
    %cst_16 = arith.constant dense<0.000000e+00> : vector<48x64xf32>
    %62 = tpu.matmul %60, %61, %cst_16 {dimension_numbers = #tpu.dot_dimension_numbers<[1], [0], [0], [1], [0, 0, 1, 1], [], []>} : vector<48x576xbf16>, vector<576x64xbf16>, vector<48x64xf32> -> vector<48x64xf32>
    %c0_17 = arith.constant 0 : index
    %c0_18 = arith.constant 0 : index
    %63 = vector.load %arg7[%c0_17, %c0_18] : memref<1x64xf32, #tpu.memory_space<vmem>>, vector<1x64xf32>
    %64 = vector.broadcast %63 : vector<1x64xf32> to vector<48x64xf32>
    %65 = arith.addf %62, %64 : vector<48x64xf32>
    %cst_19 = arith.constant 0.000000e+00 : f32
    %66 = vector.broadcast %cst_19 : f32 to vector<48x64xf32>
    %67 = arith.maximumf %65, %66 : vector<48x64xf32>
    %68 = vector.shape_cast %67 : vector<48x64xf32> to vector<3x2x8x64xf32>
    %69 = vector.extract_strided_slice %68 {offsets = [0, 0, 0, 0], sizes = [3, 1, 1, 64], strides = [1, 1, 1, 1]} : vector<3x2x8x64xf32> to vector<3x1x1x64xf32>
    %70 = vector.shape_cast %69 : vector<3x1x1x64xf32> to vector<3x64xf32>
    %71 = vector.extract_strided_slice %68 {offsets = [0, 0, 1, 0], sizes = [3, 1, 1, 64], strides = [1, 1, 1, 1]} : vector<3x2x8x64xf32> to vector<3x1x1x64xf32>
    %72 = vector.shape_cast %71 : vector<3x1x1x64xf32> to vector<3x64xf32>
    %73 = vector.extract_strided_slice %68 {offsets = [0, 1, 0, 0], sizes = [3, 1, 1, 64], strides = [1, 1, 1, 1]} : vector<3x2x8x64xf32> to vector<3x1x1x64xf32>
    %74 = vector.shape_cast %73 : vector<3x1x1x64xf32> to vector<3x64xf32>
    %75 = vector.extract_strided_slice %68 {offsets = [0, 1, 1, 0], sizes = [3, 1, 1, 64], strides = [1, 1, 1, 1]} : vector<3x2x8x64xf32> to vector<3x1x1x64xf32>
    %76 = vector.shape_cast %75 : vector<3x1x1x64xf32> to vector<3x64xf32>
    %77 = tpu.concatenate %70, %72, %74, %76 in 1 : vector<3x64xf32>, vector<3x64xf32>, vector<3x64xf32>, vector<3x64xf32> -> vector<3x256xf32>
    %78 = arith.truncf %77 : vector<3x256xf32> to vector<3x256xbf16>
    %c0_20 = arith.constant 0 : index
    %c0_21 = arith.constant 0 : index
    %79 = vector.load %arg8[%c0_20, %c0_21] : memref<256x512xbf16, #tpu.memory_space<vmem>>, vector<256x512xbf16>
    %cst_22 = arith.constant dense<0.000000e+00> : vector<3x512xf32>
    %80 = tpu.matmul %78, %79, %cst_22 {dimension_numbers = #tpu.dot_dimension_numbers<[1], [0], [0], [1], [0, 0, 1, 1], [], []>} : vector<3x256xbf16>, vector<256x512xbf16>, vector<3x512xf32> -> vector<3x512xf32>
    %c0_23 = arith.constant 0 : index
    %c0_24 = arith.constant 0 : index
    %81 = vector.load %arg9[%c0_23, %c0_24] : memref<1x512xf32, #tpu.memory_space<vmem>>, vector<1x512xf32>
    %82 = vector.broadcast %81 : vector<1x512xf32> to vector<3x512xf32>
    %83 = arith.addf %80, %82 : vector<3x512xf32>
    %cst_25 = arith.constant 0.000000e+00 : f32
    %84 = vector.broadcast %cst_25 : f32 to vector<3x512xf32>
    %85 = arith.maximumf %83, %84 : vector<3x512xf32>
    %86 = arith.truncf %85 : vector<3x512xf32> to vector<3x512xbf16>
    %c0_26 = arith.constant 0 : index
    %c0_27 = arith.constant 0 : index
    %87 = vector.load %arg10[%c0_26, %c0_27] : memref<512x128xbf16, #tpu.memory_space<vmem>>, vector<512x128xbf16>
    %cst_28 = arith.constant dense<0.000000e+00> : vector<3x128xf32>
    %88 = tpu.matmul %86, %87, %cst_28 {dimension_numbers = #tpu.dot_dimension_numbers<[1], [0], [0], [1], [0, 0, 1, 1], [], []>} : vector<3x512xbf16>, vector<512x128xbf16>, vector<3x128xf32> -> vector<3x128xf32>
    %c0_29 = arith.constant 0 : index
    %c0_30 = arith.constant 0 : index
    %89 = vector.load %arg11[%c0_29, %c0_30] : memref<1x128xf32, #tpu.memory_space<vmem>>, vector<1x128xf32>
    %90 = vector.broadcast %89 : vector<1x128xf32> to vector<3x128xf32>
    %91 = arith.addf %88, %90 : vector<3x128xf32>
    %c0_31 = arith.constant 0 : index
    %c0_32 = arith.constant 0 : index
    %c0_33 = arith.constant 0 : index
    %92 = vector.load %arg12[%c0_31, %c0_32, %c0_33] : memref<1x3x128xf32, #tpu.memory_space<vmem>>, vector<1x3x128xf32>
    %93 = vector.shape_cast %92 : vector<1x3x128xf32> to vector<3x128xf32>
    %94 = vector.shape_cast %91 : vector<3x128xf32> to vector<1x3x128xf32>
    tpu.vector_store %arg12[%c0_31, %c0_32, %c0_33], %94 {strides = array<i32>} : memref<1x3x128xf32, #tpu.memory_space<vmem>>, vector<1x3x128xf32>,
    return
  }
  func.func @transform_0(%arg0: i32) -> (i32, i32, i32, i32) {
    %c0_i32 = arith.constant 0 : i32
    %c0_i32_0 = arith.constant 0 : i32
    %c0_i32_1 = arith.constant 0 : i32
    %c0_i32_2 = arith.constant 0 : i32
    return %arg0, %c0_i32, %c0_i32_0, %c0_i32_1 : i32, i32, i32, i32
  }
  func.func @transform_1(%arg0: i32) -> (i32, i32) {
    %c0_i32 = arith.constant 0 : i32
    %c0_i32_0 = arith.constant 0 : i32
    %c0_i32_1 = arith.constant 0 : i32
    return %c0_i32, %c0_i32_0 : i32, i32
  }
  func.func @transform_2(%arg0: i32) -> (i32, i32) {
    %c0_i32 = arith.constant 0 : i32
    %c0_i32_0 = arith.constant 0 : i32
    %c0_i32_1 = arith.constant 0 : i32
    return %c0_i32, %c0_i32_0 : i32, i32
  }
  func.func @transform_3(%arg0: i32) -> (i32, i32) {
    %c0_i32 = arith.constant 0 : i32
    %c0_i32_0 = arith.constant 0 : i32
    %c0_i32_1 = arith.constant 0 : i32
    return %c0_i32, %c0_i32_0 : i32, i32
  }
  func.func @transform_4(%arg0: i32) -> (i32, i32) {
    %c0_i32 = arith.constant 0 : i32
    %c0_i32_0 = arith.constant 0 : i32
    %c0_i32_1 = arith.constant 0 : i32
    return %c0_i32, %c0_i32_0 : i32, i32
  }
  func.func @transform_5(%arg0: i32) -> (i32, i32) {
    %c0_i32 = arith.constant 0 : i32
    %c0_i32_0 = arith.constant 0 : i32
    %c0_i32_1 = arith.constant 0 : i32
    return %c0_i32, %c0_i32_0 : i32, i32
  }
  func.func @transform_6(%arg0: i32) -> (i32, i32) {
    %c0_i32 = arith.constant 0 : i32
    %c0_i32_0 = arith.constant 0 : i32
    %c0_i32_1 = arith.constant 0 : i32
    return %c0_i32, %c0_i32_0 : i32, i32
  }
  func.func @transform_7(%arg0: i32) -> (i32, i32) {
    %c0_i32 = arith.constant 0 : i32
    %c0_i32_0 = arith.constant 0 : i32
    %c0_i32_1 = arith.constant 0 : i32
    return %c0_i32, %c0_i32_0 : i32, i32
  }
  func.func @transform_8(%arg0: i32) -> (i32, i32) {
    %c0_i32 = arith.constant 0 : i32
    %c0_i32_0 = arith.constant 0 : i32
    %c0_i32_1 = arith.constant 0 : i32
    return %c0_i32, %c0_i32_0 : i32, i32
  }
  func.func @transform_9(%arg0: i32) -> (i32, i32) {
    %c0_i32 = arith.constant 0 : i32
    %c0_i32_0 = arith.constant 0 : i32
    %c0_i32_1 = arith.constant 0 : i32
    return %c0_i32, %c0_i32_0 : i32, i32
  }
  func.func @transform_10(%arg0: i32) -> (i32, i32) {
    %c0_i32 = arith.constant 0 : i32
    %c0_i32_0 = arith.constant 0 : i32
    %c0_i32_1 = arith.constant 0 : i32
    return %c0_i32, %c0_i32_0 : i32, i32
  }
  func.func @transform_11(%arg0: i32) -> (i32, i32, i32) {
    %c0_i32 = arith.constant 0 : i32
    %c0_i32_0 = arith.constant 0 : i32
    %c0_i32_1 = arith.constant 0 : i32
    return %arg0, %c0_i32, %c0_i32_0 : i32, i32, i32
  }
}

</mosaic_0001>

<bundles_post_ra>
// kernel: dqn_forward.1
= control target key start
LH: loop header
LB: loop body
LE: loop exit
PB: predicated region body
PF: predicated region fallthrough
CT: control target
= control target key end

     0   :  { %s6237_s17 = smov 0   ;;  %s9435_s0 = inlined_call_operand.vmem [shape: f32[6,12,24,64], index: 0, kind: input, shape index: {}]   ;;  %s9436_s1 = inlined_call_operand.vmem [shape: bf16[256,32], index: 1, kind: input, shape index: {}]   ;;  %s9437_s2 = inlined_call_operand.vmem [shape: f32[1,32], index: 2, kind: input, shape index: {}]   ;;  %s9438_s3 = inlined_call_operand.vmem [shape: bf16[512,64], index: 3, kind: input, shape index: {}]   ;;  %s9439_s4 = inlined_call_operand.vmem [shape: f32[1,64], index: 4, kind: input, shape index: {}]   ;;  %s9440_s5 = inlined_call_operand.vmem [shape: bf16[576,64], index: 5, kind: input, shape index: {}]   ;;  %s9441_s6 = inlined_call_operand.vmem [shape: f32[1,64], index: 6, kind: input, shape index: {}]   ;;  %s9442_s7 = inlined_call_operand.vmem [shape: bf16[256,512], index: 7, kind: input, shape index: {}]   ;;  %s9443_s8 = inlined_call_operand.vmem [shape: f32[1,512], index: 8, kind: input, shape index: {}]   ;;  %s9444_s9 = inlined_call_operand.vmem [shape: bf16[512,128], index: 9, kind: input, shape index: {}]   ;;  %s9445_s10 = inlined_call_operand.vmem [shape: f32[1,128], index: 10, kind: input, shape index: {}]   ;;  %s9446_s11 = inlined_call_operand.vmem [shape: f32[2,3,128], index: 11, kind: output, shape index: {}]  }
   0x1 LB: > { %s6243_s18 = sadd.s32 4294967295, %s6172_s17   ;;  %p4629_p0 = scmp.ge.s32.totalorder %s6172_s17, 1  ;;  %s6172_s17 = sphi %s6237_s17, %s21_s17  }
   0x2   : > { %p339_p1 = scmp.lt.s32.totalorder %s6172_s17, 3 }
   0x4   : > { %p340_p2 = pnand %p4629_p0, %p339_p1 }
   0x6   : > { %343 = sbr.rel (%p340_p2) target bundleno = 2133 (0x855), region = 64 }
   0xb   : > { %s379_s19 = smul.u32 3, %s6243_s18  ;;  %vm607_vm0 = vcmask 1046528   ;;  %s6174_s24 = smov 64   ;;  %vm1112_vm1 = vcmask 523264   ;;  %vm2556_vm2 = vcmask 261120   ;;  %vm2581_vm3 = vcmask 785408  }
   0xc   : > { %s6175_s29 = smov 32   ;;  %s6176_s30 = smov 96   ;;  %vm3721_vm4 = vcmask 1041409   ;;  %vm3724_vm5 = vcmask 1042434  }
   0xd   : > { %p380_p3 = scmp.lt.s32.totalorder %s379_s19, 5  ;;  %p386_p4 = scmp.lt.s32.totalorder %s6243_s18, 1 }
   0xf   : > { %s9774_s19 = smov (!%p380_p3, %s379_s19), 5  ;;  %s9776_s18 = smov (!%p386_p4, %s6243_s18), 1 }
  0x10   : > { %s5553_s20 = smul.u32 288, %s9774_s19  ;;  %s4631_s12 = sshll.u32 %s9776_s18, 2 }
  0x12   : > { %s6251_s23 = scalar_lea.vmem %s9435_s0, %s5553_s20 }
  0x13   : > { %v6254_v0 = vld [vmem:[%s6251_s23 + $0x8] sm:$0xff]  ;;  %v6257_v1 = vld [vmem:[%s6251_s23 + $0x10] sm:$0xff]  ;;  %v6260_v2 = vld [vmem:[%s6251_s23 + $0x20] sm:$0xff] }
  0x14   : > { %v609_v3 = vrot.slane %v6254_v0, 1  ;;  %v611_v4 = vrot.slane %v6257_v1, 1  ;;  %v6265_v5 = vld [vmem:[%s6251_s23] sm:$0xff]  ;;  %v6268_v6 = vld [vmem:[%s6251_s23 + $0x98] sm:$0xff]  ;;  %v6275_v9 = vld [vmem:[%s6251_s23 + $0x90] sm:$0xff]  ;;  %v614_v17 = vrot.slane %v6260_v2, 1 }
  0x15   : > { %v6271_v7 = vld [vmem:[%s6251_s23 + $0xa0] sm:$0xff]  ;;  %v608_v8 = vrot.slane %v6265_v5, 1  ;;  %v639_v11 = vrot.slane %v6268_v6, 1  ;;  %v638_v15 = vrot.slane %v6275_v9, 1  ;;  %v6287_v18 = vld [vmem:[%s6251_s23 + $0x18] sm:$0xff]  ;;  %v6290_v19 = vld [vmem:[%s6251_s23 + $0x28] sm:$0xff] }
  0x16   : > { %v612_v10 = vsel %vm607_vm0, %v609_v3, %v611_v4  ;;  %v641_v12 = vrot.slane %v6271_v7, 1  ;;  %v6294_v20 = vld [vmem:[%s6251_s23 + $0xb0] sm:$0xff]  ;;  %v6299_v23 = vld [vmem:[%s6251_s23 + $0xc0] sm:$0xff]  ;;  %v6302_v24 = vld [vmem:[%s6251_s23 + $0xc8] sm:$0xff]  ;;  %v613_v25 = vrot.slane %v6287_v18, 1  ;;  %v616_v28 = vrot.slane %v6290_v19, 1 }
  0x17   : > { %v5575_v13 = vpack.i.bf16 %v6260_v2, %v612_v10  ;;  %v610_v14 = vsel %vm607_vm0, %v608_v8, %v609_v3  ;;  %v640_v22 = vsel %vm607_vm0, %v638_v15, %v639_v11  ;;  %v6306_v26 = vld [vmem:[%s6251_s23 + $0x30] sm:$0xff]  ;;  %v6309_v27 = vld [vmem:[%s6251_s23 + $0x38] sm:$0xff]  ;;  %v648_v32 = vrot.slane %v6299_v23, 1  ;;  %v6326_v40 = vld [vmem:[%s6251_s23 + $0x48] sm:$0xff] }
  0x18   : > { %v5565_v16 = vpack.i.bf16 %v610_v14, %v6254_v0  ;;  %v642_v21 = vsel %vm607_vm0, %v639_v11, %v641_v12  ;;  %v615_v30 = vsel %vm607_vm0, %v613_v25, %v614_v17  ;;  %v5570_v31 = vpack.i.bf16 %v640_v22, %v6268_v6  ;;  %v6329_v41 = vld [vmem:[%s6251_s23 + $0xa8] sm:$0xff]  ;;  %v6332_v42 = vld [vmem:[%s6251_s23 + $0x50] sm:$0xff]  ;;  %v6335_v43 = vld [vmem:[%s6251_s23 + $0x58] sm:$0xff] }
  0x19   : > { %5576 = vrot.lane.b32.xlu1 %v5575_v13, %s6174_s24  ;;  %v5580_v29 = vpack.i.bf16 %v6294_v20, %v642_v21  ;;  %v649_v33 = vrot.slane %v6302_v24, 1  ;;  %v617_v34 = vsel %vm607_vm0, %v614_v17, %v616_v28  ;;  %v618_v35 = vrot.slane %v6306_v26, 1  ;;  %v6339_v45 = vld [vmem:[%s6251_s23 + $0xb8] sm:$0xff]  ;;  %v6343_v47 = vld [vmem:[%s6251_s23 + $0xd0] sm:$0xff]  ;;  %v6360_v60 = vld [vmem:[%s6251_s23 + $0x40] sm:$0xff] }
  0x1a   : > { %5566 = vrot.lane.b32.xlu0 %v5565_v16, %s6174_s24  ;;  %v619_v36 = vrot.slane %v6309_v27, 1  ;;  %v5585_v37 = vpack.i.bf16 %v617_v34, %v615_v30  ;;  %v644_v38 = vrot.slane %v6294_v20, 1  ;;  %v643_v46 = vrot.slane %v6329_v41, 1  ;;  %v6363_v61 = vld [vmem:[%s6251_s23 + $0xf0] sm:$0xff]  ;;  %v6366_v62 = vld [vmem:[%s6251_s23 + $0xf8] sm:$0xff]  ;;  %v6369_v63 = vld [vmem:[%s6251_s23 + $0xe0] sm:$0xff] }
  0x1b   : > { %v650_v39 = vsel %vm607_vm0, %v648_v32, %v649_v33  ;;  %v646_v48 = vrot.slane %v6339_v45, 1  ;;  %v623_v50 = vrot.slane %v6326_v40, 1  ;;  %v624_v52 = vrot.slane %v6332_v42, 1  ;;  %v6374_v8 = vld [vmem:[%s6251_s23 + $0x60] sm:$0xff]  ;;  %v6377_v10 = vld [vmem:[%s6251_s23 + $0x68] sm:$0xff]  ;;  %v6391_v28 = vld [vmem:[%s6251_s23 + $0x78] sm:$0xff] }
  0x1c   : > { %5586 = vrot.lane.b32.xlu2 %v5585_v37, %s6174_s24  ;;  %v620_v44 = vsel %vm607_vm0, %v618_v35, %v619_v36  ;;  %v5600_v49 = vpack.i.bf16 %v650_v39, %v6302_v24  ;;  %v645_v51 = vsel %vm607_vm0, %v643_v46, %v644_v38  ;;  %v626_v53 = vrot.slane %v6335_v43, 1  ;;  %v6398_v30 = vld [vmem:[%s6251_s23 + $0xe8] sm:$0xff] }
  0x1d   : > { %v5595_v54 = vpack.i.bf16 %v620_v44, %v6309_v27  ;;  %v647_v55 = vsel %vm607_vm0, %v644_v38, %v646_v48  ;;  %v651_v56 = vrot.slane %v6343_v47, 1  ;;  %v625_v58 = vsel %vm607_vm0, %v623_v50, %v624_v52  ;;  %v6404_v32 = vld [vmem:[%s6251_s23 + $0x88] sm:$0xff] }
  0x1e   : > { %v5590_v57 = vpack.i.bf16 %v647_v55, %v645_v51  ;;  %v627_v59 = vsel %vm607_vm0, %v624_v52, %v626_v53  ;;  %v621_v4 = vrot.slane %v6360_v60, 1  ;;  %v658_v13 = vrot.slane %v6363_v61, 1  ;;  %v5364_v55 = vld [vmem:[%s9436_s1 + $0x38] sm:$0xff] }
  0x1f   : > { %v652_v3 = vsel %vm607_vm0, %v649_v33, %v651_v56  ;;  %v5615_v11 = vpack.i.bf16 %v627_v59, %v625_v58  ;;  %v659_v14 = vrot.slane %v6366_v62, 1  ;;  %v628_v17 = vrot.slane %v6374_v8, 1  ;;  %v6430_v56 = vld [vmem:[%s6251_s23 + $0x70] sm:$0xff]  ;;  %v6437_v59 = vld [vmem:[%s6251_s23 + $0x128] sm:$0xff]  ;;  %1434 = vmatpush.bf16.msra.mxu0 %v5364_v55  ;;  %5537 = vmatpush.bf16.msra.mxu2 %v5364_v55 }
  0x20   : > { %v622_v12 = vsel %vm607_vm0, %v619_v36, %v621_v4  ;;  %v5610_v15 = vpack.i.bf16 %v6369_v63, %v652_v3  ;;  %v629_v21 = vrot.slane %v6377_v10, 1  ;;  %v654_v22 = vrot.slane %v6369_v63, 1  ;;  %v6410_v36 = vld [vmem:[%s6251_s23 + $0x100] sm:$0xff]  ;;  %v445_v4 = vld [vmem:[%s6251_s23 + $0x1b0] sm:$0xff] }
  0x21   : > { %5581 = vrot.lane.b32.xlu1 %v5580_v29, %s6174_s24  ;;  %v5605_v16 = vpack.i.bf16 %v6332_v42, %v622_v12  ;;  %v660_v25 = vsel %vm607_vm0, %v658_v13, %v659_v14  ;;  %v6395_v29 = vld [vmem:[%s6251_s23 + $0xd8] sm:$0xff]  ;;  %v656_v35 = vrot.slane %v6398_v30, 1  ;;  %v633_v38 = vrot.slane %v6391_v28, 1 }
  0x22   : > { %5571 = vrot.lane.b32.xlu0 %v5570_v31, %s6174_s24  ;;  %v6401_v31 = vld [vmem:[%s6251_s23 + $0x80] sm:$0xff]  ;;  %v630_v33 = vsel %vm607_vm0, %v628_v17, %v629_v21  ;;  %v653_v34 = vrot.slane %v6395_v29, 1  ;;  %v5630_v37 = vpack.i.bf16 %v660_v25, %v6366_v62  ;;  %v636_v48 = vrot.slane %v6404_v32, 1 }
  0x23   : > { %v657_v44 = vsel %vm607_vm0, %v654_v22, %v656_v35  ;;  %v634_v46 = vrot.slane %v6401_v31, 1  ;;  %v661_v51 = vrot.slane %v6410_v36, 1  ;;  %v631_v3 = vrot.slane %v6430_v56, 1  ;;  %v447_v35 = vld [vmem:[%s6251_s23 + $0x1c0] sm:$0xff] }
  0x24   : > { %5591 = vrot.lane.b32.xlu2 %v5590_v57, %s6174_s24  ;;  %v655_v39 = vsel %vm607_vm0, %v653_v34, %v654_v22  ;;  %v6433_v57 = vld [vmem:[%s6251_s23 + $0x110] sm:$0xff]  ;;  %v698_v25 = vrot.slane %v445_v4, 1 }
  0x25   : > { %v5620_v50 = vpack.i.bf16 %v657_v44, %v655_v39  ;;  %v635_v52 = vsel %vm607_vm0, %v633_v38, %v634_v46  ;;  %v637_v53 = vsel %vm607_vm0, %v634_v46, %v636_v48  ;;  %v662_v58 = vsel %vm607_vm0, %v659_v14, %v661_v51  ;;  %v5362_v38 = vld [vmem:[%s9436_s1 + $0x28] sm:$0xff]  ;;  %v5372_v39 = vld [vmem:[%s9436_s1 + $0x78] sm:$0xff]  ;;  %v5361_v44 = vld [vmem:[%s9436_s1 + $0x20] sm:$0xff] }
  0x26   : > { %v5645_v12 = vpack.i.bf16 %v637_v53, %v635_v52  ;;  %v5640_v17 = vpack.i.bf16 %v6433_v57, %v662_v58  ;;  %v669_v14 = vrot.slane %v6437_v59, 1  ;;  %v664_v34 = vrot.slane %v6433_v57, 1  ;;  %v5371_v46 = vld [vmem:[%s9436_s1 + $0x70] sm:$0xff]  ;;  %v6471_v48 = vld [vmem:[%s6251_s23 + $0x108] sm:$0xff]  ;;  %1695 = vmatpush.bf16.msra.mxu1 %v5372_v39  ;;  %v430_v52 = vld [vmem:[%s6251_s23 + $0x138] sm:$0xff]  ;;  %5545 = vmatpush.bf16.msra.mxu3 %v5372_v39 }
  0x27   : > { %v431_v53 = vld [vmem:[%s6251_s23 + $0x140] sm:$0xff] }
  0x28   : > { %v451_v39 = vld [vmem:[%s6251_s23 + $0x1e0] sm:$0xff] }
  0x29   : > { %5601 = vrot.lane.b32.xlu1 %v5600_v49, %s6174_s24  ;;  %v5625_v49 = vpack.i.bf16 %v630_v33, %v6377_v10 }
  0x2a   : > { %5596 = vrot.lane.b32.xlu0 %v5595_v54, %s6174_s24  ;;  %v427_v54 = vld [vmem:[%s6251_s23 + $0x120] sm:$0xff]  ;;  %1696 = vmatpush.bf16.msra.mxu1 %v5371_v46 }
  0x2b   : > { %v668_v13 = vrot.slane %v427_v54, 1  ;;  %v432_v54 = vld [vmem:[%s6251_s23 + $0x148] sm:$0xff]  ;;  %5546 = vmatpush.bf16.msra.mxu3 %v5371_v46 }
  0x2c   : > { %5606 = vrot.lane.b32.xlu2 %v5605_v16, %s6174_s24  ;;  %v632_v16 = vsel %vm607_vm0, %v629_v21, %v631_v3  ;;  %v673_v3 = vrot.slane %v430_v52, 1  ;;  %v5369_v52 = vld [vmem:[%s9436_s1 + $0x60] sm:$0xff] }
  0x2d   : > { %v5635_v22 = vpack.i.bf16 %v6401_v31, %v632_v16  ;;  %v670_v21 = vsel %vm607_vm0, %v668_v13, %v669_v14  ;;  %v676_v13 = vrot.slane %v432_v54, 1  ;;  %v701_v16 = vrot.slane %v447_v35, 1 }
  0x2e   : > { %v5655_v55 = vpack.i.bf16 %v670_v21, %v6437_v59  ;;  %v5370_v21 = vld [vmem:[%s9436_s1 + $0x68] sm:$0xff] }
  0x2f   : > { %1697 = vmatpush.bf16.msra.mxu1 %v5370_v21  ;;  %5547 = vmatpush.bf16.msra.mxu3 %v5370_v21 }
  0x31   : > { %5616 = vrot.lane.b32.xlu1 %v5615_v11, %s6174_s24  ;;  %v5363_v11 = vld [vmem:[%s9436_s1 + $0x30] sm:$0xff] }
  0x32   : > { %5611 = vrot.lane.b32.xlu0 %v5610_v15, %s6174_s24  ;;  %v446_v15 = vld [vmem:[%s6251_s23 + $0x1b8] sm:$0xff]  ;;  %1435 = vmatpush.bf16.msra.mxu0 %v5363_v11 }
  0x33   : > { %v699_v33 = vrot.slane %v446_v15, 1  ;;  %5538 = vmatpush.bf16.msra.mxu2 %v5363_v11  ;;  %1698 = vmatpush.bf16.msra.mxu1 %v5369_v52 }
  0x34   : > { %5621 = vrot.lane.b32.xlu2 %v5620_v50, %s6174_s24  ;;  %v663_v50 = vrot.slane %v6471_v48, 1  ;;  %5548 = vmatpush.bf16.msra.mxu3 %v5369_v52 }
  0x35   : > { %v702_v35 = vsel %vm607_vm0, %v699_v33, %v701_v16  ;;  %v453_v16 = vld [vmem:[%s6251_s23 + $0x1f0] sm:$0xff] }
  0x36   : > { %1436 = vmatpush.bf16.msra.mxu0 %v5362_v38  ;;  %v665_v4 = vsel %vm607_vm0, %v663_v50, %v664_v34  ;;  %v6503_v50 = vld [vmem:[%s6251_s23 + $0x158] sm:$0xff] }
  0x37   : > { %5539 = vmatpush.bf16.msra.mxu2 %v5362_v38  ;;  %v429_v38 = vld [vmem:[%s6251_s23 + $0x130] sm:$0xff] }
  0x38   : > { %v671_v54 = vrot.slane %v429_v38, 1 }
  0x39   : > { %5631 = vrot.lane.b32.xlu1 %v5630_v37, %s6174_s24  ;;  %v700_v37 = vsel %vm607_vm0, %v698_v25, %v699_v33 }
  0x3a   : > { %5626 = vrot.lane.b32.xlu0 %v5625_v49, %s6174_s24  ;;  %v6474_v49 = vld [vmem:[%s6251_s23 + $0x118] sm:$0xff]  ;;  %v5660_v58 = vpack.i.bf16 %v700_v37, %v446_v15  ;;  %1437 = vmatpush.bf16.msra.mxu0 %v5361_v44  ;;  %v6488_v15 = vld [vmem:[%s6251_s23 + $0x1d0] sm:$0xff]  ;;  %v672_v46 = vsel %vm607_vm0, %v669_v14, %v671_v54  ;;  %v5358_v14 = vld [vmem:[%s9436_s1 + $0x8] sm:$0xff] }
  0x3b   : > { %v666_v51 = vrot.slane %v6474_v49, 1  ;;  %5540 = vmatpush.bf16.msra.mxu2 %v5361_v44  ;;  %v433_v37 = vld [vmem:[%s6251_s23 + $0x150] sm:$0xff]  ;;  %v452_v44 = vld [vmem:[%s6251_s23 + $0x1e8] sm:$0xff]  ;;  %v5670_v33 = vpack.i.bf16 %v6488_v15, %v702_v35  ;;  %v439_v35 = vld [vmem:[%s6251_s23 + $0x180] sm:$0xff] }
  0x3c   : > { %5636 = vrot.lane.b32.xlu2 %v5635_v22, %s6174_s24  ;;  %v458_v54 = vld [vmem:[%s6251_s23 + $0x218] sm:$0xff] }
  0x3d   : > { %v667_v11 = vsel %vm607_vm0, %v664_v34, %v666_v51  ;;  %v5360_v34 = vld [vmem:[%s9436_s1 + $0x18] sm:$0xff]  ;;  %v5359_v51 = vld [vmem:[%s9436_s1 + $0x10] sm:$0xff] }
  0x3e   : > { %1438 = vmatpush.bf16.msra.mxu0 %v5360_v34 }
  0x3f   : > { %5541 = vmatpush.bf16.msra.mxu2 %v5360_v34  ;;  %v6535_v34 = vld [vmem:[%s6251_s23 + $0x200] sm:$0xff] }
  0x41   : > { %5646 = vrot.lane.b32.xlu1 %v5645_v12, %s6174_s24  ;;  %v674_v12 = vrot.slane %v431_v53, 1 }
  0x42   : > { %5641 = vrot.lane.b32.xlu0 %v5640_v17, %s6174_s24  ;;  %v5650_v17 = vpack.i.bf16 %v667_v11, %v665_v4  ;;  %v679_v4 = vrot.slane %v6503_v50, 1  ;;  %v5665_v11 = vpack.i.bf16 %v431_v53, %v672_v46  ;;  %1439 = vmatpush.bf16.msra.mxu0 %v5359_v51  ;;  %v5368_v53 = vld [vmem:[%s9436_s1 + $0x58] sm:$0xff] }
  0x43   : > { %v675_v22 = vsel %vm607_vm0, %v673_v3, %v674_v12  ;;  %v677_v25 = vsel %vm607_vm0, %v674_v12, %v676_v13  ;;  %v678_v3 = vrot.slane %v433_v37, 1  ;;  %v709_v12 = vrot.slane %v452_v44, 1  ;;  %5542 = vmatpush.bf16.msra.mxu2 %v5359_v51  ;;  %1699 = vmatpush.bf16.msra.mxu1 %v5368_v53  ;;  %v6540_v37 = vld [vmem:[%s6251_s23 + $0x188] sm:$0xff] }
  0x44   : > { %5651 = vrot.lane.b32.xlu2 %v5650_v17, %s6174_s24  ;;  %5549 = vmatpush.bf16.msra.mxu3 %v5368_v53  ;;  %v689_v51 = vrot.slane %v6540_v37, 1  ;;  %v5357_v53 = vld [vmem:[%s9436_s1] sm:$0xff] }
  0x45   : > { %v680_v13 = vsel %vm607_vm0, %v678_v3, %v679_v4  ;;  %v6554_v3 = vld [vmem:[%s6251_s23 + $0x230] sm:$0xff] }
  0x46   : > { %1440 = vmatpush.bf16.msra.mxu0 %v5358_v14 }
  0x47   : > { %5543 = vmatpush.bf16.msra.mxu2 %v5358_v14  ;;  %v436_v14 = vld [vmem:[%s6251_s23 + $0x168] sm:$0xff] }
  0x49   : > { %5661 = vrot.lane.b32.xlu1 %v5660_v58, %s6174_s24  ;;  %v708_v58 = vrot.slane %v451_v39, 1  ;;  %v688_v39 = vrot.slane %v439_v35, 1 }
  0x4a   : > { %5656 = vrot.lane.b32.xlu0 %v5655_v55, %s6174_s24  ;;  %v5675_v55 = vpack.i.bf16 %v677_v25, %v675_v22  ;;  %v5685_v22 = vpack.i.bf16 %v680_v13, %v6503_v50  ;;  %v711_v25 = vrot.slane %v453_v16, 1  ;;  %v5367_v13 = vld [vmem:[%s9436_s1 + $0x50] sm:$0xff]  ;;  %1441 = vmatpush.bf16.msra.mxu0 %v5357_v53 }
  0x4b   : > { %v710_v59 = vsel %vm607_vm0, %v708_v58, %v709_v12  ;;  %v690_v52 = vsel %vm607_vm0, %v688_v39, %v689_v51  ;;  %v704_v58 = vrot.slane %v6488_v15, 1  ;;  %v683_v15 = vrot.slane %v436_v14, 1  ;;  %v6573_v39 = vld [vmem:[%s6251_s23 + $0x2b0] sm:$0xff]  ;;  %1700 = vmatpush.bf16.msra.mxu1 %v5367_v13  ;;  %5544 = vmatpush.bf16.msra.mxu2 %v5357_v53  ;;  %v435_v53 = vld [vmem:[%s6251_s23 + $0x160] sm:$0xff] }
  0x4c   : > { %5666 = vrot.lane.b32.xlu2 %v5665_v11, %s6174_s24  ;;  %v5690_v17 = vpack.i.bf16 %v710_v59, %v452_v44  ;;  %v712_v21 = vsel %vm607_vm0, %v709_v12, %v711_v25  ;;  %v459_v44 = vld [vmem:[%s6251_s23 + $0x220] sm:$0xff]  ;;  %v448_v12 = vld [vmem:[%s6251_s23 + $0x1c8] sm:$0xff]  ;;  %v450_v59 = vld [vmem:[%s6251_s23 + $0x1d8] sm:$0xff]  ;;  %5550 = vmatpush.bf16.msra.mxu3 %v5367_v13 }
  0x4d   : > { %v5700_v38 = vpack.i.bf16 %v6535_v34, %v712_v21  ;;  %v721_v46 = vrot.slane %v459_v44, 1  ;;  %v703_v16 = vrot.slane %v448_v12, 1  ;;  %v438_v21 = vld [vmem:[%s6251_s23 + $0x178] sm:$0xff]  ;;  %v457_v13 = vld [vmem:[%s6251_s23 + $0x210] sm:$0xff] }
  0x51   : > { %5676 = vrot.lane.b32.xlu1 %v5675_v55, %s6174_s24  ;;  %v5715_v55 = vpack.i.bf16 %v690_v52, %v6540_v37  ;;  %v705_v52 = vsel %vm607_vm0, %v703_v16, %v704_v58  ;;  %v5366_v16 = vld [vmem:[%s9436_s1 + $0x48] sm:$0xff] }
  0x52   : > { %5671 = vrot.lane.b32.xlu0 %v5670_v33, %s6174_s24  ;;  %v719_v33 = vrot.slane %v458_v54, 1  ;;  %1701 = vmatpush.bf16.msra.mxu1 %v5366_v16  ;;  %v460_v37 = vld [vmem:[%s6251_s23 + $0x228] sm:$0xff] }
  0x53   : > { %5551 = vmatpush.bf16.msra.mxu3 %v5366_v16  ;;  %v456_v16 = vld [vmem:[%s6251_s23 + $0x208] sm:$0xff] }
  0x54   : > { %v722_v11 = vsel %vm607_vm0, %v719_v33, %v721_v46 }
  0x55   : > { %v5730_v25 = vpack.i.bf16 %v6554_v3, %v722_v11 }
  0x59   : > { %5691 = vrot.lane.b32.xlu1 %v5690_v17, %s6174_s24  ;;  %v706_v17 = vrot.slane %v450_v59, 1  ;;  %v751_v59 = vrot.slane %v6573_v39, 1 }
  0x5a   : > { %5686 = vrot.lane.b32.xlu0 %v5685_v22, %s6174_s24  ;;  %v437_v22 = vld [vmem:[%s6251_s23 + $0x170] sm:$0xff] }
  0x5b   : > { %v684_v35 = vrot.slane %v437_v22, 1  ;;  %v707_v44 = vsel %vm607_vm0, %v704_v58, %v706_v17  ;;  %v6587_v17 = vld [vmem:[%s6251_s23 + $0x2c0] sm:$0xff] }
  0x5c   : > { %v5680_v12 = vpack.i.bf16 %v707_v44, %v705_v52 }
  0x5d   : > { %v685_v11 = vsel %vm607_vm0, %v683_v15, %v684_v35 }
  0x5e   : > { %5681 = vrot.lane.b32.xlu2 %v5680_v12, %s6174_s24 }
  0x62   : > { %5701 = vrot.lane.b32.xlu0 %v5700_v38, %s6174_s24  ;;  %v6570_v38 = vld [vmem:[%s6251_s23 + $0x2a8] sm:$0xff] }
  0x63   : > { %v9448_v46 = vrot.slane %v6570_v38, 1 }
  0x65   : > { %v752_v15 = vsel %vm607_vm0, %v9448_v46, %v751_v59  ;;  %v714_v59 = vrot.slane %v6535_v34, 1 }
  0x66   : > { %v5745_v52 = vpack.i.bf16 %v6587_v17, %v752_v15 }
  0x6a   : > { %5716 = vrot.lane.b32.xlu0 %v5715_v55, %s6174_s24  ;;  %v686_v55 = vrot.slane %v438_v21, 1  ;;  %v681_v21 = vrot.slane %v435_v53, 1 }
  0x6c   : > { %v687_v14 = vsel %vm607_vm0, %v684_v35, %v686_v55  ;;  %v718_v35 = vrot.slane %v457_v13, 1  ;;  %v682_v44 = vsel %vm607_vm0, %v679_v4, %v681_v21  ;;  %v716_v4 = vrot.slane %v456_v16, 1 }
  0x6d   : > { %v5705_v58 = vpack.i.bf16 %v687_v14, %v685_v11  ;;  %v5695_v12 = vpack.i.bf16 %v437_v22, %v682_v44  ;;  %v454_v14 = vld [vmem:[%s6251_s23 + $0x1f8] sm:$0xff]  ;;  %v444_v22 = vld [vmem:[%s6251_s23 + $0x1a8] sm:$0xff]  ;;  %v441_v44 = vld [vmem:[%s6251_s23 + $0x190] sm:$0xff] }
  0x6e   : > { %v720_v55 = vsel %vm607_vm0, %v718_v35, %v719_v33  ;;  %v713_v50 = vrot.slane %v454_v14, 1  ;;  %v443_v33 = vld [vmem:[%s6251_s23 + $0x1a0] sm:$0xff]  ;;  %v696_v53 = vrot.slane %v444_v22, 1  ;;  %v717_v34 = vsel %vm607_vm0, %v714_v59, %v716_v4  ;;  %v6626_v14 = vld [vmem:[%s6251_s23 + $0x350] sm:$0xff] }
  0x6f   : > { %5706 = vrot.lane.b32.xlu1 %v5705_v58, %s6174_s24  ;;  %v5720_v11 = vpack.i.bf16 %v720_v55, %v458_v54  ;;  %5696 = vrot.lane.b32.xlu2 %v5695_v12, %s6174_s24  ;;  %v442_v58 = vld [vmem:[%s6251_s23 + $0x198] sm:$0xff]  ;;  %v694_v15 = vrot.slane %v443_v33, 1  ;;  %v6623_v12 = vld [vmem:[%s6251_s23 + $0x340] sm:$0xff]  ;;  %9546 = vst [vmem:[#allocation3_spill] sm:$0xff] %v6626_v14 }
  0x70   : > { %v693_v54 = vrot.slane %v442_v58, 1  ;;  %v715_v13 = vsel %vm607_vm0, %v713_v50, %v714_v59  ;;  %v6620_v55 = vld [vmem:[%s6251_s23 + $0x338] sm:$0xff]  ;;  %9545 = vst [vmem:[#allocation2_spill] sm:$0xff] %v6623_v12  ;;  %v781_v16 = vrot.slane %v6623_v12, 1 }
  0x71   : > { %v697_v35 = vsel %vm607_vm0, %v694_v15, %v696_v53  ;;  %v9447_v59 = vrot.slane %v6620_v55, 1  ;;  %v724_v53 = vrot.slane %v6554_v3, 1 }
  0x72   : > { %5731 = vrot.lane.b32.xlu0 %v5730_v25, %s6174_s24  ;;  %v5365_v25 = vld [vmem:[%s9436_s1 + $0x40] sm:$0xff]  ;;  %v695_v21 = vsel %vm607_vm0, %v693_v54, %v694_v15 }
  0x73   : > { %1702 = vmatpush.bf16.msra.mxu1 %v5365_v25  ;;  %5552 = vmatpush.bf16.msra.mxu3 %v5365_v25  ;;  %v5710_v25 = vpack.i.bf16 %v717_v34, %v715_v13  ;;  %v782_v4 = vsel %vm607_vm0, %v9447_v59, %v781_v16 }
  0x74   : > { %v5750_v54 = vpack.i.bf16 %v6626_v14, %v782_v4 }
  0x76   : > { %v6630_v58 = vpop.permute.xlu2 %5586 }
  0x77   : > { %5721 = vrot.lane.b32.xlu1 %v5720_v11, %s6174_s24  ;;  %5711 = vrot.lane.b32.xlu2 %v5710_v25, %s6174_s24  ;;  %v691_v11 = vrot.slane %v441_v44, 1  ;;  %v5588_v15 = vunpack.i.l.bf16 %v6630_v58 }
  0x79   : > { %v692_v50 = vsel %vm607_vm0, %v689_v51, %v691_v11  ;;  %v462_v51 = vld [vmem:[%s6251_s23 + $0x238] sm:$0xff]  ;;  %v6659_v4 = vsel %vm1112_vm1, %v6260_v2, %v5588_v15 }
  0x7a   : > { %5746 = vrot.lane.b32.xlu0 %v5745_v52, %s6174_s24  ;;  %v5735_v52 = vpack.i.bf16 %v697_v35, %v695_v21  ;;  %v5725_v22 = vpack.i.bf16 %v443_v33, %v692_v50  ;;  %v6646_v21 = vld [vmem:[%s6251_s23 + $0x2d0] sm:$0xff]  ;;  %v726_v44 = vrot.slane %v462_v51, 1  ;;  %v6649_v11 = vld [vmem:[%s6251_s23 + $0x2d8] sm:$0xff] }
  0x7b   : > { %v758_v3 = vrot.slane %v6646_v21, 1  ;;  %v759_v50 = vrot.slane %v6649_v11, 1 }
  0x7f   : > { %5736 = vrot.lane.b32.xlu1 %v5735_v52, %s6174_s24  ;;  %5726 = vrot.lane.b32.xlu2 %v5725_v22, %s6174_s24  ;;  %v723_v52 = vrot.slane %v460_v37, 1  ;;  %v760_v37 = vsel %vm607_vm0, %v758_v3, %v759_v50 }
  0x80   : > { %v5765_v59 = vpack.i.bf16 %v760_v37, %v6649_v11 }
  0x87   : > { %5751 = vrot.lane.b32.xlu1 %v5750_v54, %s6174_s24 }
  0x8b   : > { %v5577_v13 = vpop.permute.xlu1 %5576 }
  0x8c   : > { %v5579_v34 = vunpack.i.h.bf16 %v5577_v13  ;;  %v5567_v25 = vpop.permute.xlu0 %5566 }
  0x8d   : > { %v5569_v33 = vunpack.i.h.bf16 %v5567_v25  ;;  %v5568_v35 = vunpack.i.l.bf16 %v5567_v25  ;;  %v725_v25 = vsel %vm607_vm0, %v723_v52, %v724_v53 }
  0x8e   : > { %v6653_v16 = vsel %vm1112_vm1, %v6287_v18, %v5579_v34  ;;  %v727_v34 = vsel %vm607_vm0, %v724_v53, %v726_v44  ;;  %v6678_v53 = vld [vmem:[%s6251_s23 + $0x2c8] sm:$0xff] }
  0x8f   : > { %9547 = vst [vmem:[#allocation4_spill] sm:$0xff] %v6653_v16  ;;  %v1113_v22 = vsel %vm1112_vm1, %v6265_v5, %v5568_v35  ;;  %v1114_v54 = vsel %vm1112_vm1, %v6254_v0, %v5569_v33  ;;  %v5740_v51 = vpack.i.bf16 %v727_v34, %v725_v25  ;;  %v754_v5 = vrot.slane %v6587_v17, 1  ;;  %5766 = vrot.lane.b32.xlu1 %v5765_v59, %s6174_s24  ;;  %v6675_v35 = vld [vmem:[%s6251_s23 + $0x2b8] sm:$0xff]  ;;  %v6686_v25 = vpop.permute.xlu2 %5591 }
  0x90   : > { %v1221_v18 = vpack.c.bf16 %v1114_v54, %v1113_v22  ;;  %v753_v3 = vrot.slane %v6675_v35, 1  ;;  %v756_v22 = vrot.slane %v6678_v53, 1 }
  0x91   : > { %5741 = vrot.lane.b32.xlu2 %v5740_v51, %s6174_s24 }
  0x92   : > { %1442 = vmatmul.bf16.vlgmr.msra.gmra.mxu0 %v1221_v18  ;;  %v5578_v18 = vunpack.i.l.bf16 %v5577_v13  ;;  %v755_v37 = vsel %vm607_vm0, %v753_v3, %v754_v5  ;;  %v757_v13 = vsel %vm607_vm0, %v754_v5, %v756_v22  ;;  %v6723_v5 = vld [vmem:[%s6251_s23 + $0x358] sm:$0xff] }
  0x93   : > { %v5582_v15 = vpop.permute.xlu1 %5581  ;;  %9555 = vst [vmem:[#allocation12_spill] sm:$0xff] %v6723_v5 }
  0x94   : > { %v5583_v0 = vunpack.i.l.bf16 %v5582_v15  ;;  %v5572_v33 = vpop.permute.xlu0 %5571  ;;  %v1115_v3 = vsel %vm1112_vm1, %v6257_v1, %v5578_v18 }
  0x95   : > { %v5574_v52 = vunpack.i.h.bf16 %v5572_v33  ;;  %v5573_v44 = vunpack.i.l.bf16 %v5572_v33  ;;  %v6708_v33 = vld [vmem:[%s6251_s23 + $0x2e0] sm:$0xff]  ;;  %v1223_v18 = vpack.c.bf16 %v6653_v16, %v1115_v3  ;;  %v5593_v16 = vunpack.i.l.bf16 %v6686_v25 }
  0x96   : > { %v6684_v54 = vsel %vm1112_vm1, %v6271_v7, %v5583_v0  ;;  %v5589_v0 = vunpack.i.h.bf16 %v6630_v58  ;;  %9552 = vst [vmem:[#allocation9_spill] sm:$0xff] %v6708_v33  ;;  %v6719_v7 = vld [vmem:[%s6251_s23 + $0x2f0] sm:$0xff]  ;;  %v761_v58 = vrot.slane %v6708_v33, 1 }
  0x97   : > { %9548 = vst [vmem:[#allocation5_spill] sm:$0xff] %v6684_v54  ;;  %v6690_v59 = vsel %vm1112_vm1, %v6275_v9, %v5573_v44  ;;  %v6694_v34 = vsel %vm1112_vm1, %v6268_v6, %v5574_v52  ;;  %v5755_v9 = vpack.i.bf16 %v757_v13, %v755_v37  ;;  %v784_v6 = vrot.slane %v6626_v14, 1  ;;  %v6711_v52 = vld [vmem:[%s6251_s23 + $0x348] sm:$0xff] }
  0x98   : > { %9549 = vst [vmem:[#allocation6_spill] sm:$0xff] %v6690_v59  ;;  %v6699_v51 = vpack.c.bf16 %v6694_v34, %v6690_v59  ;;  %v783_v37 = vrot.slane %v6711_v52, 1  ;;  %v786_v13 = vrot.slane %v6723_v5, 1  ;;  %v6729_v46 = vsel %vm1112_vm1, %v6290_v19, %v5589_v0 }
  0x99   : > { %9550 = vst [vmem:[#allocation7_spill] sm:$0xff] %v6694_v34  ;;  %5756 = vrot.lane.b32.xlu2 %v5755_v9, %s6174_s24  ;;  %v762_v1 = vsel %vm607_vm0, %v759_v50, %v761_v58  ;;  %v6733_v9 = vpop.permute.xlu2 %5606  ;;  %v5584_v5 = vunpack.i.h.bf16 %v5582_v15  ;;  %v463_v58 = vld [vmem:[%s6251_s23 + $0x240] sm:$0xff] }
  0x9a   : > { %9551 = vst [vmem:[#allocation8_spill] sm:$0xff] %v6699_v51  ;;  %1703 = vmatmul.bf16.vlgmr.msra.gmra.mxu1 %v6699_v51  ;;  %v5780_v34 = vpack.i.bf16 %v6719_v7, %v762_v1  ;;  %v785_v14 = vsel %vm607_vm0, %v783_v37, %v784_v6  ;;  %v5608_v3 = vunpack.i.l.bf16 %v6733_v9  ;;  %v464_v37 = vld [vmem:[%s6251_s23 + $0x248] sm:$0xff]  ;;  %v6775_v1 = vld [vmem:[%s6251_s23 + $0x270] sm:$0xff] }
  0x9b   : > { %9553 = vst [vmem:[#allocation10_spill] sm:$0xff] %v6711_v52  ;;  %v6713_v44 = vpop.permute.xlu1 %5601  ;;  %v787_v52 = vsel %vm607_vm0, %v784_v6, %v786_v13 }
  0x9c   : > { %9554 = vst [vmem:[#allocation11_spill] sm:$0xff] %v6719_v7  ;;  %v5597_v22 = vpop.permute.xlu0 %5596  ;;  %v5760_v12 = vpack.i.bf16 %v787_v52, %v785_v14  ;;  %5781 = vrot.lane.b32.xlu1 %v5780_v34, %s6174_s24  ;;  %v728_v14 = vrot.slane %v463_v58, 1  ;;  %v6762_v52 = vsel %vm1112_vm1, %v6360_v60, %v5608_v3  ;;  %v6781_v60 = vld [vmem:[%s6251_s23 + $0x2f8] sm:$0xff]  ;;  %v738_v3 = vrot.slane %v6775_v1, 1 }
  0x9d   : > { %v5598_v2 = vunpack.i.l.bf16 %v5597_v22  ;;  %v5599_v0 = vunpack.i.h.bf16 %v5597_v22  ;;  %9557 = vst [vmem:[#allocation14_spill] sm:$0xff] %v6775_v1 }
  0x9e   : > { %5761 = vrot.lane.b32.xlu0 %v5760_v12, %s6174_s24  ;;  %9559 = vst [vmem:[#allocation16_spill] sm:$0xff] %v6781_v60 }
  0x9f   : > { %v6740_v19 = vsel %vm1112_vm1, %v6306_v26, %v5598_v2  ;;  %v1134_v26 = vsel %vm1112_vm1, %v6329_v41, %v5584_v5  ;;  %v729_v2 = vrot.slane %v464_v37, 1  ;;  %v6757_v6 = vsel %vm1112_vm1, %v6309_v27, %v5599_v0 }
  0xa0   : > { %v6765_v22 = vpack.c.bf16 %v1134_v26, %v6684_v54  ;;  %v764_v27 = vrot.slane %v6719_v7, 1  ;;  %v6791_v26 = vld [vmem:[%s6251_s23 + $0x2e8] sm:$0xff]  ;;  %v1225_v54 = vpack.c.bf16 %v6729_v46, %v6659_v4  ;;  %v5594_v7 = vunpack.i.h.bf16 %v6686_v25 }
  0xa1   : > { %v730_v12 = vsel %vm607_vm0, %v728_v14, %v729_v2  ;;  %v6772_v13 = vpop.permute.xlu2 %5621  ;;  %v763_v50 = vrot.slane %v6791_v26, 1  ;;  %v1135_v25 = vsel %vm1112_vm1, %v6294_v20, %v5593_v16  ;;  %v6869_v20 = vld [vmem:[%s6251_s23 + $0x258] sm:$0xff] }
  0xa2   : > { %1447 = vmatmul.bf16.gmra.mxu0 %v1223_v18  ;;  %9556 = vst [vmem:[#allocation13_spill] sm:$0xff] %v6765_v22  ;;  %v5775_v41 = vpack.i.bf16 %v730_v12, %v464_v37  ;;  %v6778_v18 = vld [vmem:[%s6251_s23 + $0x278] sm:$0xff]  ;;  %v6788_v37 = vld [vmem:[%s6251_s23 + $0x250] sm:$0xff]  ;;  %v766_v12 = vrot.slane %v6781_v60, 1 }
  0xa3   : > { %v6749_v15 = vpop.permute.xlu1 %5616  ;;  %9558 = vst [vmem:[#allocation15_spill] sm:$0xff] %v6778_v18  ;;  %v9463_v58 = vrot.slane %v6778_v18, 1 }
  0xa4   : > { %v6753_v34 = vpop.permute.xlu0 %5611  ;;  %9560 = vst [vmem:[#allocation17_spill] sm:$0xff] %v6788_v37  ;;  %v767_v1 = vsel %vm607_vm0, %v764_v27, %v766_v12  ;;  %v5618_v33 = vunpack.i.l.bf16 %v6749_v15 }
  0xa5   : > { %v740_v5 = vsel %vm607_vm0, %v738_v3, %v9463_v58  ;;  %v5609_v3 = vunpack.i.h.bf16 %v6733_v9  ;;  %9563 = vst [vmem:[#allocation20_spill] sm:$0xff] %v6869_v20 }
  0xa6   : > { %5776 = vrot.lane.b32.xlu0 %v5775_v41, %s6174_s24  ;;  %v731_v41 = vrot.slane %v6788_v37, 1  ;;  %v5795_v60 = vpack.i.bf16 %v740_v5, %v767_v1  ;;  %v765_v37 = vsel %vm607_vm0, %v763_v50, %v764_v27  ;;  %v1136_v50 = vsel %vm1112_vm1, %v6339_v45, %v5594_v7  ;;  %v6845_v7 = vld [vmem:[%s6251_s23 + $0x300] sm:$0xff] }
  0xa7   : > { %v6831_v5 = vpack.c.bf16 %v1136_v50, %v1135_v25  ;;  %v768_v27 = vrot.slane %v6845_v7, 1  ;;  %v5603_v25 = vunpack.i.l.bf16 %v6713_v44  ;;  %v5619_v50 = vunpack.i.h.bf16 %v6749_v15 }
  0xa8   : > { %5796 = vrot.lane.b32.xlu1 %v5795_v60, %s6174_s24  ;;  %v733_v15 = vrot.slane %v6869_v20, 1 }
  0xa9   : > { %v6884_v58 = vsel %vm1112_vm1, %v6335_v43, %v5619_v50 }
  0xaa   : > { %1708 = vmatmul.bf16.gmra.mxu1 %v6765_v22  ;;  %v732_v22 = vsel %vm607_vm0, %v729_v2, %v731_v41  ;;  %v6812_v2 = vpop.permute.xlu2 %5636 }
  0xab   : > { %v6783_v0 = vpop.permute.xlu1 %5631  ;;  %v5790_v51 = vpack.i.bf16 %v765_v37, %v732_v22  ;;  %v1227_v37 = vpack.c.bf16 %v6757_v6, %v6740_v19 }
  0xac   : > { %v6793_v14 = vpop.permute.xlu0 %5626 }
  0xae   : > { %5791 = vrot.lane.b32.xlu0 %v5790_v51, %s6174_s24  ;;  %v6829_v51 = vsel %vm1112_vm1, %v6332_v42, %v5618_v33  ;;  %v6848_v42 = vld [vmem:[%s6251_s23 + $0x308] sm:$0xff]  ;;  %v6851_v33 = vld [vmem:[%s6251_s23 + $0x290] sm:$0xff] }
  0xaf   : > { %v9570_v59 = vrot.slane %v6851_v33, 1 }
  0xb2   : > { %1452 = vmatmul.bf16.gmra.mxu0 %v1225_v54  ;;  %v6825_v54 = vsel %vm1112_vm1, %v6326_v40, %v5609_v3  ;;  %v6842_v40 = vpop.permute.xlu2 %5651  ;;  %v5604_v3 = vunpack.i.h.bf16 %v6713_v44 }
  0xb3   : > { %v6814_v12 = vpop.permute.xlu1 %5646 }
  0xb4   : > { %v5649_v9 = vunpack.i.h.bf16 %v6814_v12  ;;  %v6821_v22 = vpop.permute.xlu0 %5641  ;;  %v1138_v44 = vsel %vm1112_vm1, %v6302_v24, %v5604_v3  ;;  %v1229_v3 = vpack.c.bf16 %v6825_v54, %v6762_v52 }
  0xb6   : > { %v6837_v45 = vsel %vm1112_vm1, %v6404_v32, %v5649_v9  ;;  %v769_v32 = vrot.slane %v6848_v42, 1  ;;  %v5628_v9 = vunpack.i.l.bf16 %v6793_v14 }
  0xb8   : > { %v770_v60 = vsel %vm607_vm0, %v768_v27, %v769_v32  ;;  %v6872_v27 = vld [vmem:[%s6251_s23 + $0x260] sm:$0xff] }
  0xb9   : > { %v5805_v41 = vpack.i.bf16 %v6851_v33, %v770_v60  ;;  %9564 = vst [vmem:[#allocation21_spill] sm:$0xff] %v6872_v27  ;;  %v1137_v60 = vsel %vm1112_vm1, %v6299_v23, %v5603_v25  ;;  %v6889_v23 = vsel %vm1112_vm1, %v6374_v8, %v5628_v9  ;;  %v6908_v8 = vld [vmem:[%s6251_s23 + $0x310] sm:$0xff] }
  0xba   : > { %1713 = vmatmul.bf16.gmra.mxu1 %v6831_v5  ;;  %v6866_v16 = vpop.permute.xlu2 %5666  ;;  %v6891_v25 = vpack.c.bf16 %v1138_v44, %v1137_v60 }
  0xbb   : > { %5806 = vrot.lane.b32.xlu0 %v5805_v41, %s6174_s24  ;;  %9562 = vst [vmem:[#allocation19_spill] sm:$0xff] %v6866_v16  ;;  %v734_v41 = vrot.slane %v6872_v27, 1  ;;  %v6899_v50 = vpop.permute.xlu1 %5661  ;;  %v6905_v16 = vld [vmem:[%s6251_s23 + $0x288] sm:$0xff] }
  0xbc   : > { %v6855_v1 = vpop.permute.xlu0 %5656  ;;  %9567 = vst [vmem:[#allocation24_spill] sm:$0xff] %v6905_v16 }
  0xbd   : > { %9561 = vst [vmem:[#allocation18_spill] sm:$0xff] %v6855_v1  ;;  %v735_v1 = vsel %vm607_vm0, %v733_v15, %v734_v41  ;;  %v6902_v15 = vld [vmem:[%s6251_s23 + $0x268] sm:$0xff] }
  0xbe   : > { %v5770_v24 = vpack.i.bf16 %v735_v1, %v6872_v27  ;;  %9566 = vst [vmem:[#allocation23_spill] sm:$0xff] %v6902_v15  ;;  %v736_v9 = vrot.slane %v6902_v15, 1  ;;  %v743_v1 = vrot.slane %v6905_v16, 1  ;;  %v5614_v16 = vunpack.i.h.bf16 %v6753_v34 }
  0xc0   : > { %5771 = vrot.lane.b32.xlu2 %v5770_v24, %s6174_s24  ;;  %v771_v24 = vrot.slane %v6908_v8, 1  ;;  %v737_v43 = vsel %vm607_vm0, %v734_v41, %v736_v9  ;;  %v745_v27 = vsel %vm607_vm0, %v743_v1, %v9570_v59  ;;  %v5638_v41 = vunpack.i.l.bf16 %v6812_v2 }
  0xc1   : > { %v9574_v9 = vrot.slane %v6778_v18, 1 }
  0xc2   : > { %1457 = vmatmul.bf16.gmra.mxu0 %v1227_v37  ;;  %v6914_v44 = vpop.permute.xlu2 %5681  ;;  %v772_v15 = vsel %vm607_vm0, %v769_v32, %v771_v24  ;;  %v6934_v32 = vld [vmem:[%s6251_s23 + $0x280] sm:$0xff] }
  0xc3   : > { %9569 = vst [vmem:[#allocation26_spill] sm:$0xff] %v6914_v44  ;;  %v5785_v44 = vpack.i.bf16 %v6778_v18, %v737_v43  ;;  %v5810_v20 = vpack.i.bf16 %v772_v15, %v745_v27  ;;  %v6931_v59 = vpop.permute.xlu1 %5676  ;;  %v1140_v27 = vsel %vm1112_vm1, %v6395_v29, %v5614_v16  ;;  %v6956_v29 = vsel %vm1112_vm1, %v6430_v56, %v5638_v41  ;;  %v6977_v41 = vld [vmem:[%s6251_s23 + $0x318] sm:$0xff] }
  0xc4   : > { %v6880_v37 = vpop.permute.xlu0 %5671  ;;  %9571 = vst [vmem:[#allocation27_spill] sm:$0xff] %v6934_v32  ;;  %v5639_v18 = vunpack.i.h.bf16 %v6812_v2 }
  0xc5   : > { %9565 = vst [vmem:[#allocation22_spill] sm:$0xff] %v6880_v37  ;;  %5811 = vrot.lane.b32.xlu1 %v5810_v20, %s6174_s24  ;;  %v5629_v37 = vunpack.i.h.bf16 %v6793_v14  ;;  %v741_v20 = vrot.slane %v6934_v32, 1  ;;  %v5648_v32 = vunpack.i.l.bf16 %v6814_v12 }
  0xc6   : > { %v7015_v2 = vsel %vm1112_vm1, %v6391_v28, %v5639_v18 }
  0xc7   : > { %v6949_v15 = vsel %vm1112_vm1, %v6377_v10, %v5629_v37  ;;  %v6967_v10 = vld [vmem:[%s6251_s23 + $0x320] sm:$0xff]  ;;  %v6970_v37 = vld [vmem:[%s6251_s23 + $0x328] sm:$0xff] }
  0xc8   : > { %5786 = vrot.lane.b32.xlu2 %v5785_v44, %s6174_s24  ;;  %v774_v24 = vrot.slane %v6967_v10, 1 }
  0xca   : > { %1718 = vmatmul.bf16.gmra.mxu1 %v6891_v25  ;;  %v6943_v14 = vpop.permute.xlu2 %5696 }
  0xcb   : > { %9573 = vst [vmem:[#allocation29_spill] sm:$0xff] %v6943_v14  ;;  %v6972_v44 = vpop.permute.xlu1 %5691 }
  0xcc   : > { %v6912_v60 = vpop.permute.xlu0 %5686  ;;  %9576 = vst [vmem:[#allocation31_spill] sm:$0xff] %v6972_v44 }
  0xcd   : > { %9568 = vst [vmem:[#allocation25_spill] sm:$0xff] %v6912_v60  ;;  %v5613_v60 = vunpack.i.l.bf16 %v6753_v34 }
  0xcf   : > { %v1139_v34 = vsel %vm1112_vm1, %v6343_v47, %v5613_v60  ;;  %v742_v47 = vsel %vm607_vm0, %v9574_v9, %v741_v20  ;;  %v6964_v60 = vld [vmem:[%s6251_s23 + $0x2a0] sm:$0xff]  ;;  %v776_v20 = vrot.slane %v6970_v37, 1  ;;  %v773_v9 = vrot.slane %v6977_v41, 1 }
  0xd0   : > { %v5800_v16 = vpack.i.bf16 %v6848_v42, %v742_v47  ;;  %9575 = vst [vmem:[#allocation30_spill] sm:$0xff] %v6964_v60  ;;  %v748_v56 = vrot.slane %v6964_v60, 1  ;;  %v1231_v47 = vpack.c.bf16 %v6884_v58, %v6829_v51 }
  0xd1   : > { %v775_v44 = vsel %vm607_vm0, %v773_v9, %v774_v24  ;;  %v1233_v9 = vpack.c.bf16 %v6949_v15, %v6889_v23 }
  0xd2   : > { %1462 = vmatmul.bf16.gmra.mxu0 %v1229_v3  ;;  %v6945_v3 = vpack.c.bf16 %v1140_v27, %v1139_v34  ;;  %5801 = vrot.lane.b32.xlu2 %v5800_v16, %s6174_s24  ;;  %v6981_v27 = vpop.permute.xlu2 %5711  ;;  %v9579_v16 = vrot.slane %v6570_v38, 1  ;;  %v5820_v14 = vpack.i.bf16 %v775_v44, %v6570_v38 }
  0xd3   : > { %9578 = vst [vmem:[#allocation33_spill] sm:$0xff] %v6981_v27  ;;  %v5623_v27 = vunpack.i.l.bf16 %v6772_v13 }
  0xd4   : > { %v6941_v43 = vpop.permute.xlu0 %5701  ;;  %v750_v1 = vsel %vm607_vm0, %v748_v56, %v9579_v16  ;;  %5821 = vrot.lane.b32.xlu0 %v5820_v14, %s6174_s24  ;;  %v7000_v56 = vld [vmem:[%s6251_s23 + $0x298] sm:$0xff] }
  0xd5   : > { %9572 = vst [vmem:[#allocation28_spill] sm:$0xff] %v6941_v43  ;;  %v777_v43 = vsel %vm607_vm0, %v774_v24, %v776_v20  ;;  %v1141_v24 = vsel %vm1112_vm1, %v6369_v63, %v5623_v27 }
  0xd6   : > { %v5825_v60 = vpack.i.bf16 %v750_v1, %v777_v43  ;;  %v746_v43 = vrot.slane %v7000_v56, 1 }
  0xd8   : > { %5826 = vrot.lane.b32.xlu1 %v5825_v60, %s6174_s24  ;;  %v9582_v60 = vrot.slane %v6851_v33, 1 }
  0xda   : > { %1723 = vmatmul.bf16.gmra.mxu1 %v6945_v3  ;;  %v7009_v1 = vpop.permute.xlu2 %5726  ;;  %v747_v63 = vsel %vm607_vm0, %v9582_v60, %v746_v43 }
  0xdb   : > { %9581 = vst [vmem:[#allocation35_spill] sm:$0xff] %v7009_v1  ;;  %v5815_v44 = vpack.i.bf16 %v747_v63, %v6967_v10 }
  0xdc   : > { %v6979_v34 = vpop.permute.xlu0 %5716 }
  0xdd   : > { %9577 = vst [vmem:[#allocation32_spill] sm:$0xff] %v6979_v34  ;;  %v5624_v34 = vunpack.i.h.bf16 %v6772_v13  ;;  %5816 = vrot.lane.b32.xlu2 %v5815_v44, %s6174_s24 }
  0xdf   : > { %v1142_v13 = vsel %vm1112_vm1, %v6398_v30, %v5624_v34  ;;  %v7024_v30 = vsel %vm1112_vm1, %v6401_v31, %v5648_v32  ;;  %v5634_v31 = vunpack.i.h.bf16 %v6783_v0  ;;  %v5633_v32 = vunpack.i.l.bf16 %v6783_v0 }
  0xe0   : > { %v7011_v14 = vpack.c.bf16 %v1142_v13, %v1141_v24 }
  0xe1   : > { %v7017_v12 = vpop.permute.xlu1 %5706  ;;  %v1143_v43 = vsel %vm1112_vm1, %v6363_v61, %v5633_v32  ;;  %v1144_v60 = vsel %vm1112_vm1, %v6366_v62, %v5634_v31  ;;  %v1235_v62 = vpack.c.bf16 %v7015_v2, %v6956_v29  ;;  %v5643_v31 = vunpack.i.l.bf16 %v6821_v22  ;;  %v7079_v32 = vld [vmem:[%s6251_s23 + $0x330] sm:$0xff] }
  0xe2   : > { %1467 = vmatmul.bf16.gmra.mxu0 %v1231_v47  ;;  %v7053_v63 = vpack.c.bf16 %v1144_v60, %v1143_v43 }
  0xe4   : > { %v7007_v38 = vpop.permute.xlu0 %5731 }
  0xe5   : > { %9580 = vst [vmem:[#allocation34_spill] sm:$0xff] %v7007_v38 }
  0xe9   : > { %v7035_v47 = vpop.permute.xlu1 %5721 }
  0xea   : > { %1728 = vmatmul.bf16.gmra.mxu1 %v7011_v14  ;;  %9584 = vst [vmem:[#allocation37_spill] sm:$0xff] %v7035_v47 }
  0xeb   : > { %v7031_v20 = vpop.permute.xlu2 %5741 }
  0xec   : > { %v5747_v28 = vpop.permute.xlu0 %5746  ;;  %9583 = vst [vmem:[#allocation36_spill] sm:$0xff] %v7031_v20  ;;  %v9600_v20 = vld [vmem:[#allocation11_spill] sm:$0xff] }
  0xed   : > { %v5749_v18 = vunpack.i.h.bf16 %v5747_v28  ;;  %v5748_v27 = vunpack.i.l.bf16 %v5747_v28 }
  0xef   : > { %v7041_v16 = vsel %vm1112_vm1, %v6573_v39, %v5748_v27  ;;  %v7045_v24 = vsel %vm1112_vm1, %v6675_v35, %v5749_v18 }
  0xf0   : > { %9585 = vst [vmem:[#allocation38_spill] sm:$0xff] %v7045_v24  ;;  %v1289_v13 = vpack.c.bf16 %v7045_v24, %v7041_v16 }
  0xf1   : > { %v7055_v39 = vpop.permute.xlu1 %5736 }
  0xf2   : > { %1472 = vmatmul.bf16.gmra.mxu0 %v1233_v9  ;;  %1645 = vmatmul.bf16.vlgmr.msra.gmra.mxu2 %v1289_v13  ;;  %9586 = vst [vmem:[#allocation39_spill] sm:$0xff] %v7055_v39  ;;  %v5644_v9 = vunpack.i.h.bf16 %v6821_v22  ;;  %v778_v13 = vrot.slane %v7079_v32, 1 }
  0xf3   : > { %v5757_v0 = vpop.permute.xlu2 %5756 }
  0xf4   : > { %v5759_v44 = vunpack.i.h.bf16 %v5757_v0  ;;  %v5758_v35 = vunpack.i.l.bf16 %v5757_v0 }
  0xf6   : > { %v7060_v28 = vsel %vm1112_vm1, %v6587_v17, %v5758_v35  ;;  %v7064_v61 = vsel %vm1112_vm1, %v6678_v53, %v5759_v44  ;;  %v1145_v17 = vsel %vm1112_vm1, %v6410_v36, %v5643_v31  ;;  %v1146_v53 = vsel %vm1112_vm1, %v6471_v48, %v5644_v9 }
  0xf7   : > { %9587 = vst [vmem:[#allocation40_spill] sm:$0xff] %v7060_v28  ;;  %v1291_v18 = vpack.c.bf16 %v7064_v61, %v7060_v28  ;;  %v7082_v43 = vpack.c.bf16 %v1146_v53, %v1145_v17  ;;  %v9589_v35 = vrot.slane %v6620_v55, 1  ;;  %v5654_v31 = vunpack.i.h.bf16 %v6842_v40 }
  0xf8   : > { %9588 = vst [vmem:[#allocation41_spill] sm:$0xff] %v7064_v61  ;;  %v5653_v17 = vunpack.i.l.bf16 %v6842_v40  ;;  %v9593_v40 = vld [vmem:[#allocation9_spill] sm:$0xff] }
  0xf9   : > { %v7070_v27 = vpop.permute.xlu1 %5751  ;;  %v780_v22 = vsel %vm607_vm0, %v778_v13, %v9589_v35 }
  0xfa   : > { %1733 = vmatmul.bf16.gmra.mxu1 %v7053_v63 }
 0x101   : > { %v5767_v60 = vpop.permute.xlu1 %5766 }
 0x102   : > { %1477 = vmatmul.bf16.gmra.mxu0 %v1235_v62  ;;  %1649 = vmatmul.bf16.gmra.mxu2 %v1291_v18  ;;  %v5769_v0 = vunpack.i.h.bf16 %v5767_v60  ;;  %v5768_v44 = vunpack.i.l.bf16 %v5767_v60  ;;  %v5830_v62 = vpack.i.bf16 %v780_v22, %v6620_v55  ;;  %v1237_v18 = vpack.c.bf16 %v6837_v45, %v7024_v30 }
 0x104   : > { %5831 = vrot.lane.b32.xlu2 %v5830_v62, %s6174_s24  ;;  %v7092_v36 = vsel %vm1112_vm1, %v6646_v21, %v5768_v44  ;;  %v7096_v48 = vsel %vm1112_vm1, %v6649_v11, %v5769_v0  ;;  %v1147_v21 = vsel %vm1112_vm1, %v6433_v57, %v5653_v17  ;;  %v1148_v11 = vsel %vm1112_vm1, %v6474_v49, %v5654_v31 }
 0x105   : > { %9590 = vst [vmem:[#allocation42_spill] sm:$0xff] %v7092_v36  ;;  %v7102_v9 = vpack.c.bf16 %v7096_v48, %v7092_v36  ;;  %v7113_v0 = vpack.c.bf16 %v1148_v11, %v1147_v21  ;;  %v9597_v11 = vld [vmem:[#allocation8_spill] sm:$0xff] }
 0x106   : > { %9591 = vst [vmem:[#allocation43_spill] sm:$0xff] %v7096_v48  ;;  %v7149_v48 = vld [vmem:[%s9437_s2] ss:$0 sm:$0xff] }
 0x107   : > { %9592 = vst [vmem:[#allocation44_spill] sm:$0xff] %v7102_v9 }
 0x10a   : > { %1738 = vmatmul.bf16.gmra.mxu1 %v7082_v43 }
 0x10e   : > { %v5782_v13 = vpop.permute.xlu1 %5781 }
 0x10f   : > { %v1443_v53 = vpop.f32.mrf.mxu0  ;;  %v5784_v22 = vunpack.i.h.bf16 %v5782_v13  ;;  %v5783_v62 = vunpack.i.l.bf16 %v5782_v13 }
 0x110   : > { %v7111_v60 = vpop.permute.xlu0 %5761 }
 0x111   : > { %v1206_v57 = vsel %vm1112_vm1, %v6791_v26, %v5784_v22 }
 0x112   : > { %1481 = vmatmul.bf16.gmra.mxu0 %v1237_v18  ;;  %1652 = vmatmul.bf16.gmra.mxu2 %v7102_v9  ;;  %v7118_v18 = vsel %vm1112_vm1, %v9593_v40, %v5783_v62 }
 0x113   : > { %9594 = vst [vmem:[#allocation9_spill] sm:$0xff] %v7118_v18  ;;  %v7125_v49 = vpack.c.bf16 %v1206_v57, %v7118_v18  ;;  %v9598_v57 = vld [vmem:[#allocation4_spill] sm:$0xff] }
 0x115   : > { %9596 = vst [vmem:[#allocation46_spill] sm:$0xff] %v7125_v49 }
 0x117   : > { %v1445_v44 = vpop.f32.mrf.mxu0  ;;  %v1704_v35 = vpop.f32.mrf.mxu1 }
 0x118   : > { %v7122_v17 = vpop.permute.xlu0 %5776  ;;  %v1446_v36 = vadd.f32 %v7149_v48, %v1445_v44 }
 0x119   : > { %9595 = vst [vmem:[#allocation45_spill] sm:$0xff] %v7122_v17  ;;  %v9599_v17 = vpack.c.bf16 %v6659_v4, %v9598_v57 }
 0x11a   : > { %1742 = vmatmul.bf16.gmra.mxu1 %v7113_v0  ;;  %v7129_v13 = vpop.permute.xlu2 %5771  ;;  %v7131_v34 = vpop.permute.xlu1 %5796 }
 0x11b   : > { %v5798_v26 = vunpack.i.l.bf16 %v7131_v34 }
 0x11f   : > { %v1448_v31 = vpop.f32.mrf.mxu0  ;;  %v1706_v21 = vpop.f32.mrf.mxu1 }
 0x120   : > { %v7133_v62 = vpop.permute.xlu0 %5791  ;;  %v1707_v57 = vadd.f32 %v1706_v21, %v1446_v36 }
 0x121   : > { %v5794_v22 = vunpack.i.h.bf16 %v7133_v62 }
 0x122   : > { %1484 = vmatmul.bf16.gmra.mxu0 %v9597_v11  ;;  %1657 = vmatmul.bf16.gmra.mxu2 %v7125_v49  ;;  %v9601_v49 = vld [vmem:[#allocation16_spill] sm:$0xff]  ;;  %v7144_v18 = vpop.permute.xlu2 %5786  ;;  %v1957_v44 = vmax.f32 %v1707_v57, 0.0  ;;  %v9604_v57 = vpack.c.bf16 %v6740_v19, %v6729_v46 }
 0x123   : > { %v1207_v11 = vsel %vm1112_vm1, %v9600_v20, %v5794_v22  ;;  %v1208_v38 = vsel %vm1112_vm1, %v9601_v49, %v5798_v26  ;;  %v9603_v22 = vld [vmem:[#allocation13_spill] sm:$0xff] }
 0x124   : > { %v7151_v47 = vpack.c.bf16 %v1208_v38, %v1207_v11 }
 0x126   : > { %9602 = vst [vmem:[#allocation8_spill] sm:$0xff] %v7151_v47 }
 0x127   : > { %v1450_v40 = vpop.f32.mrf.mxu0  ;;  %v1709_v9 = vpop.f32.mrf.mxu1 }
 0x128   : > { %v1451_v20 = vadd.f32 %v7149_v48, %v1450_v40 }
 0x12a   : > { %1745 = vmatmul.bf16.gmra.mxu1 %v9599_v17  ;;  %v1444_v17 = vadd.f32 %v7149_v48, %v1443_v53 }
 0x12c   : > { %v7158_v49 = vadd.f32 %v1704_v35, %v1444_v17  ;;  %v7162_v39 = vpop.permute.xlu2 %5801  ;;  %v1449_v35 = vadd.f32 %v7149_v48, %v1448_v31 }
 0x12d   : > { %v7164_v38 = vpop.permute.xlu0 %5806  ;;  %v5804_v40 = vunpack.i.h.bf16 %v7162_v39 }
 0x12e   : > { %v9500_v53 = vmax.f32 %v7158_v49, 0.0 }
 0x12f   : > { %v1453_v61 = vpop.f32.mrf.mxu0  ;;  %v1711_v4 = vpop.f32.mrf.mxu1  ;;  %v1209_v24 = vsel %vm1112_vm1, %v6845_v7, %v5804_v40 }
 0x130   : > { %v7160_v26 = vadd.f32 %v1711_v4, %v1451_v20  ;;  %v1454_v11 = vadd.f32 %v7149_v48, %v1453_v61  ;;  %v2107_v20 = vrot.slane %v1957_v44, 1  ;;  %v2106_v61 = vrot.slane %v9500_v53, 1 }
 0x132   : > { %1489 = vmatmul.bf16.gmra.mxu0 %v9603_v22  ;;  %1662 = vmatmul.bf16.gmra.mxu2 %v7151_v47  ;;  %v5808_v22 = vunpack.i.l.bf16 %v7164_v38  ;;  %v9501_v4 = vmax.f32 %v7160_v26, 0.0  ;;  %v1710_v47 = vadd.f32 %v1709_v9, %v1449_v35  ;;  %v2108_v9 = vsel %vm607_vm0, %v2106_v61, %v2107_v20 }
 0x134   : > { %v1210_v1 = vsel %vm1112_vm1, %v6848_v42, %v5808_v22  ;;  %v2109_v31 = vrot.slane %v9501_v4, 1  ;;  %v1958_v35 = vmax.f32 %v1710_v47, 0.0 }
 0x137   : > { %v1455_v36 = vpop.f32.mrf.mxu0  ;;  %v1714_v21 = vpop.f32.mrf.mxu1 }
 0x138   : > { %v1715_v17 = vadd.f32 %v1714_v21, %v1454_v11  ;;  %v1456_v46 = vadd.f32 %v7149_v48, %v1455_v36  ;;  %v7193_v36 = vpop.permute.xlu2 %5816  ;;  %v7195_v61 = vpop.permute.xlu1 %5811 }
 0x13a   : > { %v1960_v28 = vmax.f32 %v1715_v17, 0.0  ;;  %1750 = vmatmul.bf16.gmra.mxu1 %v9604_v57  ;;  %v7187_v17 = vpack.c.bf16 %v1210_v1, %v1209_v24  ;;  %v2190_v57 = vrot.slane %v1958_v35, 1  ;;  %v5818_v35 = vunpack.i.l.bf16 %v7193_v36 }
 0x13c   : > { %v2110_v11 = vrot.slane %v1960_v28, 1  ;;  %v5835_v21 = vpack.i.bf16 %v1960_v28, %v1957_v44  ;;  %9605 = vst [vmem:[#allocation4_spill] sm:$0xff] %v7187_v17  ;;  %v2191_v1 = vsel %vm607_vm0, %v2107_v20, %v2190_v57 }
 0x13e   : > { %5836 = vrot.lane.b32.xlu0 %v5835_v21, %s6175_s29  ;;  %v2111_v19 = vsel %vm607_vm0, %v2109_v31, %v2110_v11 }
 0x13f   : > { %v1458_v7 = vpop.f32.mrf.mxu0  ;;  %v1716_v40 = vpop.f32.mrf.mxu1  ;;  %v5840_v42 = vpack.i.bf16 %v2111_v19, %v2108_v9  ;;  %v9606_v19 = vpack.c.bf16 %v6762_v52, %v6757_v6 }
 0x140   : > { %v1717_v22 = vadd.f32 %v1716_v40, %v1456_v46  ;;  %v1459_v47 = vadd.f32 %v7149_v48, %v1458_v7 }
 0x141   : > { %5841 = vrot.lane.b32.xlu1 %v5840_v42, %s6174_s24 }
 0x142   : > { %v1961_v28 = vmax.f32 %v1717_v22, 0.0  ;;  %1494 = vmatmul.bf16.gmra.mxu0 %v6831_v5  ;;  %1667 = vmatmul.bf16.gmra.mxu2 %v7187_v17  ;;  %v5814_v5 = vunpack.i.h.bf16 %v7195_v61 }
 0x144   : > { %v2192_v44 = vrot.slane %v1961_v28, 1  ;;  %v1211_v20 = vsel %vm1112_vm1, %v6908_v8, %v5814_v5 }
 0x146   : > { %v2193_v24 = vsel %vm607_vm0, %v2110_v11, %v2192_v44  ;;  %v1212_v11 = vsel %vm1112_vm1, %v6977_v41, %v5818_v35  ;;  %v7219_v28 = vpop.permute.xlu0 %5821 }
 0x147   : > { %v1460_v31 = vpop.f32.mrf.mxu0  ;;  %v1719_v21 = vpop.f32.mrf.mxu1  ;;  %v5845_v9 = vpack.i.bf16 %v2193_v24, %v2191_v1  ;;  %v7212_v40 = vpack.c.bf16 %v1212_v11, %v1211_v20  ;;  %v5824_v44 = vunpack.i.h.bf16 %v7219_v28 }
 0x148   : > { %v7201_v46 = vadd.f32 %v1719_v21, %v1459_v47  ;;  %v1461_v7 = vadd.f32 %v7149_v48, %v1460_v31 }
 0x149   : > { %5846 = vrot.lane.b32.xlu2 %v5845_v9, %s6176_s30  ;;  %9607 = vst [vmem:[#allocation11_spill] sm:$0xff] %v7212_v40  ;;  %v1213_v21 = vsel %vm1112_vm1, %v6967_v10, %v5824_v44 }
 0x14a   : > { %1755 = vmatmul.bf16.gmra.mxu1 %v9606_v19  ;;  %v7217_v52 = vpop.permute.xlu1 %5826 }
 0x14b   : > { %v5828_v41 = vunpack.i.l.bf16 %v7217_v52 }
 0x14d   : > { %v1214_v9 = vsel %vm1112_vm1, %v6970_v37, %v5828_v41 }
 0x14e   : > { %v7231_v20 = vpack.c.bf16 %v1214_v9, %v1213_v21 }
 0x14f   : > { %v1463_v42 = vpop.f32.mrf.mxu0  ;;  %v1721_v22 = vpop.f32.mrf.mxu1 }
 0x150   : > { %v1722_v57 = vadd.f32 %v1721_v22, %v1461_v7  ;;  %v1464_v6 = vadd.f32 %v7149_v48, %v1463_v42  ;;  %9609 = vst [vmem:[#allocation16_spill] sm:$0xff] %v7231_v20 }
 0x152   : > { %1499 = vmatmul.bf16.gmra.mxu0 %v6891_v25  ;;  %1672 = vmatmul.bf16.gmra.mxu2 %v7212_v40  ;;  %v1963_v1 = vmax.f32 %v1722_v57, 0.0  ;;  %v9608_v25 = vpack.c.bf16 %v6829_v51, %v6825_v54 }
 0x154   : > { %v2113_v35 = vrot.slane %v1963_v1, 1 }
 0x157   : > { %v1465_v8 = vpop.f32.mrf.mxu0  ;;  %v1724_v47 = vpop.f32.mrf.mxu1 }
 0x158   : > { %v1725_v24 = vadd.f32 %v1724_v47, %v1464_v6  ;;  %v1466_v19 = vadd.f32 %v7149_v48, %v1465_v8  ;;  %v9497_v8 = vmax.f32 %v7201_v46, 0.0 }
 0x15a   : > { %v1964_v31 = vmax.f32 %v1725_v24, 0.0  ;;  %1760 = vmatmul.bf16.gmra.mxu1 %v9608_v25  ;;  %v9610_v24 = vpack.c.bf16 %v6889_v23, %v6884_v58  ;;  %v2112_v25 = vrot.slane %v9497_v8, 1  ;;  %v9631_v8 = vld [vmem:[#allocation23_spill] sm:$0xff] }
 0x15c   : > { %v2194_v5 = vrot.slane %v1964_v31, 1  ;;  %v7260_v58 = vsel %vm607_vm0, %v2112_v25, %v2113_v35 }
 0x15e   : > { %v7234_v11 = vsel %vm607_vm0, %v2113_v35, %v2194_v5  ;;  %v5832_v51 = vpop.permute.xlu2 %5831 }
 0x15f   : > { %v1468_v7 = vpop.f32.mrf.mxu0  ;;  %v1726_v42 = vpop.f32.mrf.mxu1  ;;  %v5834_v57 = vunpack.i.h.bf16 %v5832_v51  ;;  %v5833_v6 = vunpack.i.l.bf16 %v5832_v51 }
 0x160   : > { %v7236_v22 = vadd.f32 %v1726_v42, %v1466_v19  ;;  %v1469_v54 = vadd.f32 %v7149_v48, %v1468_v7  ;;  %v6129_v42 = vld [vmem:[%s6251_s23 + $0x128] sm:$0xff] }
 0x161   : > { %v1216_v31 = vsel %vm1112_vm1, %v6620_v55, %v5834_v57 }
 0x162   : > { %1504 = vmatmul.bf16.gmra.mxu0 %v6945_v3  ;;  %1677 = vmatmul.bf16.gmra.mxu2 %v7231_v20  ;;  %v9498_v47 = vmax.f32 %v7236_v22, 0.0  ;;  %v1215_v3 = vsel %vm1112_vm1, %v7079_v32, %v5833_v6 }
 0x163   : > { %v7257_v7 = vpack.c.bf16 %v1216_v31, %v1215_v3 }
 0x164   : > { %v2115_v21 = vrot.slane %v9498_v47, 1 }
 0x165   : > { %9611 = vst [vmem:[#allocation13_spill] sm:$0xff] %v7257_v7 }
 0x167   : > { %v1470_v10 = vpop.f32.mrf.mxu0  ;;  %v1729_v37 = vpop.f32.mrf.mxu1 }
 0x168   : > { %v1730_v41 = vadd.f32 %v1729_v37, %v1469_v54  ;;  %v1471_v19 = vadd.f32 %v7149_v48, %v1470_v10  ;;  %v5753_v10 = vunpack.i.l.bf16 %v7070_v27 }
 0x16a   : > { %v1966_v44 = vmax.f32 %v1730_v41, 0.0  ;;  %1765 = vmatmul.bf16.gmra.mxu1 %v9610_v24  ;;  %v9612_v24 = vld [vmem:[#allocation2_spill] sm:$0xff] }
 0x16b   : > { %v1217_v3 = vsel %vm1112_vm1, %v9612_v24, %v5753_v10 }
 0x16c   : > { %v2116_v9 = vrot.slane %v1966_v44, 1  ;;  %v7254_v5 = vpack.i.bf16 %v1966_v44, %v1963_v1  ;;  %v5754_v1 = vunpack.i.h.bf16 %v7070_v27 }
 0x16e   : > { %v7263_v23 = vsel %vm607_vm0, %v2115_v21, %v2116_v9 }
 0x16f   : > { %v1473_v55 = vpop.f32.mrf.mxu0  ;;  %v1731_v32 = vpop.f32.mrf.mxu1 }
 0x170   : > { %v1732_v54 = vadd.f32 %v1731_v32, %v1471_v19  ;;  %v1474_v35 = vadd.f32 %v7149_v48, %v1473_v55  ;;  %v5380_v19 = vld [vmem:[%s9438_s3 + $0x38] sm:$0xff]  ;;  %v5379_v32 = vld [vmem:[%s9438_s3 + $0x30] sm:$0xff] }
 0x171   : > { %2932 = vmatpush.bf16.msrb.mxu2 %v5380_v19 }
 0x172   : > { %v1967_v51 = vmax.f32 %v1732_v54, 0.0  ;;  %1509 = vmatmul.bf16.gmra.mxu0 %v7011_v14  ;;  %1682 = vmatmul.bf16.gmra.mxu2 %v7257_v7  ;;  %v9613_v14 = vld [vmem:[#allocation10_spill] sm:$0xff]  ;;  %v9639_v7 = vld [vmem:[#allocation25_spill] sm:$0xff] }
 0x173   : > { %v1218_v31 = vsel %vm1112_vm1, %v9613_v14, %v5754_v1  ;;  %v9616_v14 = vld [vmem:[#allocation3_spill] sm:$0xff] }
 0x174   : > { %v2196_v37 = vrot.slane %v1967_v51, 1  ;;  %v1290_v21 = vpack.c.bf16 %v1218_v31, %v1217_v3 }
 0x175   : > { %v7272_v57 = vpop.f32.mrf.mxu2  ;;  %2933 = vmatpush.bf16.msrb.mxu2 %v5379_v32 }
 0x176   : > { %v7275_v6 = vsel %vm607_vm0, %v2116_v9, %v2196_v37  ;;  %v9615_v9 = vpack.c.bf16 %v6956_v29, %v6949_v15  ;;  %1906 = vmatmul.bf16.vlgmr.msra.gmra.mxu3 %v1290_v21  ;;  %v5764_v15 = vunpack.i.h.bf16 %v7111_v60  ;;  %v5763_v29 = vunpack.i.l.bf16 %v7111_v60 }
 0x177   : > { %v1475_v41 = vpop.f32.mrf.mxu0  ;;  %v1734_v44 = vpop.f32.mrf.mxu1 }
 0x178   : > { %v7283_v27 = vadd.f32 %v1734_v44, %v1474_v35  ;;  %v1476_v54 = vadd.f32 %v7149_v48, %v1475_v41  ;;  %v5378_v35 = vld [vmem:[%s9438_s3 + $0x28] sm:$0xff]  ;;  %v5377_v44 = vld [vmem:[%s9438_s3 + $0x20] sm:$0xff]  ;;  %v1219_v31 = vsel %vm1112_vm1, %v9616_v14, %v5763_v29 }
 0x179   : > { %2934 = vmatpush.bf16.msrb.mxu2 %v5378_v35 }
 0x17a   : > { %9614 = vst [vmem:[#allocation2_spill] sm:$0xff] %v7283_v27  ;;  %1770 = vmatmul.bf16.gmra.mxu1 %v9615_v9 }
 0x17d   : > { %v1648_v55 = vpop.f32.mrf.mxu2  ;;  %2935 = vmatpush.bf16.msrb.mxu2 %v5377_v44  ;;  %v5774_v44 = vunpack.i.h.bf16 %v7129_v13 }
 0x17e   : > { %v5376_v55 = vld [vmem:[%s9438_s3 + $0x18] sm:$0xff] }
 0x17f   : > { %v1478_v51 = vpop.f32.mrf.mxu0  ;;  %v1736_v1 = vpop.f32.mrf.mxu1 }
 0x180   : > { %v7295_v10 = vadd.f32 %v1736_v1, %v1476_v54  ;;  %v1479_v37 = vadd.f32 %v7149_v48, %v1478_v51  ;;  %v9618_v54 = vpack.c.bf16 %v7024_v30, %v7015_v2  ;;  %v5374_v30 = vld [vmem:[%s9438_s3 + $0x8] sm:$0xff] }
 0x181   : > { %2936 = vmatpush.bf16.msrb.mxu2 %v5376_v55  ;;  %v9621_v55 = vld [vmem:[#allocation20_spill] sm:$0xff] }
 0x182   : > { %1514 = vmatmul.bf16.gmra.mxu0 %v7053_v63  ;;  %1687 = vmatmul.bf16.gmra.mxu2 %v1290_v21  ;;  %v9617_v63 = vld [vmem:[#allocation12_spill] sm:$0xff]  ;;  %v9499_v19 = vmax.f32 %v7295_v10, 0.0 }
 0x183   : > { %v1220_v21 = vsel %vm1112_vm1, %v9617_v63, %v5764_v15  ;;  %v5375_v15 = vld [vmem:[%s9438_s3 + $0x10] sm:$0xff]  ;;  %v5373_v63 = vld [vmem:[%s9438_s3] sm:$0xff] }
 0x184   : > { %v1292_v9 = vpack.c.bf16 %v1220_v21, %v1219_v31  ;;  %v7320_v51 = vrot.slane %v9499_v19, 1 }
 0x185   : > { %v1650_v41 = vpop.f32.mrf.mxu2  ;;  %2937 = vmatpush.bf16.msrb.mxu2 %v5375_v15  ;;  %v6125_v15 = vld [vmem:[%s6251_s23 + $0x1c0] sm:$0xff] }
 0x186   : > { %1910 = vmatmul.bf16.gmra.mxu3 %v1292_v9  ;;  %v5664_v41 = vunpack.i.h.bf16 %v6899_v50 }
 0x187   : > { %v1480_v24 = vpop.f32.mrf.mxu0  ;;  %v1739_v3 = vpop.f32.mrf.mxu1 }
 0x188   : > { %v1740_v60 = vadd.f32 %v1739_v3, %v1479_v37  ;;  %v5773_v24 = vunpack.i.l.bf16 %v7129_v13  ;;  %v9620_v3 = vld [vmem:[#allocation22_spill] sm:$0xff]  ;;  %v9622_v13 = vld [vmem:[#allocation21_spill] sm:$0xff] }
 0x189   : > { %2938 = vmatpush.bf16.msrb.mxu2 %v5374_v30  ;;  %v5673_v14 = vunpack.i.l.bf16 %v9620_v3  ;;  %v9624_v30 = vld [vmem:[#allocation6_spill] sm:$0xff] }
 0x18a   : > { %v1970_v32 = vmax.f32 %v1740_v60, 0.0  ;;  %1775 = vmatmul.bf16.gmra.mxu1 %v9618_v54  ;;  %v7352_v54 = vsel %vm1112_vm1, %v9622_v13, %v5774_v44  ;;  %v9626_v44 = vld [vmem:[#allocation17_spill] sm:$0xff]  ;;  %v5788_v13 = vunpack.i.l.bf16 %v7144_v18 }
 0x18b   : > { %9623 = vst [vmem:[#allocation3_spill] sm:$0xff] %v7352_v54 }
 0x18c   : > { %v2490_v1 = vrot.slane %v1970_v32, 1  ;;  %v7348_v32 = vsel %vm1112_vm1, %v9621_v55, %v5773_v24  ;;  %v5678_v55 = vunpack.i.l.bf16 %v6931_v59  ;;  %v7401_v47 = vsel %vm1112_vm1, %v9631_v8, %v5788_v13 }
 0x18d   : > { %v1651_v35 = vpop.f32.mrf.mxu2  ;;  %2939 = vmatpush.bf16.msrb.mxu2 %v5373_v63  ;;  %9632 = vst [vmem:[#allocation20_spill] sm:$0xff] %v7401_v47 }
 0x18e   : > { %v7327_v29 = vsel %vm607_vm0, %v7320_v51, %v2490_v1  ;;  %v5793_v1 = vunpack.i.l.bf16 %v7133_v62  ;;  %v1293_v35 = vpack.c.bf16 %v7352_v54, %v7348_v32 }
 0x18f   : > { %9619 = vst [vmem:[#allocation10_spill] sm:$0xff] %v7327_v29  ;;  %v1482_v37 = vpop.f32.mrf.mxu0  ;;  %v1741_v2 = vpop.f32.mrf.mxu1 }
 0x190   : > { %v7359_v37 = vsel %vm1112_vm1, %v6125_v15, %v5673_v14  ;;  %v7368_v62 = vsel %vm1112_vm1, %v9626_v44, %v5793_v1  ;;  %v9636_v44 = vld [vmem:[#allocation7_spill] sm:$0xff] }
 0x191   : > { %9627 = vst [vmem:[#allocation12_spill] sm:$0xff] %v7368_v62 }
 0x192   : > { %1519 = vmatmul.bf16.gmra.mxu0 %v7082_v43  ;;  %1691 = vmatmul.bf16.gmra.mxu2 %v1292_v9  ;;  %v6124_v43 = vld [vmem:[%s6251_s23 + $0x1b8] sm:$0xff] }
 0x193   : > { %v7344_v9 = vsel %vm1112_vm1, %v6124_v43, %v5664_v41  ;;  %v9625_v41 = vpack.c.bf16 %v9624_v30, %v6837_v45  ;;  %v5789_v45 = vunpack.i.h.bf16 %v7144_v18  ;;  %v6127_v30 = vld [vmem:[%s6251_s23 + $0x140] sm:$0xff] }
 0x195   : > { %v7337_v31 = vpop.f32.mrf.mxu2 }
 0x196   : > { %1913 = vmatmul.bf16.gmra.mxu3 %v1293_v35  ;;  %v6126_v35 = vld [vmem:[%s6251_s23 + $0x138] sm:$0xff] }
 0x197   : > { %v1483_v21 = vpop.f32.mrf.mxu0  ;;  %v1743_v60 = vpop.f32.mrf.mxu1 }
 0x198   : > { %v9629_v60 = vld [vmem:[#allocation19_spill] sm:$0xff] }
 0x199   : > { %v5669_v43 = vunpack.i.h.bf16 %v9629_v60 }
 0x19a   : > { %1780 = vmatmul.bf16.gmra.mxu1 %v9625_v41  ;;  %v7389_v41 = vsel %vm1112_vm1, %v6127_v30, %v5678_v55  ;;  %v9635_v30 = vld [vmem:[#allocation5_spill] sm:$0xff] }
 0x19b   : > { %v7385_v15 = vsel %vm1112_vm1, %v6126_v35, %v5669_v43  ;;  %v9633_v43 = vld [vmem:[#allocation14_spill] sm:$0xff]  ;;  %v9637_v19 = vpack.c.bf16 %v9635_v30, %v9636_v44 }
 0x19c   : > { %v7405_v35 = vsel %vm1112_vm1, %v9633_v43, %v5789_v45  ;;  %v5663_v43 = vunpack.i.l.bf16 %v6899_v50 }
 0x19d   : > { %v7370_v24 = vpop.f32.mrf.mxu2  ;;  %9634 = vst [vmem:[#allocation21_spill] sm:$0xff] %v7405_v35  ;;  %v1294_v55 = vpack.c.bf16 %v7405_v35, %v7401_v47  ;;  %v6135_v35 = vld [vmem:[%s6251_s23 + $0x158] sm:$0xff] }
 0x19e   : > { %9628 = vst [vmem:[#allocation22_spill] sm:$0xff] %v7370_v24 }
 0x19f   : > { %v7374_v14 = vpop.f32.mrf.mxu0  ;;  %v1744_v21 = vpop.f32.mrf.mxu1 }
 0x1a2   : > { %1523 = vmatmul.bf16.gmra.mxu0 %v7113_v0  ;;  %v9630_v0 = vld [vmem:[#allocation18_spill] sm:$0xff] }
 0x1a3   : > { %v5659_v21 = vunpack.i.h.bf16 %v9630_v0  ;;  %v5658_v63 = vunpack.i.l.bf16 %v9630_v0  ;;  %v6128_v0 = vld [vmem:[%s6251_s23 + $0x120] sm:$0xff] }
 0x1a5   : > { %v7381_v1 = vpop.f32.mrf.mxu2  ;;  %v1149_v25 = vsel %vm1112_vm1, %v6128_v0, %v5658_v63  ;;  %v1150_v53 = vsel %vm1112_vm1, %v6129_v42, %v5659_v21  ;;  %v5688_v63 = vunpack.i.l.bf16 %v9639_v7  ;;  %v5847_v0 = vpop.permute.xlu2 %5846  ;;  %v5679_v42 = vunpack.i.h.bf16 %v6931_v59 }
 0x1a6   : > { %1918 = vmatmul.bf16.gmra.mxu3 %v1294_v55  ;;  %v1248_v13 = vpack.c.bf16 %v1150_v53, %v1149_v25  ;;  %v5799_v21 = vunpack.i.h.bf16 %v7131_v34  ;;  %v6130_v53 = vld [vmem:[%s6251_s23 + $0x1b0] sm:$0xff]  ;;  %v5803_v25 = vunpack.i.l.bf16 %v7162_v39  ;;  %v5848_v20 = vunpack.i.l.bf16 %v5847_v0 }
 0x1a7   : > { %v7395_v18 = vpop.f32.mrf.mxu0  ;;  %v7397_v2 = vpop.f32.mrf.mxu1  ;;  %v7428_v50 = vsel %vm1112_vm1, %v6130_v53, %v5663_v43  ;;  %v9641_v34 = vmax.f32 %v7158_v49, 0.0  ;;  %v6131_v53 = vld [vmem:[%s6251_s23 + $0x150] sm:$0xff] }
 0x1aa   : > { %1784 = vmatmul.bf16.gmra.mxu1 %v9637_v19 }
 0x1ad   : > { %v7418_v45 = vpop.f32.mrf.mxu2 }
 0x1ae   : > { %9638 = vst [vmem:[#allocation6_spill] sm:$0xff] %v7418_v45 }
 0x1af   : > { %v7421_v4 = vpop.f32.mrf.mxu0  ;;  %v1748_v44 = vpop.f32.mrf.mxu1 }
 0x1b0   : > { %v5837_v19 = vpop.permute.xlu0 %5836 }
 0x1b1   : > { %v5839_v55 = vunpack.i.h.bf16 %v5837_v19  ;;  %v5838_v30 = vunpack.i.l.bf16 %v5837_v19  ;;  %v5849_v19 = vunpack.i.h.bf16 %v5847_v0 }
 0x1b2   : > { %1526 = vmatmul.bf16.gmra.mxu0 %v1248_v13  ;;  %v9640_v13 = vmax.f32 %v7160_v26, 0.0  ;;  %v7447_v26 = vsel %vm1112_vm1, %v6131_v53, %v5688_v63  ;;  %v9645_v63 = vld [vmem:[#allocation27_spill] sm:$0xff]  ;;  %v5674_v53 = vunpack.i.h.bf16 %v9620_v3  ;;  %v5809_v3 = vunpack.i.h.bf16 %v7164_v38 }
 0x1b3   : > { %v5842_v8 = vpop.permute.xlu1 %5841  ;;  %v2557_v40 = vsel %vm2556_vm2, %v9641_v34, %v5838_v30 }
 0x1b4   : > { %v5844_v45 = vunpack.i.h.bf16 %v5842_v8  ;;  %v5843_v24 = vunpack.i.l.bf16 %v5842_v8  ;;  %v2558_v59 = vsel %vm2556_vm2, %v9640_v13, %v5839_v55  ;;  %v7443_v8 = vpack.c.bf16 %v7344_v9, %v7428_v50 }
 0x1b5   : > { %v7437_v17 = vpop.f32.mrf.mxu2  ;;  %v5668_v55 = vunpack.i.l.bf16 %v9629_v60  ;;  %v7465_v60 = vsel %vm1112_vm1, %v9645_v63, %v5803_v25 }
 0x1b6   : > { %v2570_v43 = vsel %vm1112_vm1, %v2558_v59, %v5844_v45  ;;  %v2569_v39 = vsel %vm1112_vm1, %v2557_v40, %v5843_v24  ;;  %v6132_v24 = vld [vmem:[%s6251_s23 + $0x148] sm:$0xff]  ;;  %9646 = vst [vmem:[#allocation18_spill] sm:$0xff] %v7465_v60 }
 0x1b7   : > { %v1492_v49 = vpop.f32.mrf.mxu0  ;;  %v1751_v0 = vpop.f32.mrf.mxu1  ;;  %v2582_v30 = vsel %vm2581_vm3, %v2569_v39, %v5848_v20  ;;  %v7452_v13 = vsel %vm2581_vm3, %v2570_v43, %v5849_v19  ;;  %v7457_v45 = vsel %vm1112_vm1, %v6132_v24, %v5679_v42  ;;  %v9643_v59 = vld [vmem:[#allocation15_spill] sm:$0xff]  ;;  %v6133_v43 = vld [vmem:[%s6251_s23 + $0x130] sm:$0xff]  ;;  %v1488_v24 = vadd.f32 %v7149_v48, %v7395_v18 }
 0x1b8   : > { %9642 = vst [vmem:[#allocation17_spill] sm:$0xff] %v7452_v13  ;;  %v2648_v40 = vpack.c.bf16 %v7452_v13, %v2582_v30  ;;  %v7461_v34 = vsel %vm1112_vm1, %v9643_v59, %v5799_v21  ;;  %v1151_v42 = vsel %vm1112_vm1, %v6133_v43, %v5668_v55  ;;  %v5689_v55 = vunpack.i.h.bf16 %v9639_v7  ;;  %v9648_v59 = vld [vmem:[#allocation29_spill] sm:$0xff]  ;;  %v6134_v18 = vld [vmem:[%s6251_s23 + $0x1c8] sm:$0xff] }
 0x1b9   : > { %9644 = vst [vmem:[#allocation19_spill] sm:$0xff] %v7461_v34  ;;  %v1295_v19 = vpack.c.bf16 %v7465_v60, %v7461_v34  ;;  %v1250_v25 = vpack.c.bf16 %v7385_v15, %v1151_v42  ;;  %v5698_v63 = vunpack.i.l.bf16 %v9648_v59  ;;  %v1749_v43 = vadd.f32 %v1748_v44, %v1488_v24  ;;  %v6136_v44 = vld [vmem:[%s6251_s23 + $0x160] sm:$0xff]  ;;  %v9649_v24 = vld [vmem:[#allocation24_spill] sm:$0xff] }
 0x1ba   : > { %1787 = vmatmul.bf16.gmra.mxu1 %v7443_v8  ;;  %2940 = vmatmul.bf16.vlgmr.msrb.gmra.mxu2 %v2648_v40  ;;  %v1493_v21 = vadd.f32 %v7149_v48, %v1492_v49  ;;  %v5813_v42 = vunpack.i.l.bf16 %v7195_v61  ;;  %v1170_v13 = vsel %vm1112_vm1, %v6134_v18, %v5674_v53  ;;  %v6137_v60 = vld [vmem:[%s6251_s23 + $0x1d0] sm:$0xff] }
 0x1bb   : > { %1923 = vmatmul.bf16.gmra.mxu3 %v1295_v19  ;;  %v1486_v19 = vadd.f32 %v7149_v48, %v7374_v14  ;;  %v7500_v14 = vsel %vm1112_vm1, %v6135_v35, %v5689_v55  ;;  %v7504_v49 = vsel %vm1112_vm1, %v6136_v44, %v5698_v63  ;;  %v1972_v38 = vmax.f32 %v1749_v43, 0.0 }
 0x1bc   : > { %v7515_v35 = vsel %vm1112_vm1, %v9649_v24, %v5809_v3  ;;  %v7519_v55 = vsel %vm1112_vm1, %v6851_v33, %v5813_v42 }
 0x1bd   : > { %v7476_v39 = vpop.f32.mrf.mxu2  ;;  %v7490_v20 = vadd.f32 %v7397_v2, %v1486_v19  ;;  %v7508_v2 = vpack.c.bf16 %v1170_v13, %v7359_v37  ;;  %9650 = vst [vmem:[#allocation14_spill] sm:$0xff] %v7515_v35  ;;  %v1296_v19 = vpack.c.bf16 %v7519_v55, %v7515_v35  ;;  %v2311_v43 = vrot.slane %v1972_v38, 1  ;;  %v6138_v35 = vld [vmem:[%s6251_s23 + $0x1d8] sm:$0xff] }
 0x1be   : > { %9647 = vst [vmem:[#allocation23_spill] sm:$0xff] %v7476_v39 }
 0x1bf   : > { %v1495_v30 = vpop.f32.mrf.mxu0  ;;  %v1753_v40 = vpop.f32.mrf.mxu1  ;;  %9651 = vst [vmem:[#allocation5_spill] sm:$0xff] %v7519_v55 }
 0x1c0   : > { %v7494_v7 = vadd.f32 %v1753_v40, %v1493_v21  ;;  %v1496_v61 = vadd.f32 %v7149_v48, %v1495_v30  ;;  %v1491_v30 = vadd.f32 %v7149_v48, %v7421_v4 }
 0x1c2   : > { %1531 = vmatmul.bf16.gmra.mxu0 %v1250_v25  ;;  %v9508_v25 = vmax.f32 %v7490_v20, 0.0  ;;  %v9509_v13 = vmax.f32 %v7494_v7, 0.0  ;;  %v1752_v18 = vadd.f32 %v1751_v0, %v1491_v30 }
 0x1c4   : > { %v2310_v3 = vrot.slane %v9508_v25, 1  ;;  %v2313_v33 = vrot.slane %v9509_v13, 1  ;;  %v1973_v0 = vmax.f32 %v1752_v18, 0.0 }
 0x1c5   : > { %v7496_v39 = vpop.f32.mrf.mxu2 }
 0x1c7   : > { %v1497_v53 = vpop.f32.mrf.mxu0  ;;  %v1756_v40 = vpop.f32.mrf.mxu1 }
 0x1c8   : > { %v1757_v63 = vadd.f32 %v1756_v40, %v1496_v61  ;;  %v1252_v61 = vpack.c.bf16 %v7457_v45, %v7389_v41  ;;  %v1498_v30 = vadd.f32 %v7149_v48, %v1497_v53  ;;  %v5699_v53 = vunpack.i.h.bf16 %v9648_v59 }
 0x1ca   : > { %v1975_v44 = vmax.f32 %v1757_v63, 0.0  ;;  %1792 = vmatmul.bf16.gmra.mxu1 %v7508_v2  ;;  %v2312_v63 = vsel %vm607_vm0, %v2310_v3, %v2311_v43  ;;  %v2394_v3 = vrot.slane %v1973_v0, 1 }
 0x1cb   : > { %1928 = vmatmul.bf16.gmra.mxu3 %v1296_v19 }
 0x1cc   : > { %v2314_v42 = vrot.slane %v1975_v44, 1  ;;  %v5850_v24 = vpack.i.bf16 %v1975_v44, %v1972_v38  ;;  %v9653_v38 = vld [vmem:[#allocation26_spill] sm:$0xff] }
 0x1cd   : > { %v7535_v40 = vpop.f32.mrf.mxu2  ;;  %v5684_v44 = vunpack.i.h.bf16 %v9653_v38  ;;  %v5683_v19 = vunpack.i.l.bf16 %v9653_v38 }
 0x1ce   : > { %9652 = vst [vmem:[#allocation7_spill] sm:$0xff] %v7535_v40  ;;  %5851 = vrot.lane.b32.xlu0 %v5850_v24, %s6175_s29  ;;  %v2315_v21 = vsel %vm607_vm0, %v2313_v33, %v2314_v42  ;;  %v5708_v24 = vunpack.i.l.bf16 %v7017_v12  ;;  %v5819_v40 = vunpack.i.h.bf16 %v7193_v36  ;;  %v2395_v36 = vsel %vm607_vm0, %v2311_v43, %v2394_v3  ;;  %v9659_v3 = vld [vmem:[#allocation31_spill] sm:$0xff] }
 0x1cf   : > { %v7543_v4 = vpop.f32.mrf.mxu0  ;;  %v1758_v25 = vpop.f32.mrf.mxu1  ;;  %v5860_v13 = vpack.i.bf16 %v2315_v21, %v2312_v63  ;;  %v1171_v38 = vsel %vm1112_vm1, %v6137_v60, %v5683_v19  ;;  %v1172_v21 = vsel %vm1112_vm1, %v6138_v35, %v5684_v44  ;;  %v6139_v63 = vld [vmem:[%s6251_s23 + $0x168] sm:$0xff] }
 0x1d0   : > { %v1759_v18 = vadd.f32 %v1758_v25, %v1498_v30  ;;  %v5823_v25 = vunpack.i.l.bf16 %v7219_v28  ;;  %v7558_v34 = vsel %vm1112_vm1, %v6139_v63, %v5699_v53  ;;  %v7568_v35 = vpack.c.bf16 %v1172_v21, %v1171_v38  ;;  %v9655_v53 = vld [vmem:[#allocation30_spill] sm:$0xff]  ;;  %v9660_v21 = vld [vmem:[#allocation32_spill] sm:$0xff] }
 0x1d1   : > { %5861 = vrot.lane.b32.xlu1 %v5860_v13, %s6174_s24  ;;  %v6140_v13 = vld [vmem:[%s6251_s23 + $0x170] sm:$0xff]  ;;  %v9661_v63 = vpack.i.bf16 %v7275_v6, %v7234_v11 }
 0x1d2   : > { %v1976_v33 = vmax.f32 %v1759_v18, 0.0  ;;  %1536 = vmatmul.bf16.gmra.mxu0 %v1252_v61  ;;  %v7562_v61 = vsel %vm1112_vm1, %v6140_v13, %v5708_v24  ;;  %v7574_v18 = vsel %vm1112_vm1, %v7000_v56, %v5819_v40  ;;  %v7578_v24 = vsel %vm1112_vm1, %v9655_v53, %v5823_v25 }
 0x1d3   : > { %9654 = vst [vmem:[#allocation25_spill] sm:$0xff] %v7574_v18  ;;  %v1297_v43 = vpack.c.bf16 %v7578_v24, %v7574_v18  ;;  %v1254_v40 = vpack.c.bf16 %v7500_v14, %v7447_v26  ;;  %v5718_v25 = vunpack.i.l.bf16 %v9660_v21  ;;  %v5829_v13 = vunpack.i.h.bf16 %v7217_v52 }
 0x1d4   : > { %v2396_v30 = vrot.slane %v1976_v33, 1  ;;  %9656 = vst [vmem:[#allocation15_spill] sm:$0xff] %v7578_v24  ;;  %v1501_v56 = vadd.f32 %v7149_v48, %v7543_v4  ;;  %v6147_v24 = vld [vmem:[%s6251_s23 + $0x1f8] sm:$0xff] }
 0x1d5   : > { %v7554_v59 = vpop.f32.mrf.mxu2 }
 0x1d6   : > { %5856 = vrot.lane.b32.xlu0 %v7254_v5, %s6175_s29  ;;  %v2397_v60 = vsel %vm607_vm0, %v2314_v42, %v2396_v30  ;;  %v9657_v5 = vpack.i.bf16 %v7263_v23, %v7260_v58  ;;  %v5694_v58 = vunpack.i.h.bf16 %v9659_v3  ;;  %v5693_v23 = vunpack.i.l.bf16 %v9659_v3  ;;  %v6144_v3 = vld [vmem:[%s6251_s23 + $0x180] sm:$0xff] }
 0x1d7   : > { %v1502_v0 = vpop.f32.mrf.mxu0  ;;  %v1761_v44 = vpop.f32.mrf.mxu1  ;;  %v5870_v19 = vpack.i.bf16 %v2397_v60, %v2395_v36  ;;  %v5709_v30 = vunpack.i.h.bf16 %v7017_v12  ;;  %v6141_v36 = vld [vmem:[%s6251_s23 + $0x1e0] sm:$0xff]  ;;  %v7615_v11 = vsel %vm1112_vm1, %v6144_v3, %v5718_v25  ;;  %v9665_v25 = vld [vmem:[#allocation35_spill] sm:$0xff] }
 0x1d8   : > { %v1173_v60 = vsel %vm1112_vm1, %v6141_v36, %v5693_v23  ;;  %v5729_v54 = vunpack.i.h.bf16 %v9665_v25 }
 0x1d9   : > { %5871 = vrot.lane.b32.xlu2 %v5870_v19, %s6176_s30  ;;  %5866 = vrot.lane.b32.xlu1 %v9657_v5, %s6174_s24  ;;  %v6142_v19 = vld [vmem:[%s6251_s23 + $0x1e8] sm:$0xff] }
 0x1da   : > { %1797 = vmatmul.bf16.gmra.mxu1 %v7568_v35  ;;  %v1174_v53 = vsel %vm1112_vm1, %v6142_v19, %v5694_v58  ;;  %v9664_v19 = vld [vmem:[#allocation28_spill] sm:$0xff] }
 0x1db   : > { %1933 = vmatmul.bf16.gmra.mxu3 %v1297_v43  ;;  %v6143_v43 = vld [vmem:[%s6251_s23 + $0x178] sm:$0xff]  ;;  %v7617_v6 = vpack.c.bf16 %v1174_v53, %v1173_v60  ;;  %v1256_v60 = vpack.c.bf16 %v7558_v34, %v7504_v49  ;;  %v5704_v53 = vunpack.i.h.bf16 %v9664_v19 }
 0x1dc   : > { %v7611_v12 = vsel %vm1112_vm1, %v6143_v43, %v5709_v30  ;;  %v1503_v43 = vadd.f32 %v7149_v48, %v1502_v0 }
 0x1dd   : > { %v7590_v42 = vpop.f32.mrf.mxu2 }
 0x1de   : > { %9658 = vst [vmem:[#allocation27_spill] sm:$0xff] %v7590_v42  ;;  %v7642_v42 = vadd.f32 %v1761_v44, %v1501_v56 }
 0x1df   : > { %v1505_v33 = vpop.f32.mrf.mxu0  ;;  %v1763_v38 = vpop.f32.mrf.mxu1 }
 0x1e0   : > { %v1764_v52 = vadd.f32 %v1763_v38, %v1503_v43  ;;  %v6149_v38 = vld [vmem:[%s6251_s23 + $0x190] sm:$0xff]  ;;  %v9666_v43 = vld [vmem:[#allocation38_spill] sm:$0xff] }
 0x1e1   : > { %5876 = vrot.lane.b32.xlu2 %v9661_v63, %s6176_s30  ;;  %v6145_v63 = vld [vmem:[%s6251_s23 + $0x2a8] sm:$0xff] }
 0x1e2   : > { %1541 = vmatmul.bf16.gmra.mxu0 %v1254_v40  ;;  %v7623_v58 = vsel %vm1112_vm1, %v6145_v63, %v5829_v13  ;;  %v5703_v13 = vunpack.i.l.bf16 %v9664_v19  ;;  %v5719_v63 = vunpack.i.h.bf16 %v9660_v21  ;;  %v6146_v19 = vld [vmem:[%s6251_s23 + $0x1f0] sm:$0xff]  ;;  %v1978_v21 = vmax.f32 %v1764_v52, 0.0 }
 0x1e3   : > { %9662 = vst [vmem:[#allocation29_spill] sm:$0xff] %v7623_v58  ;;  %v1298_v36 = vpack.c.bf16 %v7041_v16, %v7623_v58  ;;  %v1176_v58 = vsel %vm1112_vm1, %v6147_v24, %v5704_v53  ;;  %v1506_v53 = vadd.f32 %v7149_v48, %v1505_v33 }
 0x1e4   : > { %v1175_v0 = vsel %vm1112_vm1, %v6146_v19, %v5703_v13 }
 0x1e5   : > { %v7607_v5 = vpop.f32.mrf.mxu2  ;;  %v7661_v56 = vpack.c.bf16 %v1176_v58, %v1175_v0  ;;  %v1647_v58 = vadd.f32 %v7149_v48, %v7272_v57  ;;  %v1258_v57 = vpack.c.bf16 %v7611_v12, %v7562_v61 }
 0x1e7   : > { %v1507_v40 = vpop.f32.mrf.mxu0  ;;  %v1766_v23 = vpop.f32.mrf.mxu1 }
 0x1e8   : > { %v1508_v28 = vadd.f32 %v7149_v48, %v1507_v40 }
 0x1ea   : > { %1802 = vmatmul.bf16.gmra.mxu1 %v7617_v6 }
 0x1eb   : > { %1938 = vmatmul.bf16.gmra.mxu3 %v1298_v36  ;;  %v5728_v36 = vunpack.i.l.bf16 %v9665_v25  ;;  %v6152_v25 = vld [vmem:[%s6251_s23 + $0x198] sm:$0xff] }
 0x1ed   : > { %v7630_v30 = vpop.f32.mrf.mxu2  ;;  %v7658_v40 = vsel %vm1112_vm1, %v6149_v38, %v5728_v36  ;;  %v2317_v36 = vrot.slane %v1978_v21, 1 }
 0x1ee   : > { %9663 = vst [vmem:[#allocation24_spill] sm:$0xff] %v7630_v30  ;;  %v6148_v30 = vld [vmem:[%s6251_s23 + $0x188] sm:$0xff] }
 0x1ef   : > { %v1510_v16 = vpop.f32.mrf.mxu0  ;;  %v1768_v3 = vpop.f32.mrf.mxu1  ;;  %v7654_v4 = vsel %vm1112_vm1, %v6148_v30, %v5719_v63 }
 0x1f0   : > { %v7648_v55 = vadd.f32 %v1768_v3, %v1508_v28  ;;  %v1511_v44 = vadd.f32 %v7149_v48, %v1510_v16  ;;  %v9517_v28 = vmax.f32 %v7642_v42, 0.0  ;;  %v9667_v3 = vld [vmem:[#allocation40_spill] sm:$0xff]  ;;  %v1767_v16 = vadd.f32 %v1766_v23, %v1506_v53 }
 0x1f1   : > { %v1299_v63 = vpack.c.bf16 %v9667_v3, %v9666_v43 }
 0x1f2   : > { %1546 = vmatmul.bf16.gmra.mxu0 %v1256_v60  ;;  %v9518_v30 = vmax.f32 %v7648_v55, 0.0  ;;  %v2316_v0 = vrot.slane %v9517_v28, 1 }
 0x1f4   : > { %v2319_v33 = vrot.slane %v9518_v30, 1  ;;  %v2318_v3 = vsel %vm607_vm0, %v2316_v0, %v2317_v36 }
 0x1f5   : > { %v7650_v18 = vpop.f32.mrf.mxu2 }
 0x1f7   : > { %v1512_v52 = vpop.f32.mrf.mxu0  ;;  %v1771_v60 = vpop.f32.mrf.mxu1 }
 0x1f8   : > { %v1772_v13 = vadd.f32 %v1771_v60, %v1511_v44  ;;  %v9668_v44 = vld [vmem:[#allocation33_spill] sm:$0xff]  ;;  %v1513_v28 = vadd.f32 %v7149_v48, %v1512_v52 }
 0x1f9   : > { %v5714_v60 = vunpack.i.h.bf16 %v9668_v44  ;;  %v5713_v43 = vunpack.i.l.bf16 %v9668_v44  ;;  %v1907_v53 = vpop.f32.mrf.mxu3 }
 0x1fa   : > { %v1981_v19 = vmax.f32 %v1772_v13, 0.0  ;;  %1807 = vmatmul.bf16.gmra.mxu1 %v7661_v56  ;;  %v1979_v13 = vmax.f32 %v1767_v16, 0.0 }
 0x1fb   : > { %1943 = vmatmul.bf16.gmra.mxu3 %v1299_v63  ;;  %v7687_v63 = vadd.f32 %v1907_v53, %v1647_v58  ;;  %v6151_v58 = vld [vmem:[%s6251_s23 + $0x208] sm:$0xff] }
 0x1fc   : > { %v2320_v38 = vrot.slane %v1981_v19, 1  ;;  %v5880_v24 = vpack.i.bf16 %v1981_v19, %v1978_v21  ;;  %v2398_v52 = vrot.slane %v1979_v13, 1  ;;  %v1178_v53 = vsel %vm1112_vm1, %v6151_v58, %v5714_v60  ;;  %v9674_v58 = vld [vmem:[#allocation42_spill] sm:$0xff] }
 0x1fd   : > { %v7682_v23 = vpop.f32.mrf.mxu2  ;;  %9670 = vst [vmem:[#allocation30_spill] sm:$0xff] %v7687_v63 }
 0x1fe   : > { %9669 = vst [vmem:[#allocation26_spill] sm:$0xff] %v7682_v23  ;;  %5881 = vrot.lane.b32.xlu0 %v5880_v24, %s6175_s29  ;;  %v2321_v21 = vsel %vm607_vm0, %v2319_v33, %v2320_v38  ;;  %v9671_v23 = vld [vmem:[#allocation39_spill] sm:$0xff]  ;;  %v6150_v24 = vld [vmem:[%s6251_s23 + $0x200] sm:$0xff] }
 0x1ff   : > { %v1515_v19 = vpop.f32.mrf.mxu0  ;;  %v1773_v44 = vpop.f32.mrf.mxu1  ;;  %v5885_v0 = vpack.i.bf16 %v2321_v21, %v2318_v3  ;;  %v5738_v47 = vunpack.i.l.bf16 %v9671_v23  ;;  %v1177_v33 = vsel %vm1112_vm1, %v6150_v24, %v5713_v43  ;;  %v7702_v3 = vsel %vm1112_vm1, %v6152_v25, %v5729_v54  ;;  %v9673_v54 = vld [vmem:[#allocation41_spill] sm:$0xff] }
 0x200   : > { %v1774_v30 = vadd.f32 %v1773_v44, %v1513_v28  ;;  %v7696_v62 = vpack.c.bf16 %v1178_v53, %v1177_v33  ;;  %v6153_v44 = vld [vmem:[%s6251_s23 + $0x1a0] sm:$0xff]  ;;  %v2399_v43 = vsel %vm607_vm0, %v2317_v36, %v2398_v52  ;;  %v1300_v53 = vpack.c.bf16 %v9674_v58, %v9673_v54  ;;  %v9675_v25 = vld [vmem:[#allocation37_spill] sm:$0xff]  ;;  %v5386_v54 = vld [vmem:[%s9438_s3 + $0x68] sm:$0xff] }
 0x201   : > { %5886 = vrot.lane.b32.xlu1 %v5885_v0, %s6174_s24  ;;  %v1909_v21 = vpop.f32.mrf.mxu3  ;;  %v1260_v52 = vpack.c.bf16 %v7654_v4, %v7615_v11  ;;  %v6154_v58 = vld [vmem:[%s6251_s23 + $0x210] sm:$0xff] }
 0x202   : > { %v1982_v16 = vmax.f32 %v1774_v30, 0.0  ;;  %1551 = vmatmul.bf16.gmra.mxu0 %v1258_v57  ;;  %v7706_v30 = vsel %vm1112_vm1, %v6153_v44, %v5738_v47  ;;  %v1516_v57 = vadd.f32 %v7149_v48, %v1515_v19  ;;  %v5388_v47 = vld [vmem:[%s9438_s3 + $0x78] sm:$0xff]  ;;  %v5724_v21 = vunpack.i.h.bf16 %v9675_v25 }
 0x203   : > { %2971 = vmatpush.bf16.msrb.mxu3 %v5388_v47  ;;  %v5723_v44 = vunpack.i.l.bf16 %v9675_v25  ;;  %v6155_v47 = vld [vmem:[%s6251_s23 + $0x218] sm:$0xff]  ;;  %v9676_v25 = vmax.f32 %v7295_v10, 0.0 }
 0x204   : > { %v2400_v63 = vrot.slane %v1982_v16, 1 }
 0x205   : > { %v7698_v28 = vpop.f32.mrf.mxu2 }
 0x206   : > { %v2401_v60 = vsel %vm607_vm0, %v2320_v38, %v2400_v63  ;;  %v5387_v63 = vld [vmem:[%s9438_s3 + $0x70] sm:$0xff] }
 0x207   : > { %v1517_v0 = vpop.f32.mrf.mxu0  ;;  %v1776_v16 = vpop.f32.mrf.mxu1  ;;  %v5890_v24 = vpack.i.bf16 %v2401_v60, %v2399_v43  ;;  %2972 = vmatpush.bf16.msrb.mxu3 %v5387_v63  ;;  %v9523_v60 = vmax.f32 %v7283_v27, 0.0 }
 0x208   : > { %v7713_v33 = vadd.f32 %v1776_v16, %v1516_v57  ;;  %v1518_v19 = vadd.f32 %v7149_v48, %v1517_v0 }
 0x209   : > { %5891 = vrot.lane.b32.xlu2 %v5890_v24, %s6176_s30  ;;  %v1911_v38 = vpop.f32.mrf.mxu3 }
 0x20a   : > { %9672 = vst [vmem:[#allocation31_spill] sm:$0xff] %v7713_v33  ;;  %1812 = vmatmul.bf16.gmra.mxu1 %v7696_v62  ;;  %v9522_v16 = vmax.f32 %v7713_v33, 0.0  ;;  %v2469_v38 = vrot.slane %v9523_v60, 1 }
 0x20b   : > { %1948 = vmatmul.bf16.gmra.mxu3 %v1300_v53  ;;  %v1179_v53 = vsel %vm1112_vm1, %v6154_v58, %v5723_v44  ;;  %v5385_v44 = vld [vmem:[%s9438_s3 + $0x60] sm:$0xff] }
 0x20c   : > { %2973 = vmatpush.bf16.msrb.mxu3 %v5386_v54  ;;  %v2520_v63 = vrot.slane %v9522_v16, 1  ;;  %v7755_v58 = vsel %vm607_vm0, %v2469_v38, %v7320_v51  ;;  %v9681_v16 = vld [vmem:[#allocation9_spill] sm:$0xff]  ;;  %v1654_v51 = vadd.f32 %v7149_v48, %v7337_v31  ;;  %v9684_v31 = vld [vmem:[#allocation34_spill] sm:$0xff] }
 0x20d   : > { %v1690_v36 = vpop.f32.mrf.mxu2  ;;  %9678 = vst [vmem:[#allocation28_spill] sm:$0xff] %v7755_v58 }
 0x20e   : > { %v1180_v36 = vsel %vm1112_vm1, %v6155_v47, %v5724_v21 }
 0x20f   : > { %v1520_v57 = vpop.f32.mrf.mxu0  ;;  %v1778_v43 = vpop.f32.mrf.mxu1  ;;  %v7751_v54 = vpack.c.bf16 %v1180_v36, %v1179_v53 }
 0x210   : > { %v1779_v24 = vadd.f32 %v1778_v43, %v1518_v19  ;;  %v1521_v21 = vadd.f32 %v7149_v48, %v1520_v57  ;;  %2974 = vmatpush.bf16.msrb.mxu3 %v5385_v44  ;;  %v5384_v57 = vld [vmem:[%s9438_s3 + $0x58] sm:$0xff]  ;;  %v1262_v44 = vpack.c.bf16 %v7702_v3, %v7658_v40 }
 0x212   : > { %v1984_v0 = vmax.f32 %v1779_v24, 0.0  ;;  %1556 = vmatmul.bf16.gmra.mxu0 %v1260_v52  ;;  %v1912_v52 = vpop.f32.mrf.mxu3 }
 0x213   : > { %v9680_v52 = vld [vmem:[#allocation43_spill] sm:$0xff] }
 0x214   : > { %v2521_v19 = vrot.slane %v1984_v0, 1  ;;  %v7745_v43 = vpack.i.bf16 %v1984_v0, %v9676_v25  ;;  %v1301_v60 = vpack.c.bf16 %v9681_v16, %v9680_v52  ;;  %2975 = vmatpush.bf16.msrb.mxu3 %v5384_v57  ;;  %v5383_v16 = vld [vmem:[%s9438_s3 + $0x50] sm:$0xff]  ;;  %v5382_v57 = vld [vmem:[%s9438_s3 + $0x48] sm:$0xff]  ;;  %v6161_v25 = vld [vmem:[%s6251_s23 + $0x238] sm:$0xff] }
 0x215   : > { %v1692_v24 = vpop.f32.mrf.mxu2 }
 0x216   : > { %9677 = vst [vmem:[#allocation32_spill] sm:$0xff] %v7745_v43  ;;  %v7758_v47 = vsel %vm607_vm0, %v2520_v63, %v2521_v19  ;;  %v9689_v43 = vmax.f32 %v7490_v20, 0.0 }
 0x217   : > { %9679 = vst [vmem:[#allocation35_spill] sm:$0xff] %v7758_v47  ;;  %v1522_v10 = vpop.f32.mrf.mxu0  ;;  %v1781_v0 = vpop.f32.mrf.mxu1  ;;  %v9688_v47 = vmax.f32 %v7494_v7, 0.0 }
 0x218   : > { %v1782_v24 = vadd.f32 %v1781_v0, %v1521_v21  ;;  %v5734_v10 = vunpack.i.h.bf16 %v9684_v31  ;;  %v5733_v0 = vunpack.i.l.bf16 %v9684_v31  ;;  %2976 = vmatpush.bf16.msrb.mxu3 %v5383_v16 }
 0x21a   : > { %v1985_v53 = vmax.f32 %v1782_v24, 0.0  ;;  %1817 = vmatmul.bf16.gmra.mxu1 %v7751_v54  ;;  %v1914_v63 = vpop.f32.mrf.mxu3 }
 0x21b   : > { %1952 = vmatmul.bf16.gmra.mxu3 %v1301_v60  ;;  %v7775_v21 = vadd.f32 %v1914_v63, %v1654_v51  ;;  %v6156_v51 = vld [vmem:[%s6251_s23 + $0x220] sm:$0xff] }
 0x21c   : > { %v2541_v36 = vrot.slane %v1985_v53, 1  ;;  %v6157_v53 = vld [vmem:[%s6251_s23 + $0x228] sm:$0xff]  ;;  %2977 = vmatpush.bf16.msrb.mxu3 %v5382_v57  ;;  %v5381_v63 = vld [vmem:[%s9438_s3 + $0x40] sm:$0xff] }
 0x21d   : > { %v1693_v38 = vpop.f32.mrf.mxu2  ;;  %9682 = vst [vmem:[#allocation38_spill] sm:$0xff] %v7775_v21 }
 0x21e   : > { %v7778_v48 = vsel %vm607_vm0, %v2521_v19, %v2541_v36  ;;  %v1181_v19 = vsel %vm1112_vm1, %v6156_v51, %v5733_v0  ;;  %v1182_v36 = vsel %vm1112_vm1, %v6157_v53, %v5734_v10  ;;  %v7802_v10 = vld [vmem:[%s9437_s2] ss:$0 sm:$0xff]  ;;  %v9685_v53 = vld [vmem:[#allocation36_spill] sm:$0xff] }
 0x21f   : > { %9683 = vst [vmem:[#allocation40_spill] sm:$0xff] %v7778_v48  ;;  %v1524_v60 = vpop.f32.mrf.mxu0  ;;  %v1783_v24 = vpop.f32.mrf.mxu1  ;;  %v7796_v16 = vpack.c.bf16 %v1182_v36, %v1181_v19  ;;  %v1659_v0 = vadd.f32 %v7802_v10, %v7381_v1  ;;  %v5744_v36 = vunpack.i.h.bf16 %v9685_v53  ;;  %v6160_v1 = vld [vmem:[%s6251_s23 + $0x230] sm:$0xff] }
 0x220   : > { %2978 = vmatpush.bf16.msrb.mxu3 %v5381_v63  ;;  %v6159_v24 = vld [vmem:[%s6251_s23 + $0x1a8] sm:$0xff]  ;;  %v5743_v63 = vunpack.i.l.bf16 %v9685_v53 }
 0x222   : > { %1561 = vmatmul.bf16.gmra.mxu0 %v1262_v44  ;;  %v7791_v38 = vpop.f32.mrf.mxu3  ;;  %v5739_v44 = vunpack.i.h.bf16 %v9671_v23  ;;  %v1183_v52 = vsel %vm1112_vm1, %v6160_v1, %v5743_v63 }
 0x224   : > { %v7809_v57 = vsel %vm1112_vm1, %v6159_v24, %v5739_v44  ;;  %v1184_v44 = vsel %vm1112_vm1, %v6161_v25, %v5744_v36 }
 0x225   : > { %v1264_v19 = vpack.c.bf16 %v7809_v57, %v7706_v30  ;;  %v7821_v24 = vpack.c.bf16 %v1184_v44, %v1183_v52 }
 0x227   : > { %v1525_v31 = vpop.f32.mrf.mxu0  ;;  %v1785_v60 = vpop.f32.mrf.mxu1 }
 0x22a   : > { %1822 = vmatmul.bf16.gmra.mxu1 %v7796_v16  ;;  %v1919_v51 = vpop.f32.mrf.mxu3 }
 0x22b   : > { %v7813_v23 = vadd.f32 %v1919_v51, %v1659_v0  ;;  %v1664_v51 = vadd.f32 %v7802_v10, %v7437_v17 }
 0x22f   : > { %v1527_v31 = vpop.f32.mrf.mxu0  ;;  %v1786_v60 = vpop.f32.mrf.mxu1 }
 0x232   : > { %1565 = vmatmul.bf16.gmra.mxu0 %v1264_v19  ;;  %v7823_v13 = vpop.f32.mrf.mxu3 }
 0x233   : > { %9686 = vst [vmem:[#allocation33_spill] sm:$0xff] %v7823_v13  ;;  %v5872_v53 = vpop.permute.xlu2 %5871 }
 0x234   : > { %v5874_v44 = vunpack.i.h.bf16 %v5872_v53  ;;  %v5873_v58 = vunpack.i.l.bf16 %v5872_v53 }
 0x237   : > { %v1529_v33 = vpop.f32.mrf.mxu0  ;;  %v1788_v0 = vpop.f32.mrf.mxu1 }
 0x23a   : > { %1826 = vmatmul.bf16.gmra.mxu1 %v7821_v24 }
 0x23e   : > { %v1924_v29 = vpop.f32.mrf.mxu3 }
 0x23f   : > { %v1532_v60 = vpop.f32.mrf.mxu0  ;;  %v1790_v19 = vpop.f32.mrf.mxu1  ;;  %v7828_v48 = vadd.f32 %v1924_v29, %v1664_v51 }
 0x240   : > { %v5852_v27 = vpop.permute.xlu0 %5851 }
 0x241   : > { %v5854_v63 = vunpack.i.h.bf16 %v5852_v27  ;;  %v5853_v1 = vunpack.i.l.bf16 %v5852_v27  ;;  %9687 = vst [vmem:[#allocation39_spill] sm:$0xff] %v7828_v48 }
 0x242   : > { %1568 = vmatmul.bf16.gmra.mxu0 %v7443_v8 }
 0x243   : > { %v5862_v25 = vpop.permute.xlu1 %5861  ;;  %v2595_v17 = vsel %vm2556_vm2, %v9688_v47, %v5854_v63  ;;  %v2594_v21 = vsel %vm2556_vm2, %v9689_v43, %v5853_v1  ;;  %v5877_v63 = vpop.permute.xlu2 %5876  ;;  %v9690_v43 = vpack.c.bf16 %v7389_v41, %v7385_v15 }
 0x244   : > { %v5864_v52 = vunpack.i.h.bf16 %v5862_v25  ;;  %v5863_v36 = vunpack.i.l.bf16 %v5862_v25 }
 0x246   : > { %v2607_v13 = vsel %vm1112_vm1, %v2595_v17, %v5864_v52  ;;  %v2606_v27 = vsel %vm1112_vm1, %v2594_v21, %v5863_v36  ;;  %v7844_v48 = vpop.f32.mrf.mxu3  ;;  %v5879_v52 = vunpack.i.h.bf16 %v5877_v63  ;;  %v5878_v36 = vunpack.i.l.bf16 %v5877_v63 }
 0x247   : > { %v1534_v29 = vpop.f32.mrf.mxu0  ;;  %v1793_v51 = vpop.f32.mrf.mxu1  ;;  %v2618_v8 = vsel %vm2581_vm3, %v2606_v27, %v5873_v58  ;;  %v7841_v25 = vsel %vm2581_vm3, %v2607_v13, %v5874_v44  ;;  %v1669_v58 = vadd.f32 %v7802_v10, %v7496_v39  ;;  %v9691_v44 = vmax.f32 %v7236_v22, 0.0 }
 0x248   : > { %v5857_v53 = vpop.permute.xlu0 %5856  ;;  %v2649_v7 = vpack.c.bf16 %v7841_v25, %v2618_v8  ;;  %v9692_v27 = vmax.f32 %v7201_v46, 0.0  ;;  %v1528_v22 = vadd.f32 %v7802_v10, %v1527_v31 }
 0x249   : > { %v5859_v47 = vunpack.i.h.bf16 %v5857_v53  ;;  %v5858_v20 = vunpack.i.l.bf16 %v5857_v53 }
 0x24a   : > { %1829 = vmatmul.bf16.gmra.mxu1 %v9690_v43  ;;  %2979 = vmatmul.bf16.vlgmr.msrb.gmra.mxu3 %v2649_v7 }
 0x24b   : > { %v5867_v21 = vpop.permute.xlu1 %5866  ;;  %v2560_v17 = vsel %vm2556_vm2, %v9691_v44, %v5859_v47  ;;  %v2559_v8 = vsel %vm2556_vm2, %v9692_v27, %v5858_v20  ;;  %v1530_v47 = vadd.f32 %v7802_v10, %v1529_v33  ;;  %v1533_v33 = vadd.f32 %v7802_v10, %v1532_v60 }
 0x24c   : > { %v5869_v1 = vunpack.i.h.bf16 %v5867_v21  ;;  %v5868_v13 = vunpack.i.l.bf16 %v5867_v21 }
 0x24d   : > { %v1791_v21 = vadd.f32 %v1790_v19, %v1530_v47 }
 0x24e   : > { %v2572_v15 = vsel %vm1112_vm1, %v2560_v17, %v5869_v1  ;;  %v2571_v41 = vsel %vm1112_vm1, %v2559_v8, %v5868_v13  ;;  %v1929_v20 = vpop.f32.mrf.mxu3  ;;  %v1535_v1 = vadd.f32 %v7802_v10, %v1534_v29  ;;  %v7873_v13 = vadd.f32 %v1788_v0, %v1528_v22 }
 0x24f   : > { %v1537_v53 = vpop.f32.mrf.mxu0  ;;  %v1795_v7 = vpop.f32.mrf.mxu1  ;;  %v7860_v39 = vsel %vm2581_vm3, %v2571_v41, %v5878_v36  ;;  %v7863_v43 = vsel %vm2581_vm3, %v2572_v15, %v5879_v52  ;;  %v7869_v63 = vadd.f32 %v1929_v20, %v1669_v58  ;;  %v1987_v31 = vmax.f32 %v1791_v21, 0.0 }
 0x250   : > { %v2652_v46 = vpack.c.bf16 %v7863_v43, %v7860_v39  ;;  %v1538_v52 = vadd.f32 %v7802_v10, %v1537_v53  ;;  %v7876_v36 = vadd.f32 %v1795_v7, %v1535_v1  ;;  %v1986_v58 = vmax.f32 %v7873_v13, 0.0 }
 0x251   : > { %v1794_v8 = vadd.f32 %v1793_v51, %v1533_v33  ;;  %v9693_v15 = vpack.c.bf16 %v7447_v26, %v7457_v45  ;;  %v1674_v22 = vadd.f32 %v7802_v10, %v7554_v59 }
 0x252   : > { %1573 = vmatmul.bf16.gmra.mxu0 %v7508_v2  ;;  %2945 = vmatmul.bf16.gmra.mxu2 %v2652_v46  ;;  %v1989_v19 = vmax.f32 %v7876_v36, 0.0  ;;  %v2119_v2 = vrot.slane %v1987_v31, 1  ;;  %v2118_v60 = vrot.slane %v1986_v58, 1  ;;  %v9703_v36 = vld [vmem:[#allocation44_spill] sm:$0xff] }
 0x253   : > { %v1988_v47 = vmax.f32 %v1794_v8, 0.0 }
 0x254   : > { %v2121_v41 = vrot.slane %v1989_v19, 1  ;;  %v2120_v51 = vsel %vm607_vm0, %v2118_v60, %v2119_v2 }
 0x256   : > { %v7881_v29 = vpop.f32.mrf.mxu3 }
 0x257   : > { %v1539_v44 = vpop.f32.mrf.mxu0  ;;  %v1798_v17 = vpop.f32.mrf.mxu1 }
 0x258   : > { %v1799_v27 = vadd.f32 %v1798_v17, %v1538_v52  ;;  %v1540_v46 = vadd.f32 %v7802_v10, %v1539_v44 }
 0x25a   : > { %v1990_v0 = vmax.f32 %v1799_v27, 0.0  ;;  %1834 = vmatmul.bf16.gmra.mxu1 %v9693_v15 }
 0x25c   : > { %v2122_v53 = vrot.slane %v1990_v0, 1  ;;  %v5895_v7 = vpack.i.bf16 %v1990_v0, %v1987_v31  ;;  %v2198_v31 = vrot.slane %v1988_v47, 1 }
 0x25e   : > { %5896 = vrot.lane.b32.xlu0 %v5895_v7, %s6175_s29  ;;  %v2123_v26 = vsel %vm607_vm0, %v2121_v41, %v2122_v53  ;;  %v1934_v52 = vpop.f32.mrf.mxu3  ;;  %v2199_v27 = vsel %vm607_vm0, %v2119_v2, %v2198_v31 }
 0x25f   : > { %v1542_v45 = vpop.f32.mrf.mxu0  ;;  %v1800_v20 = vpop.f32.mrf.mxu1  ;;  %v5900_v21 = vpack.i.bf16 %v2123_v26, %v2120_v51  ;;  %v7897_v33 = vadd.f32 %v1934_v52, %v1674_v22  ;;  %v9694_v22 = vpack.c.bf16 %v7504_v49, %v7500_v14 }
 0x260   : > { %v1801_v1 = vadd.f32 %v1800_v20, %v1540_v46  ;;  %v1543_v44 = vadd.f32 %v7802_v10, %v1542_v45 }
 0x261   : > { %5901 = vrot.lane.b32.xlu1 %v5900_v21, %s6174_s24 }
 0x262   : > { %v1991_v59 = vmax.f32 %v1801_v1, 0.0  ;;  %1578 = vmatmul.bf16.gmra.mxu0 %v7568_v35  ;;  %v1679_v35 = vadd.f32 %v7802_v10, %v7607_v5 }
 0x263   : > { %v5892_v1 = vpop.permute.xlu2 %5891 }
 0x264   : > { %v2200_v17 = vrot.slane %v1991_v59, 1  ;;  %v5894_v5 = vunpack.i.h.bf16 %v5892_v1  ;;  %v5893_v59 = vunpack.i.l.bf16 %v5892_v1 }
 0x266   : > { %v2201_v8 = vsel %vm607_vm0, %v2122_v53, %v2200_v17  ;;  %v7905_v7 = vpop.f32.mrf.mxu3 }
 0x267   : > { %v1544_v0 = vpop.f32.mrf.mxu0  ;;  %v1803_v15 = vpop.f32.mrf.mxu1  ;;  %v5905_v60 = vpack.i.bf16 %v2201_v8, %v2199_v27  ;;  %v9696_v27 = vmax.f32 %v7642_v42, 0.0 }
 0x268   : > { %v7903_v41 = vadd.f32 %v1803_v15, %v1543_v44  ;;  %v1545_v2 = vadd.f32 %v7802_v10, %v1544_v0  ;;  %v9695_v44 = vmax.f32 %v7648_v55, 0.0 }
 0x269   : > { %5906 = vrot.lane.b32.xlu2 %v5905_v60, %s6176_s30 }
 0x26a   : > { %1839 = vmatmul.bf16.gmra.mxu1 %v9694_v22 }
 0x26e   : > { %v1939_v26 = vpop.f32.mrf.mxu3 }
 0x26f   : > { %v1547_v47 = vpop.f32.mrf.mxu0  ;;  %v1805_v53 = vpop.f32.mrf.mxu1  ;;  %v7914_v21 = vadd.f32 %v1939_v26, %v1679_v35  ;;  %v9697_v26 = vpack.c.bf16 %v7562_v61, %v7558_v34 }
 0x270   : > { %v1806_v46 = vadd.f32 %v1805_v53, %v1545_v2  ;;  %v5882_v51 = vpop.permute.xlu0 %5881  ;;  %v1548_v14 = vadd.f32 %v7802_v10, %v1547_v47 }
 0x271   : > { %v5884_v45 = vunpack.i.h.bf16 %v5882_v51  ;;  %v5883_v20 = vunpack.i.l.bf16 %v5882_v51 }
 0x272   : > { %1583 = vmatmul.bf16.gmra.mxu0 %v7617_v6  ;;  %v1993_v2 = vmax.f32 %v1806_v46, 0.0  ;;  %v1684_v46 = vadd.f32 %v7802_v10, %v7650_v18  ;;  %v9540_v18 = vmax.f32 %v7903_v41, 0.0 }
 0x273   : > { %v5887_v52 = vpop.permute.xlu1 %5886  ;;  %v2597_v17 = vsel %vm2556_vm2, %v9695_v44, %v5884_v45  ;;  %v2596_v8 = vsel %vm2556_vm2, %v9696_v27, %v5883_v20 }
 0x274   : > { %v5889_v49 = vunpack.i.h.bf16 %v5887_v52  ;;  %v5888_v31 = vunpack.i.l.bf16 %v5887_v52  ;;  %v2125_v45 = vrot.slane %v1993_v2, 1 }
 0x276   : > { %v2609_v0 = vsel %vm1112_vm1, %v2597_v17, %v5889_v49  ;;  %v2608_v15 = vsel %vm1112_vm1, %v2596_v8, %v5888_v31  ;;  %v7936_v53 = vpop.f32.mrf.mxu3 }
 0x277   : > { %v1549_v6 = vpop.f32.mrf.mxu0  ;;  %v1808_v60 = vpop.f32.mrf.mxu1  ;;  %v7927_v22 = vsel %vm2581_vm3, %v2608_v15, %v5893_v59  ;;  %v7930_v35 = vsel %vm2581_vm3, %v2609_v0, %v5894_v5  ;;  %v9698_v15 = vpack.c.bf16 %v7615_v11, %v7611_v12 }
 0x278   : > { %v1809_v55 = vadd.f32 %v1808_v60, %v1548_v14  ;;  %v2653_v42 = vpack.c.bf16 %v7930_v35, %v7927_v22  ;;  %v1550_v1 = vadd.f32 %v7802_v10, %v1549_v6  ;;  %v2124_v6 = vrot.slane %v9540_v18, 1 }
 0x27a   : > { %v1994_v51 = vmax.f32 %v1809_v55, 0.0  ;;  %1844 = vmatmul.bf16.gmra.mxu1 %v9697_v26  ;;  %2984 = vmatmul.bf16.gmra.mxu3 %v2653_v42  ;;  %v1689_v42 = vadd.f32 %v7802_v10, %v7698_v28  ;;  %v7970_v26 = vsel %vm607_vm0, %v2124_v6, %v2125_v45 }
 0x27c   : > { %v2202_v20 = vrot.slane %v1994_v51, 1 }
 0x27e   : > { %v7945_v52 = vsel %vm607_vm0, %v2125_v45, %v2202_v20  ;;  %v1944_v5 = vpop.f32.mrf.mxu3 }
 0x27f   : > { %v1552_v14 = vpop.f32.mrf.mxu0  ;;  %v1810_v49 = vpop.f32.mrf.mxu1  ;;  %v7949_v59 = vadd.f32 %v1944_v5, %v1684_v46 }
 0x280   : > { %v7947_v31 = vadd.f32 %v1810_v49, %v1550_v1  ;;  %v1553_v34 = vadd.f32 %v7802_v10, %v1552_v14 }
 0x282   : > { %1588 = vmatmul.bf16.gmra.mxu0 %v7661_v56  ;;  %v9541_v17 = vmax.f32 %v7947_v31, 0.0 }
 0x284   : > { %v2127_v56 = vrot.slane %v9541_v17, 1 }
 0x286   : > { %v7955_v8 = vpop.f32.mrf.mxu3 }
 0x287   : > { %v1554_v61 = vpop.f32.mrf.mxu0  ;;  %v1813_v44 = vpop.f32.mrf.mxu1 }
 0x288   : > { %v1814_v27 = vadd.f32 %v1813_v44, %v1553_v34  ;;  %v1555_v51 = vadd.f32 %v7802_v10, %v1554_v61 }
 0x28a   : > { %v1996_v0 = vmax.f32 %v1814_v27, 0.0  ;;  %1849 = vmatmul.bf16.gmra.mxu1 %v9698_v15  ;;  %v9699_v15 = vpack.c.bf16 %v7658_v40, %v7654_v4  ;;  %v9700_v4 = vpack.c.bf16 %v7706_v30, %v7702_v3  ;;  %v1273_v3 = vpack.c.bf16 %v7428_v50, %v7809_v57  ;;  %v6162_v57 = vld [vmem:[%s6251_s23 + $0x240] sm:$0xff] }
 0x28b   : > { %v9702_v50 = vpack.c.bf16 %v7359_v37, %v7344_v9 }
 0x28c   : > { %v2128_v60 = vrot.slane %v1996_v0, 1  ;;  %v7964_v55 = vpack.i.bf16 %v1996_v0, %v1993_v2 }
 0x28e   : > { %v7973_v12 = vsel %vm607_vm0, %v2127_v56, %v2128_v60  ;;  %v1949_v14 = vpop.f32.mrf.mxu3 }
 0x28f   : > { %v1557_v11 = vpop.f32.mrf.mxu0  ;;  %v1815_v20 = vpop.f32.mrf.mxu1  ;;  %v5925_v46 = vpack.i.bf16 %v7973_v12, %v7970_v26  ;;  %v7977_v2 = vadd.f32 %v1949_v14, %v1689_v42 }
 0x290   : > { %v1816_v1 = vadd.f32 %v1815_v20, %v1555_v51  ;;  %v1558_v28 = vadd.f32 %v7802_v10, %v1557_v11 }
 0x292   : > { %v1997_v49 = vmax.f32 %v1816_v1, 0.0  ;;  %1593 = vmatmul.bf16.gmra.mxu0 %v7696_v62 }
 0x294   : > { %v2204_v5 = vrot.slane %v1997_v49, 1 }
 0x296   : > { %v7982_v45 = vsel %vm607_vm0, %v2128_v60, %v2204_v5  ;;  %v1951_v0 = vpop.f32.mrf.mxu3 }
 0x297   : > { %v1559_v34 = vpop.f32.mrf.mxu0  ;;  %v1818_v61 = vpop.f32.mrf.mxu1  ;;  %v5935_v44 = vpack.i.bf16 %v7982_v45, %v7945_v52  ;;  %v9718_v52 = vld [vmem:[#allocation18_spill] sm:$0xff] }
 0x298   : > { %v7986_v27 = vadd.f32 %v1818_v61, %v1558_v28  ;;  %v1560_v62 = vadd.f32 %v7802_v10, %v1559_v34 }
 0x29a   : > { %1854 = vmatmul.bf16.gmra.mxu1 %v9699_v15 }
 0x29e   : > { %v1953_v60 = vpop.f32.mrf.mxu3 }
 0x29f   : > { %v1562_v6 = vpop.f32.mrf.mxu0  ;;  %v1820_v56 = vpop.f32.mrf.mxu1 }
 0x2a0   : > { %v7992_v42 = vadd.f32 %v1820_v56, %v1560_v62  ;;  %v1563_v51 = vadd.f32 %v7802_v10, %v1562_v6  ;;  %v9701_v6 = vld [vmem:[#allocation45_spill] sm:$0xff] }
 0x2a1   : > { %v5779_v56 = vunpack.i.h.bf16 %v9701_v6  ;;  %v5778_v60 = vunpack.i.l.bf16 %v9701_v6 }
 0x2a2   : > { %1598 = vmatmul.bf16.gmra.mxu0 %v7751_v54  ;;  %v1999_v1 = vmax.f32 %v7992_v42, 0.0 }
 0x2a4   : > { %v8002_v40 = vrot.slane %v1999_v1, 1 }
 0x2a6   : > { %v1954_v49 = vpop.f32.mrf.mxu3 }
 0x2a7   : > { %v1564_v11 = vpop.f32.mrf.mxu0  ;;  %v1823_v20 = vpop.f32.mrf.mxu1 }
 0x2a8   : > { %v1824_v14 = vadd.f32 %v1823_v20, %v1563_v51  ;;  %v2941_v20 = vpop.f32.mrf.mxu2 }
 0x2aa   : > { %v2000_v28 = vmax.f32 %v1824_v14, 0.0  ;;  %1859 = vmatmul.bf16.gmra.mxu1 %v9700_v4  ;;  %v1185_v14 = vsel %vm1112_vm1, %v6162_v57, %v5778_v60 }
 0x2ac   : > { %v2492_v5 = vrot.slane %v2000_v28, 1 }
 0x2ae   : > { %v8006_v54 = vsel %vm607_vm0, %v8002_v40, %v2492_v5 }
 0x2af   : > { %v1566_v34 = vpop.f32.mrf.mxu0  ;;  %v1825_v61 = vpop.f32.mrf.mxu1 }
 0x2b2   : > { %1603 = vmatmul.bf16.gmra.mxu0 %v7796_v16  ;;  %v8017_v16 = vld [vmem:[%s9439_s4] ss:$0 sm:$0xff] }
 0x2b3   : > { %v2942_v28 = vadd.f32 %v8017_v16, %v2941_v20 }
 0x2b7   : > { %v1567_v0 = vpop.f32.mrf.mxu0  ;;  %v1827_v15 = vpop.f32.mrf.mxu1 }
 0x2ba   : > { %1864 = vmatmul.bf16.gmra.mxu1 %v1273_v3 }
 0x2bf   : > { %v1569_v30 = vpop.f32.mrf.mxu0  ;;  %v1828_v62 = vpop.f32.mrf.mxu1 }
 0x2c2   : > { %1607 = vmatmul.bf16.gmra.mxu0 %v7821_v24  ;;  %v6163_v24 = vld [vmem:[%s6251_s23 + $0x248] sm:$0xff] }
 0x2c3   : > { %v1186_v49 = vsel %vm1112_vm1, %v6163_v24, %v5779_v56  ;;  %v5907_v6 = vpop.permute.xlu2 %5906 }
 0x2c4   : > { %v1275_v34 = vpack.c.bf16 %v1186_v49, %v1185_v14  ;;  %v5909_v60 = vunpack.i.h.bf16 %v5907_v6  ;;  %v5908_v57 = vunpack.i.l.bf16 %v5907_v6 }
 0x2c7   : > { %v1571_v51 = vpop.f32.mrf.mxu0  ;;  %v1830_v11 = vpop.f32.mrf.mxu1 }
 0x2ca   : > { %1868 = vmatmul.bf16.gmra.mxu1 %v9702_v50 }
 0x2cd   : > { %v2980_v4 = vpop.f32.mrf.mxu3 }
 0x2ce   : > { %v8027_v5 = vadd.f32 %v2980_v4, %v2942_v28 }
 0x2cf   : > { %v1574_v61 = vpop.f32.mrf.mxu0  ;;  %v1832_v0 = vpop.f32.mrf.mxu1 }
 0x2d0   : > { %v5897_v15 = vpop.permute.xlu0 %5896 }
 0x2d1   : > { %v5899_v3 = vunpack.i.h.bf16 %v5897_v15  ;;  %v5898_v62 = vunpack.i.l.bf16 %v5897_v15 }
 0x2d2   : > { %1610 = vmatmul.bf16.gmra.mxu0 %v1275_v34 }
 0x2d3   : > { %v5902_v9 = vpop.permute.xlu1 %5901  ;;  %v2562_v56 = vsel %vm2556_vm2, %v1989_v19, %v5899_v3  ;;  %v2561_v20 = vsel %vm2556_vm2, %v1986_v58, %v5898_v62  ;;  %v1572_v58 = vadd.f32 %v7802_v10, %v1571_v51  ;;  %v1570_v3 = vadd.f32 %v7802_v10, %v1569_v30 }
 0x2d4   : > { %v5904_v37 = vunpack.i.h.bf16 %v5902_v9  ;;  %v5903_v50 = vunpack.i.l.bf16 %v5902_v9  ;;  %v9704_v9 = vld [vmem:[#allocation12_spill] sm:$0xff]  ;;  %v1575_v30 = vadd.f32 %v7802_v10, %v1574_v61 }
 0x2d5   : > { %v1833_v62 = vadd.f32 %v1832_v0, %v1572_v58 }
 0x2d6   : > { %v2574_v14 = vsel %vm1112_vm1, %v2562_v56, %v5904_v37  ;;  %v2573_v24 = vsel %vm1112_vm1, %v2561_v20, %v5903_v50  ;;  %v9705_v37 = vpack.c.bf16 %v7348_v32, %v9704_v9  ;;  %v8049_v50 = vadd.f32 %v1830_v11, %v1570_v3 }
 0x2d7   : > { %v1576_v49 = vpop.f32.mrf.mxu0  ;;  %v1835_v28 = vpop.f32.mrf.mxu1  ;;  %v2586_v4 = vsel %vm2581_vm3, %v2573_v24, %v5908_v57  ;;  %v8039_v34 = vsel %vm2581_vm3, %v2574_v14, %v5909_v60  ;;  %v2002_v57 = vmax.f32 %v1833_v62, 0.0 }
 0x2d8   : > { %v2656_v15 = vpack.c.bf16 %v8039_v34, %v2586_v4  ;;  %v1577_v6 = vadd.f32 %v7802_v10, %v1576_v49  ;;  %v2001_v51 = vmax.f32 %v8049_v50, 0.0  ;;  %v1836_v4 = vadd.f32 %v1835_v28, %v1575_v30 }
 0x2d9   : > { %v2323_v49 = vrot.slane %v2002_v57, 1 }
 0x2da   : > { %1871 = vmatmul.bf16.gmra.mxu1 %v9703_v36  ;;  %2950 = vmatmul.bf16.gmra.mxu2 %v2656_v15  ;;  %v9706_v15 = vld [vmem:[#allocation46_spill] sm:$0xff]  ;;  %v2322_v11 = vrot.slane %v2001_v51, 1  ;;  %v2003_v58 = vmax.f32 %v1836_v4, 0.0 }
 0x2dc   : > { %v2324_v61 = vsel %vm607_vm0, %v2322_v11, %v2323_v49 }
 0x2df   : > { %v1579_v19 = vpop.f32.mrf.mxu0  ;;  %v1837_v13 = vpop.f32.mrf.mxu1 }
 0x2e0   : > { %v8051_v60 = vadd.f32 %v1837_v13, %v1577_v6  ;;  %v1580_v56 = vadd.f32 %v7802_v10, %v1579_v19 }
 0x2e2   : > { %1615 = vmatmul.bf16.gmra.mxu0 %v9705_v37  ;;  %v2004_v0 = vmax.f32 %v8051_v60, 0.0 }
 0x2e4   : > { %v2325_v36 = vrot.slane %v2004_v0, 1 }
 0x2e7   : > { %v1581_v20 = vpop.f32.mrf.mxu0  ;;  %v1840_v14 = vpop.f32.mrf.mxu1 }
 0x2e8   : > { %v1841_v24 = vadd.f32 %v1840_v14, %v1580_v56  ;;  %v1582_v3 = vadd.f32 %v7802_v10, %v1581_v20  ;;  %v8066_v56 = vpop.f32.mrf.mxu2  ;;  %v2402_v14 = vrot.slane %v2003_v58, 1  ;;  %v9711_v58 = vld [vmem:[#allocation8_spill] sm:$0xff] }
 0x2ea   : > { %v2005_v32 = vmax.f32 %v1841_v24, 0.0  ;;  %1876 = vmatmul.bf16.gmra.mxu1 %v9706_v15  ;;  %v9708_v24 = vld [vmem:[#allocation3_spill] sm:$0xff]  ;;  %v2403_v15 = vsel %vm607_vm0, %v2323_v49, %v2402_v14 }
 0x2ec   : > { %v2326_v19 = vrot.slane %v2005_v32, 1  ;;  %v5910_v13 = vpack.i.bf16 %v2005_v32, %v2002_v57  ;;  %v9707_v57 = vld [vmem:[#allocation20_spill] sm:$0xff]  ;;  %v8072_v32 = vpop.f32.mrf.mxu3 }
 0x2ed   : > { %v9709_v4 = vpack.c.bf16 %v9707_v57, %v9708_v24  ;;  %9710 = vst [vmem:[#allocation41_spill] sm:$0xff] %v8072_v32 }
 0x2ee   : > { %5911 = vrot.lane.b32.xlu0 %v5910_v13, %s6175_s29  ;;  %v2327_v28 = vsel %vm607_vm0, %v2325_v36, %v2326_v19 }
 0x2ef   : > { %v1584_v62 = vpop.f32.mrf.mxu0  ;;  %v1842_v6 = vpop.f32.mrf.mxu1  ;;  %v5920_v9 = vpack.i.bf16 %v2327_v28, %v2324_v61 }
 0x2f0   : > { %v1843_v37 = vadd.f32 %v1842_v6, %v1582_v3  ;;  %v2946_v61 = vpop.f32.mrf.mxu2 }
 0x2f1   : > { %5921 = vrot.lane.b32.xlu1 %v5920_v9, %s6174_s24  ;;  %v2947_v28 = vadd.f32 %v8017_v16, %v2946_v61  ;;  %v9713_v9 = vld [vmem:[#allocation19_spill] sm:$0xff] }
 0x2f2   : > { %v2006_v30 = vmax.f32 %v1843_v37, 0.0  ;;  %1620 = vmatmul.bf16.gmra.mxu0 %v9709_v4  ;;  %v9714_v37 = vld [vmem:[#allocation21_spill] sm:$0xff]  ;;  %v1585_v4 = vadd.f32 %v7802_v10, %v1584_v62  ;;  %v9720_v61 = vld [vmem:[#allocation7_spill] sm:$0xff] }
 0x2f3   : > { %v9715_v14 = vpack.c.bf16 %v9713_v9, %v9714_v37 }
 0x2f4   : > { %v2404_v20 = vrot.slane %v2006_v30, 1 }
 0x2f6   : > { %5916 = vrot.lane.b32.xlu0 %v7964_v55, %s6175_s29  ;;  %v2405_v11 = vsel %vm607_vm0, %v2326_v19, %v2404_v20 }
 0x2f7   : > { %v1586_v36 = vpop.f32.mrf.mxu0  ;;  %v1845_v13 = vpop.f32.mrf.mxu1  ;;  %v5930_v3 = vpack.i.bf16 %v2405_v11, %v2403_v15  ;;  %v9717_v11 = vld [vmem:[#allocation14_spill] sm:$0xff] }
 0x2f8   : > { %v1587_v24 = vadd.f32 %v7802_v10, %v1586_v36  ;;  %v9719_v45 = vpack.c.bf16 %v9717_v11, %v9718_v52 }
 0x2f9   : > { %5931 = vrot.lane.b32.xlu2 %v5930_v3, %s6176_s30  ;;  %5926 = vrot.lane.b32.xlu1 %v5925_v46, %s6174_s24  ;;  %v9716_v46 = vld [vmem:[#allocation4_spill] sm:$0xff] }
 0x2fa   : > { %1881 = vmatmul.bf16.gmra.mxu1 %v9711_v58  ;;  %v1671_v58 = vadd.f32 %v7802_v10, %v9720_v61  ;;  %v9534_v61 = vmax.f32 %v7914_v21, 0.0 }
 0x2fd   : > { %v2985_v55 = vpop.f32.mrf.mxu3 }
 0x2fe   : > { %v8085_v6 = vadd.f32 %v2985_v55, %v2947_v28  ;;  %v9721_v28 = vld [vmem:[#allocation24_spill] sm:$0xff] }
 0x2ff   : > { %v1589_v49 = vpop.f32.mrf.mxu0  ;;  %v1847_v19 = vpop.f32.mrf.mxu1  ;;  %v1681_v55 = vadd.f32 %v7802_v10, %v9721_v28 }
 0x300   : > { %9712 = vst [vmem:[#allocation42_spill] sm:$0xff] %v8085_v6  ;;  %v1848_v20 = vadd.f32 %v1847_v19, %v1587_v24 }
 0x301   : > { %5936 = vrot.lane.b32.xlu2 %v5935_v44, %s6176_s30  ;;  %v8101_v44 = vadd.f32 %v1845_v13, %v1585_v4 }
 0x302   : > { %1625 = vmatmul.bf16.gmra.mxu0 %v9715_v14  ;;  %v2008_v36 = vmax.f32 %v1848_v20, 0.0  ;;  %v1590_v14 = vadd.f32 %v7802_v10, %v1589_v49  ;;  %v9722_v20 = vld [vmem:[#allocation11_spill] sm:$0xff] }
 0x303   : > { %v9536_v37 = vmax.f32 %v8101_v44, 0.0 }
 0x304   : > { %v2329_v24 = vrot.slane %v2008_v36, 1 }
 0x307   : > { %v1591_v26 = vpop.f32.mrf.mxu0  ;;  %v1850_v12 = vpop.f32.mrf.mxu1 }
 0x308   : > { %v1592_v15 = vadd.f32 %v7802_v10, %v1591_v26  ;;  %v1851_v4 = vadd.f32 %v1850_v12, %v1590_v14 }
 0x30a   : > { %1886 = vmatmul.bf16.gmra.mxu1 %v9716_v46  ;;  %v8114_v46 = vadd.f32 %v7881_v29, %v1671_v58  ;;  %v2039_v29 = vmax.f32 %v7897_v33, 0.0  ;;  %v2009_v58 = vmax.f32 %v1851_v4, 0.0 }
 0x30c   : > { %v2414_v33 = vrot.slane %v2039_v29, 1  ;;  %v2406_v4 = vrot.slane %v2009_v58, 1 }
 0x30f   : > { %v1594_v30 = vpop.f32.mrf.mxu0  ;;  %v1852_v57 = vpop.f32.mrf.mxu1 }
 0x310   : > { %v8103_v3 = vadd.f32 %v1852_v57, %v1592_v15  ;;  %v1595_v62 = vadd.f32 %v7802_v10, %v1594_v30  ;;  %v1942_v57 = vadd.f32 %v7936_v53, %v1681_v55  ;;  %v2328_v30 = vrot.slane %v9536_v37, 1 }
 0x312   : > { %1630 = vmatmul.bf16.gmra.mxu0 %v9719_v45  ;;  %v9537_v13 = vmax.f32 %v8103_v3, 0.0  ;;  %v9535_v45 = vmax.f32 %v8114_v46, 0.0  ;;  %v2042_v53 = vmax.f32 %v1942_v57, 0.0  ;;  %v2330_v28 = vsel %vm607_vm0, %v2328_v30, %v2329_v24  ;;  %v9724_v30 = vld [vmem:[#allocation5_spill] sm:$0xff] }
 0x313   : > { %v8135_v57 = vrot.slane %v9534_v61, 1 }
 0x314   : > { %v2331_v11 = vrot.slane %v9537_v13, 1 }
 0x317   : > { %v1596_v19 = vpop.f32.mrf.mxu0  ;;  %v1855_v9 = vpop.f32.mrf.mxu1 }
 0x318   : > { %v1856_v26 = vadd.f32 %v1855_v9, %v1595_v62  ;;  %v1597_v12 = vadd.f32 %v7802_v10, %v1596_v19  ;;  %v2416_v19 = vrot.slane %v2042_v53, 1  ;;  %v2407_v53 = vsel %vm607_vm0, %v2329_v24, %v2406_v4 }
 0x319   : > { %v9533_v24 = vmax.f32 %v7986_v27, 0.0 }
 0x31a   : > { %v2011_v15 = vmax.f32 %v1856_v26, 0.0  ;;  %1891 = vmatmul.bf16.gmra.mxu1 %v9722_v20  ;;  %v8131_v26 = vrot.slane %v9535_v45, 1  ;;  %v9723_v20 = vld [vmem:[#allocation25_spill] sm:$0xff]  ;;  %v8147_v29 = vsel %vm607_vm0, %v8135_v57, %v2416_v19 }
 0x31c   : > { %v2332_v49 = vrot.slane %v2011_v15, 1  ;;  %v5940_v52 = vpack.i.bf16 %v2011_v15, %v2008_v36 }
 0x31e   : > { %5941 = vrot.lane.b32.xlu0 %v5940_v52, %s6175_s29  ;;  %v2333_v55 = vsel %vm607_vm0, %v2331_v11, %v2332_v49  ;;  %v9725_v11 = vpack.c.bf16 %v9723_v20, %v9724_v30 }
 0x31f   : > { %v1599_v62 = vpop.f32.mrf.mxu0  ;;  %v1857_v9 = vpop.f32.mrf.mxu1  ;;  %v5945_v14 = vpack.i.bf16 %v2333_v55, %v2330_v28 }
 0x320   : > { %v1858_v36 = vadd.f32 %v1857_v9, %v1597_v12  ;;  %v8143_v12 = vsel %vm607_vm0, %v8131_v26, %v2414_v33  ;;  %v1600_v28 = vadd.f32 %v7802_v10, %v1599_v62  ;;  %v9726_v33 = vld [vmem:[#allocation16_spill] sm:$0xff] }
 0x321   : > { %5946 = vrot.lane.b32.xlu1 %v5945_v14, %s6174_s24 }
 0x322   : > { %v2012_v15 = vmax.f32 %v1858_v36, 0.0  ;;  %1635 = vmatmul.bf16.gmra.mxu0 %v9725_v11  ;;  %v9727_v11 = vld [vmem:[#allocation29_spill] sm:$0xff] }
 0x324   : > { %v2408_v52 = vrot.slane %v2012_v15, 1 }
 0x326   : > { %v2409_v58 = vsel %vm607_vm0, %v2332_v49, %v2408_v52  ;;  %v9728_v52 = vld [vmem:[#allocation15_spill] sm:$0xff] }
 0x327   : > { %v1601_v9 = vpop.f32.mrf.mxu0  ;;  %v1860_v14 = vpop.f32.mrf.mxu1  ;;  %v5950_v36 = vpack.i.bf16 %v2409_v58, %v2407_v53  ;;  %v9729_v47 = vpack.c.bf16 %v9727_v11, %v9728_v52 }
 0x328   : > { %v8154_v15 = vadd.f32 %v1860_v14, %v1600_v28  ;;  %v1602_v19 = vadd.f32 %v7802_v10, %v1601_v9  ;;  %v2472_v28 = vrot.slane %v9533_v24, 1  ;;  %v9730_v14 = vld [vmem:[#allocation22_spill] sm:$0xff] }
 0x329   : > { %5951 = vrot.lane.b32.xlu2 %v5950_v36, %s6176_s30  ;;  %v1656_v36 = vadd.f32 %v7802_v10, %v9730_v14  ;;  %v9732_v14 = vld [vmem:[#allocation13_spill] sm:$0xff] }
 0x32a   : > { %1896 = vmatmul.bf16.gmra.mxu1 %v9726_v33  ;;  %v9532_v49 = vmax.f32 %v8154_v15, 0.0 }
 0x32c   : > { %v2523_v53 = vrot.slane %v9532_v49, 1 }
 0x32f   : > { %v1604_v20 = vpop.f32.mrf.mxu0  ;;  %v1862_v62 = vpop.f32.mrf.mxu1 }
 0x330   : > { %v1863_v4 = vadd.f32 %v1862_v62, %v1602_v19  ;;  %v1605_v33 = vadd.f32 %v7802_v10, %v1604_v20  ;;  %v8177_v19 = vsel %vm607_vm0, %v2472_v28, %v8002_v40  ;;  %v9731_v62 = vld [vmem:[#allocation23_spill] sm:$0xff] }
 0x332   : > { %v2014_v30 = vmax.f32 %v1863_v4, 0.0  ;;  %1640 = vmatmul.bf16.gmra.mxu0 %v9729_v47  ;;  %v1666_v4 = vadd.f32 %v7802_v10, %v9731_v62  ;;  %v2033_v62 = vmax.f32 %v7813_v23, 0.0 }
 0x334   : > { %v2524_v58 = vrot.slane %v2014_v30, 1  ;;  %v8170_v9 = vpack.i.bf16 %v2014_v30, %v1999_v1  ;;  %v8187_v30 = vadd.f32 %v7791_v38, %v1656_v36  ;;  %v1927_v40 = vadd.f32 %v7844_v48, %v1666_v4 }
 0x335   : > { %v2410_v48 = vrot.slane %v2033_v62, 1 }
 0x336   : > { %v8180_v47 = vsel %vm607_vm0, %v2523_v53, %v2524_v58  ;;  %v9539_v53 = vmax.f32 %v8187_v30, 0.0  ;;  %v2036_v42 = vmax.f32 %v1927_v40, 0.0 }
 0x337   : > { %v1606_v11 = vpop.f32.mrf.mxu0  ;;  %v1865_v52 = vpop.f32.mrf.mxu1 }
 0x338   : > { %v1866_v1 = vadd.f32 %v1865_v52, %v1605_v33  ;;  %v9733_v11 = vld [vmem:[#allocation39_spill] sm:$0xff]  ;;  %v8201_v36 = vrot.slane %v9539_v53, 1 }
 0x339   : > { %v9538_v24 = vmax.f32 %v9733_v11, 0.0 }
 0x33a   : > { %v2015_v20 = vmax.f32 %v1866_v1, 0.0  ;;  %1901 = vmatmul.bf16.gmra.mxu1 %v9732_v14 }
 0x33b   : > { %v8205_v4 = vrot.slane %v9538_v24, 1 }
 0x33c   : > { %v2543_v28 = vrot.slane %v2015_v20, 1  ;;  %v8209_v20 = vsel %vm607_vm0, %v8201_v36, %v2410_v48 }
 0x33e   : > { %v8193_v49 = vsel %vm607_vm0, %v2524_v58, %v2543_v28  ;;  %v2412_v58 = vrot.slane %v2036_v42, 1 }
 0x33f   : > { %v1608_v33 = vpop.f32.mrf.mxu0  ;;  %v1867_v52 = vpop.f32.mrf.mxu1 }
 0x340   : > { %v8213_v14 = vsel %vm607_vm0, %v8205_v4, %v2412_v58 }
 0x347   : > { %v1609_v1 = vpop.f32.mrf.mxu0  ;;  %v1869_v23 = vpop.f32.mrf.mxu1 }
 0x34f   : > { %v1611_v28 = vpop.f32.mrf.mxu0  ;;  %v1870_v62 = vpop.f32.mrf.mxu1 }
 0x353   : > { %v5932_v42 = vpop.permute.xlu2 %5931 }
 0x354   : > { %v5934_v13 = vunpack.i.h.bf16 %v5932_v42  ;;  %v5933_v24 = vunpack.i.l.bf16 %v5932_v42 }
 0x357   : > { %v1613_v33 = vpop.f32.mrf.mxu0  ;;  %v1872_v52 = vpop.f32.mrf.mxu1 }
 0x35f   : > { %v1616_v38 = vpop.f32.mrf.mxu0  ;;  %v1874_v55 = vpop.f32.mrf.mxu1 }
 0x360   : > { %v5912_v1 = vpop.permute.xlu0 %5911 }
 0x361   : > { %v5914_v23 = vunpack.i.h.bf16 %v5912_v1  ;;  %v5913_v61 = vunpack.i.l.bf16 %v5912_v1 }
 0x363   : > { %v5922_v45 = vpop.permute.xlu1 %5921  ;;  %v2599_v58 = vsel %vm2556_vm2, %v2004_v0, %v5914_v23  ;;  %v2598_v62 = vsel %vm2556_vm2, %v2001_v51, %v5913_v61  ;;  %v5937_v23 = vpop.permute.xlu2 %5936 }
 0x364   : > { %v5924_v48 = vunpack.i.h.bf16 %v5922_v45  ;;  %v5923_v37 = vunpack.i.l.bf16 %v5922_v45 }
 0x366   : > { %v2611_v40 = vsel %vm1112_vm1, %v2599_v58, %v5924_v48  ;;  %v2610_v53 = vsel %vm1112_vm1, %v2598_v62, %v5923_v37  ;;  %v5939_v48 = vunpack.i.h.bf16 %v5937_v23  ;;  %v5938_v58 = vunpack.i.l.bf16 %v5937_v23 }
 0x367   : > { %v1618_v18 = vpop.f32.mrf.mxu0  ;;  %v1877_v17 = vpop.f32.mrf.mxu1  ;;  %v2622_v1 = vsel %vm2581_vm3, %v2610_v53, %v5933_v24  ;;  %v8227_v45 = vsel %vm2581_vm3, %v2611_v40, %v5934_v13  ;;  %v9734_v37 = vmax.f32 %v7947_v31, 0.0  ;;  %v9735_v24 = vmax.f32 %v7903_v41, 0.0 }
 0x368   : > { %v5917_v42 = vpop.permute.xlu0 %5916  ;;  %v2657_v60 = vpack.c.bf16 %v8227_v45, %v2622_v1  ;;  %v1612_v31 = vadd.f32 %v7802_v10, %v1611_v28  ;;  %v1619_v23 = vadd.f32 %v7802_v10, %v1618_v18  ;;  %v9737_v28 = vld [vmem:[#allocation33_spill] sm:$0xff]  ;;  %v1617_v18 = vadd.f32 %v7802_v10, %v1616_v38 }
 0x369   : > { %v5919_v6 = vunpack.i.h.bf16 %v5917_v42  ;;  %v5918_v0 = vunpack.i.l.bf16 %v5917_v42 }
 0x36a   : > { %2989 = vmatmul.bf16.gmra.mxu3 %v2657_v60 }
 0x36b   : > { %v5927_v50 = vpop.permute.xlu1 %5926  ;;  %v2564_v62 = vsel %vm2556_vm2, %v9734_v37, %v5919_v6  ;;  %v2563_v13 = vsel %vm2556_vm2, %v9735_v24, %v5918_v0  ;;  %v1614_v6 = vadd.f32 %v7802_v10, %v1613_v33  ;;  %v8251_v37 = vadd.f32 %v1872_v52, %v1612_v31 }
 0x36c   : > { %v5929_v51 = vunpack.i.h.bf16 %v5927_v50  ;;  %v5928_v61 = vunpack.i.l.bf16 %v5927_v50  ;;  %v1878_v52 = vadd.f32 %v1877_v17, %v1617_v18 }
 0x36d   : > { %v1875_v0 = vadd.f32 %v1874_v55, %v1614_v6  ;;  %v9542_v55 = vmax.f32 %v8251_v37, 0.0 }
 0x36e   : > { %v2576_v53 = vsel %vm1112_vm1, %v2564_v62, %v5929_v51  ;;  %v2575_v40 = vsel %vm1112_vm1, %v2563_v13, %v5928_v61  ;;  %v9736_v51 = vld [vmem:[#allocation6_spill] sm:$0xff] }
 0x36f   : > { %v1621_v1 = vpop.f32.mrf.mxu0  ;;  %v1879_v42 = vpop.f32.mrf.mxu1  ;;  %v8239_v60 = vsel %vm2581_vm3, %v2575_v40, %v5938_v58  ;;  %v8242_v50 = vsel %vm2581_vm3, %v2576_v53, %v5939_v48  ;;  %v1661_v61 = vadd.f32 %v7802_v10, %v9736_v51  ;;  %v2017_v48 = vmax.f32 %v1875_v0, 0.0 }
 0x370   : > { %v2660_v41 = vpack.c.bf16 %v8242_v50, %v8239_v60  ;;  %v8253_v58 = vadd.f32 %v1879_v42, %v1619_v23  ;;  %v1622_v62 = vadd.f32 %v7802_v10, %v1621_v1  ;;  %v9738_v42 = vld [vmem:[#allocation38_spill] sm:$0xff]  ;;  %v2130_v1 = vrot.slane %v9542_v55, 1 }
 0x371   : > { %v8257_v24 = vadd.f32 %v9737_v28, %v1661_v61  ;;  %v2131_v6 = vrot.slane %v2017_v48, 1  ;;  %v2018_v28 = vmax.f32 %v1878_v52, 0.0  ;;  %v9740_v52 = vmax.f32 %v9733_v11, 0.0 }
 0x372   : > { %2955 = vmatmul.bf16.gmra.mxu2 %v2660_v41  ;;  %v9543_v53 = vmax.f32 %v8253_v58, 0.0  ;;  %v2031_v41 = vmax.f32 %v9738_v42, 0.0 }
 0x373   : > { %v2034_v0 = vmax.f32 %v8257_v24, 0.0  ;;  %v2132_v17 = vsel %vm607_vm0, %v2130_v1, %v2131_v6 }
 0x374   : > { %v2133_v23 = vrot.slane %v9543_v53, 1  ;;  %v2334_v55 = vrot.slane %v2031_v41, 1 }
 0x375   : > { %v2337_v53 = vrot.slane %v2034_v0, 1 }
 0x377   : > { %v1623_v33 = vpop.f32.mrf.mxu0  ;;  %v1882_v13 = vpop.f32.mrf.mxu1 }
 0x378   : > { %v1883_v40 = vadd.f32 %v1882_v13, %v1622_v62  ;;  %v1624_v38 = vadd.f32 %v7802_v10, %v1623_v33  ;;  %v9739_v33 = vmax.f32 %v8187_v30, 0.0 }
 0x37a   : > { %v2020_v31 = vmax.f32 %v1883_v40, 0.0 }
 0x37c   : > { %v2134_v51 = vrot.slane %v2020_v31, 1  ;;  %v5955_v61 = vpack.i.bf16 %v2020_v31, %v2017_v48  ;;  %v2206_v48 = vrot.slane %v2018_v28, 1  ;;  %v5960_v31 = vpack.i.bf16 %v9740_v52, %v9739_v33 }
 0x37d   : > { %v9742_v52 = vmax.f32 %v8103_v3, 0.0 }
 0x37e   : > { %5956 = vrot.lane.b32.xlu0 %v5955_v61, %s6175_s29  ;;  %v2135_v62 = vsel %vm607_vm0, %v2133_v23, %v2134_v51  ;;  %v2336_v23 = vsel %vm607_vm0, %v2334_v55, %v8201_v36  ;;  %v2339_v61 = vsel %vm607_vm0, %v2337_v53, %v8205_v4  ;;  %v9741_v4 = vpack.i.bf16 %v8213_v14, %v8209_v20 }
 0x37f   : > { %v1626_v13 = vpop.f32.mrf.mxu0  ;;  %v1884_v18 = vpop.f32.mrf.mxu1  ;;  %v5965_v40 = vpack.i.bf16 %v2135_v62, %v2132_v17  ;;  %v5970_v30 = vpack.i.bf16 %v2339_v61, %v2336_v23 }
 0x380   : > { %v1885_v32 = vadd.f32 %v1884_v18, %v1624_v38  ;;  %v2207_v38 = vsel %vm607_vm0, %v2131_v6, %v2206_v48 }
 0x381   : > { %5966 = vrot.lane.b32.xlu1 %v5965_v40, %s6174_s24 }
 0x382   : > { %v2021_v10 = vmax.f32 %v1885_v32, 0.0 }
 0x383   : > { %v5952_v53 = vpop.permute.xlu2 %5951 }
 0x384   : > { %v2208_v1 = vrot.slane %v2021_v10, 1  ;;  %v5954_v10 = vunpack.i.h.bf16 %v5952_v53  ;;  %v5953_v33 = vunpack.i.l.bf16 %v5952_v53 }
 0x386   : > { %5961 = vrot.lane.b32.xlu0 %v5960_v31, %s6175_s29  ;;  %v2209_v17 = vsel %vm607_vm0, %v2134_v51, %v2208_v1  ;;  %v9743_v1 = vmax.f32 %v8101_v44, 0.0 }
 0x387   : > { %v1628_v28 = vpop.f32.mrf.mxu0  ;;  %v1887_v32 = vpop.f32.mrf.mxu1  ;;  %v5975_v62 = vpack.i.bf16 %v2209_v17, %v2207_v38 }
 0x389   : > { %5976 = vrot.lane.b32.xlu2 %v5975_v62, %s6176_s30  ;;  %5971 = vrot.lane.b32.xlu1 %v5970_v30, %s6174_s24 }
 0x38f   : > { %v1631_v11 = vpop.f32.mrf.mxu0  ;;  %v1889_v18 = vpop.f32.mrf.mxu1 }
 0x390   : > { %v5942_v36 = vpop.permute.xlu0 %5941 }
 0x391   : > { %v5944_v55 = vunpack.i.h.bf16 %v5942_v36  ;;  %v5943_v40 = vunpack.i.l.bf16 %v5942_v36  ;;  %5981 = vrot.lane.b32.xlu2 %v9741_v4, %s6176_s30 }
 0x393   : > { %v5947_v6 = vpop.permute.xlu1 %5946  ;;  %v2601_v31 = vsel %vm2556_vm2, %v9742_v52, %v5944_v55  ;;  %v2600_v23 = vsel %vm2556_vm2, %v9743_v1, %v5943_v40  ;;  %v6164_v55 = vld [vmem:[%s9437_s2] ss:$0 sm:$0xff] }
 0x394   : > { %v5949_v51 = vunpack.i.h.bf16 %v5947_v6  ;;  %v5948_v48 = vunpack.i.l.bf16 %v5947_v6  ;;  %v1629_v40 = vadd.f32 %v6164_v55, %v1628_v28  ;;  %v1627_v4 = vadd.f32 %v6164_v55, %v1626_v13 }
 0x396   : > { %v2613_v61 = vsel %vm1112_vm1, %v2601_v31, %v5949_v51  ;;  %v2612_v38 = vsel %vm1112_vm1, %v2600_v23, %v5948_v48  ;;  %v1890_v53 = vadd.f32 %v1889_v18, %v1629_v40  ;;  %v9744_v51 = vld [vmem:[#allocation27_spill] sm:$0xff] }
 0x397   : > { %v1633_v20 = vpop.f32.mrf.mxu0  ;;  %v1892_v14 = vpop.f32.mrf.mxu1  ;;  %v8303_v17 = vsel %vm2581_vm3, %v2612_v38, %v5953_v33  ;;  %v8306_v62 = vsel %vm2581_vm3, %v2613_v61, %v5954_v10  ;;  %v1676_v48 = vadd.f32 %v6164_v55, %v9744_v51  ;;  %v8316_v10 = vadd.f32 %v1887_v32, %v1627_v4 }
 0x398   : > { %v2661_v3 = vpack.c.bf16 %v8306_v62, %v8303_v17  ;;  %v1634_v6 = vadd.f32 %v6164_v55, %v1633_v20  ;;  %v2023_v52 = vmax.f32 %v1890_v53, 0.0  ;;  %v9544_v32 = vmax.f32 %v7869_v63, 0.0 }
 0x399   : > { %v8321_v1 = vadd.f32 %v7905_v7, %v1676_v48  ;;  %v2022_v38 = vmax.f32 %v8316_v10, 0.0 }
 0x39a   : > { %2994 = vmatmul.bf16.gmra.mxu3 %v2661_v3  ;;  %v1632_v3 = vadd.f32 %v6164_v55, %v1631_v11  ;;  %v2137_v18 = vrot.slane %v2023_v52, 1 }
 0x39c   : > { %v1893_v20 = vadd.f32 %v1892_v14, %v1632_v3 }
 0x39f   : > { %v1636_v30 = vpop.f32.mrf.mxu0  ;;  %v1894_v36 = vpop.f32.mrf.mxu1 }
 0x3a0   : > { %v8318_v33 = vadd.f32 %v1894_v36, %v1634_v6  ;;  %v1637_v31 = vadd.f32 %v6164_v55, %v1636_v30  ;;  %v2040_v36 = vmax.f32 %v8321_v1, 0.0  ;;  %v2136_v30 = vrot.slane %v2022_v38, 1  ;;  %v9762_v1 = vld [vmem:[#allocation17_spill] sm:$0xff] }
 0x3a1   : > { %v2024_v6 = vmax.f32 %v1893_v20, 0.0  ;;  %v9745_v20 = vmax.f32 %v8114_v46, 0.0 }
 0x3a2   : > { %v2025_v13 = vmax.f32 %v8318_v33, 0.0  ;;  %v2138_v51 = vsel %vm607_vm0, %v2136_v30, %v2137_v18  ;;  %v2343_v3 = vrot.slane %v2040_v36, 1 }
 0x3a4   : > { %v2139_v7 = vrot.slane %v2025_v13, 1 }
 0x3a7   : > { %v1638_v23 = vpop.f32.mrf.mxu0  ;;  %v1897_v61 = vpop.f32.mrf.mxu1 }
 0x3a8   : > { %v1898_v28 = vadd.f32 %v1897_v61, %v1637_v31  ;;  %v1639_v11 = vadd.f32 %v6164_v55, %v1638_v23  ;;  %v2340_v61 = vrot.slane %v9544_v32, 1 }
 0x3aa   : > { %v2026_v40 = vmax.f32 %v1898_v28, 0.0 }
 0x3ac   : > { %v2140_v4 = vrot.slane %v2026_v40, 1  ;;  %v5985_v53 = vpack.i.bf16 %v2026_v40, %v2023_v52  ;;  %v2210_v52 = vrot.slane %v2024_v6, 1  ;;  %v9746_v40 = vmax.f32 %v7914_v21, 0.0 }
 0x3ae   : > { %5986 = vrot.lane.b32.xlu0 %v5985_v53, %s6175_s29  ;;  %v2141_v14 = vsel %vm607_vm0, %v2139_v7, %v2140_v4  ;;  %v5990_v30 = vpack.i.bf16 %v9746_v40, %v9745_v20  ;;  %v2342_v53 = vsel %vm607_vm0, %v2340_v61, %v8131_v26  ;;  %v9750_v40 = vpack.i.bf16 %v8147_v29, %v8143_v12 }
 0x3af   : > { %v1899_v48 = vpop.f32.mrf.mxu1  ;;  %v5995_v31 = vpack.i.bf16 %v2141_v14, %v2138_v51  ;;  %v1641_v44 = vpop.f32.mrf.mxu0  ;;  %v2345_v51 = vsel %vm607_vm0, %v2343_v3, %v8135_v57  ;;  %v9747_v14 = vld [vmem:[#allocation26_spill] sm:$0xff]  ;;  %v2045_v57 = vmax.f32 %v7977_v2, 0.0 }
 0x3b0   : > { %v1900_v28 = vadd.f32 %v1899_v48, %v1639_v11  ;;  %v1686_v32 = vadd.f32 %v6164_v55, %v9747_v14  ;;  %v2211_v11 = vsel %vm607_vm0, %v2137_v18, %v2210_v52  ;;  %v9749_v52 = vld [vmem:[#allocation30_spill] sm:$0xff] }
 0x3b1   : > { %5996 = vrot.lane.b32.xlu1 %v5995_v31, %s6174_s24  ;;  %v6000_v31 = vpack.i.bf16 %v2345_v51, %v2342_v53 }
 0x3b2   : > { %v2027_v23 = vmax.f32 %v1900_v28, 0.0  ;;  %v1947_v21 = vadd.f32 %v7955_v8, %v1686_v32  ;;  %v9748_v28 = vld [vmem:[#allocation32_spill] sm:$0xff]  ;;  %v9751_v8 = vld [vmem:[#allocation35_spill] sm:$0xff] }
 0x3b3   : > { %v9752_v32 = vld [vmem:[#allocation28_spill] sm:$0xff] }
 0x3b4   : > { %v2212_v7 = vrot.slane %v2027_v23, 1  ;;  %v2044_v61 = vmax.f32 %v1947_v21, 0.0  ;;  %v1642_v23 = vadd.f32 %v6164_v55, %v1641_v44  ;;  %v2043_v44 = vmax.f32 %v7949_v59, 0.0 }
 0x3b5   : > { %v9757_v21 = vpack.i.bf16 %v8180_v47, %v8177_v19  ;;  %v5396_v19 = vld [vmem:[%s9438_s3 + $0xb8] sm:$0xff] }
 0x3b6   : > { %5991 = vrot.lane.b32.xlu0 %v5990_v30, %s6175_s29  ;;  %v2213_v6 = vsel %vm607_vm0, %v2140_v4, %v2212_v7  ;;  %v2030_v4 = vmax.f32 %v9749_v52, 0.0  ;;  %v9753_v30 = vpack.i.bf16 %v9751_v8, %v9752_v32  ;;  %v2527_v2 = vrot.slane %v2044_v61, 1  ;;  %v5404_v47 = vld [vmem:[%s9438_s3 + $0xf8] sm:$0xff]  ;;  %3010 = vmatpush.bf16.msra.mxu2 %v5396_v19 }
 0x3b7   : > { %v1902_v48 = vpop.f32.mrf.mxu1  ;;  %v6005_v46 = vpack.i.bf16 %v2213_v6, %v2211_v11  ;;  %v1643_v26 = vpop.f32.mrf.mxu0  ;;  %v2545_v7 = vrot.slane %v2045_v57, 1  ;;  %v9758_v52 = vpack.i.bf16 %v8193_v49, %v8006_v54  ;;  %3049 = vmatpush.bf16.msra.mxu3 %v5404_v47  ;;  %v5395_v54 = vld [vmem:[%s9438_s3 + $0xb0] sm:$0xff] }
 0x3b8   : > { %v1644_v3 = vadd.f32 %v6164_v55, %v1643_v26  ;;  %v8366_v53 = vadd.f32 %v1902_v48, %v1642_v23  ;;  %v2494_v14 = vrot.slane %v2030_v4, 1  ;;  %v2526_v26 = vrot.slane %v2043_v44, 1  ;;  %v5403_v49 = vld [vmem:[%s9438_s3 + $0xf0] sm:$0xff]  ;;  %v5394_v4 = vld [vmem:[%s9438_s3 + $0xa8] sm:$0xff] }
 0x3b9   : > { %6006 = vrot.lane.b32.xlu2 %v6005_v46, %s6176_s30  ;;  %6001 = vrot.lane.b32.xlu1 %v6000_v31, %s6174_s24  ;;  %v2546_v29 = vsel %vm607_vm0, %v2527_v2, %v2545_v7  ;;  %v9754_v46 = vld [vmem:[#allocation40_spill] sm:$0xff]  ;;  %v9755_v31 = vld [vmem:[#allocation10_spill] sm:$0xff]  ;;  %v5402_v23 = vld [vmem:[%s9438_s3 + $0xe8] sm:$0xff] }
 0x3ba   : > { %v2028_v55 = vmax.f32 %v8366_v53, 0.0  ;;  %v9756_v48 = vpack.i.bf16 %v9754_v46, %v9755_v31  ;;  %3011 = vmatpush.bf16.msra.mxu2 %v5395_v54  ;;  %v9759_v31 = vmax.f32 %v8253_v58, 0.0 }
 0x3bb   : > { %3050 = vmatpush.bf16.msra.mxu3 %v5403_v49 }
 0x3be   : > { %6016 = vrot.lane.b32.xlu0 %v9748_v28, %s6175_s29  ;;  %v2528_v28 = vsel %vm607_vm0, %v2526_v26, %v2527_v2  ;;  %3012 = vmatpush.bf16.msra.mxu2 %v5394_v4 }
 0x3bf   : > { %v1904_v18 = vpop.f32.mrf.mxu1  ;;  %3051 = vmatpush.bf16.msra.mxu3 %v5402_v23 }
 0x3c0   : > { %v1905_v20 = vadd.f32 %v1904_v18, %v1644_v3 }
 0x3c1   : > { %6011 = vrot.lane.b32.xlu2 %v9750_v40, %s6176_s30  ;;  %6021 = vrot.lane.b32.xlu1 %v9753_v30, %s6174_s24 }
 0x3c2   : > { %v2029_v51 = vmax.f32 %v1905_v20, 0.0  ;;  %v8415_v20 = vpop.f32.mrf.mxu3 }
 0x3c4   : > { %v2476_v11 = vrot.slane %v2029_v51, 1  ;;  %v6045_v57 = vpack.i.bf16 %v2044_v61, %v2029_v51  ;;  %v8401_v61 = vpop.f32.mrf.mxu2 }
 0x3c6   : > { %6031 = vrot.lane.b32.xlu0 %v8170_v9, %s6175_s29  ;;  %v2495_v12 = vsel %vm607_vm0, %v2476_v11, %v2494_v14  ;;  %v2475_v9 = vrot.slane %v2028_v55, 1 }
 0x3c7   : > { %v6055_v6 = vpack.i.bf16 %v2546_v29, %v2495_v12 }
 0x3c8   : > { %v2477_v3 = vsel %vm607_vm0, %v2475_v9, %v2476_v11 }
 0x3c9   : > { %6026 = vrot.lane.b32.xlu2 %v9756_v48, %s6176_s30  ;;  %6036 = vrot.lane.b32.xlu1 %v9757_v21, %s6174_s24  ;;  %v6050_v18 = vpack.i.bf16 %v2528_v28, %v2477_v3  ;;  %v9760_v21 = vmax.f32 %v8251_v37, 0.0 }
 0x3cc   : > { %v2951_v40 = vpop.f32.mrf.mxu2 }
 0x3cd   : > { %v2952_v8 = vadd.f32 %v8017_v16, %v2951_v40 }
 0x3ce   : > { %6046 = vrot.lane.b32.xlu0 %v6045_v57, %s6175_s29  ;;  %s389_s29 = scalar_lea.vmem %s9446_s11, %s4631_s12 }
 0x3d1   : > { %6041 = vrot.lane.b32.xlu2 %v9758_v52, %s6176_s30  ;;  %6051 = vrot.lane.b32.xlu1 %v6050_v18, %s6174_s24 }
 0x3d9   : > { %6056 = vrot.lane.b32.xlu2 %v6055_v6, %s6176_s30 }
 0x3e3   : > { %v5977_v2 = vpop.permute.xlu2 %5976 }
 0x3e4   : > { %v5979_v6 = vunpack.i.h.bf16 %v5977_v2  ;;  %v5978_v46 = vunpack.i.l.bf16 %v5977_v2 }
 0x3eb   : > { %v5982_v47 = vpop.permute.xlu2 %5981 }
 0x3ec   : > { %v5984_v4 = vunpack.i.h.bf16 %v5982_v47  ;;  %v5983_v23 = vunpack.i.l.bf16 %v5982_v47 }
 0x3ed   : > { %v2990_v32 = vpop.f32.mrf.mxu3 }
 0x3ee   : > { %v8418_v30 = vadd.f32 %v2990_v32, %v2952_v8 }
 0x3f0   : > { %v5957_v7 = vpop.permute.xlu0 %5956 }
 0x3f1   : > { %v5959_v51 = vunpack.i.h.bf16 %v5957_v7  ;;  %v5958_v14 = vunpack.i.l.bf16 %v5957_v7  ;;  %v5393_v7 = vld [vmem:[%s9438_s3 + $0xa0] sm:$0xff] }
 0x3f2   : > { %3013 = vmatpush.bf16.msra.mxu2 %v5393_v7 }
 0x3f3   : > { %v5967_v11 = vpop.permute.xlu1 %5966  ;;  %v2566_v48 = vsel %vm2556_vm2, %v9759_v31, %v5959_v51  ;;  %v2565_v26 = vsel %vm2556_vm2, %v9760_v21, %v5958_v14  ;;  %v5401_v51 = vld [vmem:[%s9438_s3 + $0xe0] sm:$0xff]  ;;  %v5400_v14 = vld [vmem:[%s9438_s3 + $0xd8] sm:$0xff]  ;;  %v5399_v31 = vld [vmem:[%s9438_s3 + $0xd0] sm:$0xff] }
 0x3f4   : > { %v5969_v12 = vunpack.i.h.bf16 %v5967_v11  ;;  %v5968_v29 = vunpack.i.l.bf16 %v5967_v11  ;;  %3052 = vmatpush.bf16.msra.mxu3 %v5401_v51  ;;  %v5391_v11 = vld [vmem:[%s9438_s3 + $0x90] sm:$0xff]  ;;  %v5398_v21 = vld [vmem:[%s9438_s3 + $0xc8] sm:$0xff] }
 0x3f6   : > { %v2578_v9 = vsel %vm1112_vm1, %v2566_v48, %v5969_v12  ;;  %v2577_v57 = vsel %vm1112_vm1, %v2565_v26, %v5968_v29  ;;  %v8461_v12 = vpop.f32.mrf.mxu2  ;;  %v5390_v29 = vld [vmem:[%s9438_s3 + $0x88] sm:$0xff] }
 0x3f7   : > { %v2590_v3 = vsel %vm2581_vm3, %v2577_v57, %v5978_v46  ;;  %v8430_v28 = vsel %vm2581_vm3, %v2578_v9, %v5979_v6  ;;  %v8466_v6 = vpop.f32.mrf.mxu3  ;;  %v5389_v46 = vld [vmem:[%s9438_s3 + $0x80] sm:$0xff] }
 0x3f8   : > { %v5962_v18 = vpop.permute.xlu0 %5961  ;;  %v2664_v52 = vpack.c.bf16 %v8430_v28, %v2590_v3  ;;  %3053 = vmatpush.bf16.msra.mxu3 %v5400_v14  ;;  %v5397_v3 = vld [vmem:[%s9438_s3 + $0xc0] sm:$0xff] }
 0x3f9   : > { %v5964_v19 = vunpack.i.h.bf16 %v5962_v18  ;;  %v5963_v58 = vunpack.i.l.bf16 %v5962_v18 }
 0x3fa   : > { %2960 = vmatmul.bf16.gmra.mxu2 %v2664_v52 }
 0x3fb   : > { %v5972_v54 = vpop.permute.xlu1 %5971  ;;  %v2603_v40 = vsel %vm2556_vm2, %v2034_v0, %v5964_v19  ;;  %v2602_v8 = vsel %vm2556_vm2, %v2031_v41, %v5963_v58  ;;  %v5392_v41 = vld [vmem:[%s9438_s3 + $0x98] sm:$0xff] }
 0x3fc   : > { %v5974_v37 = vunpack.i.h.bf16 %v5972_v54  ;;  %v5973_v49 = vunpack.i.l.bf16 %v5972_v54  ;;  %3014 = vmatpush.bf16.msra.mxu2 %v5392_v41  ;;  %3054 = vmatpush.bf16.msra.mxu3 %v5399_v31 }
 0x3fe   : > { %v2615_v32 = vsel %vm1112_vm1, %v2603_v40, %v5974_v37  ;;  %v2614_v2 = vsel %vm1112_vm1, %v2602_v8, %v5973_v49  ;;  %v2956_v48 = vpop.f32.mrf.mxu2 }
 0x3ff   : > { %v2626_v24 = vsel %vm2581_vm3, %v2614_v2, %v5983_v23  ;;  %v8449_v0 = vsel %vm2581_vm3, %v2615_v32, %v5984_v4  ;;  %v2957_v26 = vadd.f32 %v8017_v16, %v2956_v48 }
 0x400   : > { %v2665_v42 = vpack.c.bf16 %v8449_v0, %v2626_v24  ;;  %3015 = vmatpush.bf16.msra.mxu2 %v5391_v11  ;;  %3055 = vmatpush.bf16.msra.mxu3 %v5398_v21 }
 0x402   : > { %2999 = vmatmul.bf16.gmra.mxu3 %v2665_v42 }
 0x404   : > { %3016 = vmatpush.bf16.msra.mxu2 %v5390_v29  ;;  %3056 = vmatpush.bf16.msra.mxu3 %v5397_v3 }
 0x408   : > { %3017 = vmatpush.bf16.msra.mxu2 %v5389_v46  ;;  %v9761_v46 = vmax.f32 %v7869_v63, 0.0 }
 0x413   : > { %v6007_v18 = vpop.permute.xlu2 %6006 }
 0x414   : > { %v6009_v49 = vunpack.i.h.bf16 %v6007_v18  ;;  %v6008_v4 = vunpack.i.l.bf16 %v6007_v18 }
 0x41d   : > { %v2995_v9 = vpop.f32.mrf.mxu3 }
 0x41e   : > { %v8478_v57 = vadd.f32 %v2995_v9, %v2957_v26 }
 0x420   : > { %v5987_v52 = vpop.permute.xlu0 %5986 }
 0x421   : > { %v5989_v19 = vunpack.i.h.bf16 %v5987_v52  ;;  %v5988_v58 = vunpack.i.l.bf16 %v5987_v52 }
 0x423   : > { %v5997_v47 = vpop.permute.xlu1 %5996  ;;  %v2568_v16 = vsel %vm2556_vm2, %v2025_v13, %v5989_v19  ;;  %v2567_v23 = vsel %vm2556_vm2, %v2022_v38, %v5988_v58  ;;  %v6012_v38 = vpop.permute.xlu2 %6011 }
 0x424   : > { %v5999_v54 = vunpack.i.h.bf16 %v5997_v47  ;;  %v5998_v37 = vunpack.i.l.bf16 %v5997_v47  ;;  %v6014_v14 = vunpack.i.h.bf16 %v6012_v38  ;;  %v6013_v11 = vunpack.i.l.bf16 %v6012_v38 }
 0x426   : > { %v2580_v40 = vsel %vm1112_vm1, %v2568_v16, %v5999_v54  ;;  %v2579_v8 = vsel %vm1112_vm1, %v2567_v23, %v5998_v37  ;;  %v9763_v54 = vld [vmem:[#allocation2_spill] sm:$0xff]  ;;  %v9765_v16 = vpack.c.bf16 %v7927_v22, %v7841_v25  ;;  %v2658_v22 = vpack.c.bf16 %v8239_v60, %v8039_v34 }
 0x427   : > { %v8492_v32 = vsel %vm2581_vm3, %v2579_v8, %v6008_v4  ;;  %v8495_v2 = vsel %vm2581_vm3, %v2580_v40, %v6009_v49  ;;  %v9764_v37 = vmax.f32 %v9763_v54, 0.0 }
 0x428   : > { %v5992_v7 = vpop.permute.xlu0 %5991  ;;  %v2668_v33 = vpack.c.bf16 %v8495_v2, %v8492_v32  ;;  %v2666_v13 = vpack.c.bf16 %v8492_v32, %v8430_v28  ;;  %v8563_v28 = vld [vmem:[%s9439_s4] ss:$0 sm:$0xff] }
 0x429   : > { %v5994_v10 = vunpack.i.h.bf16 %v5992_v7  ;;  %v5993_v51 = vunpack.i.l.bf16 %v5992_v7  ;;  %v9766_v7 = vld [vmem:[#allocation31_spill] sm:$0xff] }
 0x42a   : > { %2965 = vmatmul.bf16.gmra.mxu2 %v2668_v33  ;;  %v9767_v33 = vmax.f32 %v9766_v7, 0.0 }
 0x42b   : > { %v6002_v24 = vpop.permute.xlu1 %6001  ;;  %v2605_v29 = vsel %vm2556_vm2, %v2040_v36, %v5994_v10  ;;  %v2604_v31 = vsel %vm2556_vm2, %v9761_v46, %v5993_v51  ;;  %v2650_v36 = vpack.c.bf16 %v7860_v39, %v9762_v1  ;;  %v6027_v47 = vpop.permute.xlu2 %6026 }
 0x42c   : > { %v6004_v42 = vunpack.i.h.bf16 %v6002_v24  ;;  %v6003_v41 = vunpack.i.l.bf16 %v6002_v24  ;;  %v6029_v38 = vunpack.i.h.bf16 %v6027_v47 }
 0x42e   : > { %v2617_v48 = vsel %vm1112_vm1, %v2605_v29, %v6004_v42  ;;  %v2616_v21 = vsel %vm1112_vm1, %v2604_v31, %v6003_v41  ;;  %v9768_v29 = vmax.f32 %v7986_v27, 0.0 }
 0x42f   : > { %v2628_v26 = vsel %vm2581_vm3, %v2616_v21, %v6013_v11  ;;  %v8511_v9 = vsel %vm2581_vm3, %v2617_v48, %v6014_v14  ;;  %v9769_v48 = vpack.c.bf16 %v8303_v17, %v8227_v45  ;;  %v8549_v17 = vpop.f32.mrf.mxu2 }
 0x430   : > { %v2669_v3 = vpack.c.bf16 %v8511_v9, %v2628_v26  ;;  %v2667_v18 = vpack.c.bf16 %v2628_v26, %v8449_v0  ;;  %v6017_v63 = vpop.permute.xlu0 %6016  ;;  %v6028_v0 = vunpack.i.l.bf16 %v6027_v47 }
 0x431   : > { %v6018_v19 = vunpack.i.l.bf16 %v6017_v63  ;;  %v6019_v23 = vunpack.i.h.bf16 %v6017_v63 }
 0x432   : > { %3004 = vmatmul.bf16.gmra.mxu3 %v2669_v3  ;;  %v9770_v3 = vmax.f32 %v8154_v15, 0.0  ;;  %v8554_v15 = vpop.f32.mrf.mxu3 }
 0x433   : > { %v6022_v52 = vpop.permute.xlu1 %6021  ;;  %v2630_v49 = vsel %vm2556_vm2, %v9764_v37, %v6018_v19  ;;  %v2639_v10 = vsel %vm2556_vm2, %v9767_v33, %v6019_v23  ;;  %v6042_v11 = vpop.permute.xlu2 %6041 }
 0x434   : > { %v6023_v58 = vunpack.i.l.bf16 %v6022_v52  ;;  %v6024_v40 = vunpack.i.h.bf16 %v6022_v52 }
 0x436   : > { %v2633_v4 = vsel %vm1112_vm1, %v2630_v49, %v6023_v58  ;;  %v2642_v51 = vsel %vm1112_vm1, %v2639_v10, %v6024_v40 }
 0x437   : > { %v2636_v39 = vsel %vm2581_vm3, %v2633_v4, %v6028_v0  ;;  %v2645_v24 = vsel %vm2581_vm3, %v2642_v51, %v6029_v38 }
 0x438   : > { %v2654_v8 = vpack.c.bf16 %v2636_v39, %v7863_v43  ;;  %v2655_v25 = vpack.c.bf16 %v2645_v24, %v7930_v35  ;;  %v6032_v42 = vpop.permute.xlu0 %6031  ;;  %v6043_v35 = vunpack.i.l.bf16 %v6042_v11 }
 0x439   : > { %v6033_v43 = vunpack.i.l.bf16 %v6032_v42  ;;  %v6034_v21 = vunpack.i.h.bf16 %v6032_v42 }
 0x43a   : > { %3018 = vmatmul.bf16.vlgmr.msra.gmra.mxu2 %v2650_v36  ;;  %v6044_v36 = vunpack.i.h.bf16 %v6042_v11 }
 0x43b   : > { %v6037_v41 = vpop.permute.xlu1 %6036  ;;  %v2631_v46 = vsel %vm2556_vm2, %v9768_v29, %v6033_v43  ;;  %v2640_v1 = vsel %vm2556_vm2, %v9770_v3, %v6034_v21  ;;  %v6057_v47 = vpop.permute.xlu2 %6056 }
 0x43c   : > { %v6038_v14 = vunpack.i.l.bf16 %v6037_v41  ;;  %v6039_v60 = vunpack.i.h.bf16 %v6037_v41  ;;  %v6058_v49 = vunpack.i.l.bf16 %v6057_v47  ;;  %v6059_v39 = vunpack.i.h.bf16 %v6057_v47  ;;  %v9771_v41 = vld [vmem:[#allocation41_spill] sm:$0xff] }
 0x43e   : > { %v2634_v31 = vsel %vm1112_vm1, %v2631_v46, %v6038_v14  ;;  %v2643_v27 = vsel %vm1112_vm1, %v2640_v1, %v6039_v60  ;;  %v9772_v60 = vld [vmem:[#allocation42_spill] sm:$0xff] }
 0x43f   : > { %v2637_v34 = vsel %vm2581_vm3, %v2634_v31, %v6043_v35  ;;  %v2646_v63 = vsel %vm2581_vm3, %v2643_v27, %v6044_v36 }
 0x440   : > { %v2662_v26 = vpack.c.bf16 %v2637_v34, %v8242_v50  ;;  %v2663_v45 = vpack.c.bf16 %v2646_v63, %v8306_v62  ;;  %v6047_v52 = vpop.permute.xlu0 %6046 }
 0x441   : > { %v6048_v19 = vunpack.i.l.bf16 %v6047_v52 }
 0x442   : > { %3057 = vmatmul.bf16.vlgmr.msra.gmra.mxu3 %v9765_v16 }
 0x443   : > { %v6052_v50 = vpop.permute.xlu1 %6051  ;;  %v2632_v54 = vsel %vm2556_vm2, %v2028_v55, %v6048_v19  ;;  %v2954_v19 = vadd.f32 %v8563_v28, %v8461_v12 }
 0x444   : > { %v6053_v58 = vunpack.i.l.bf16 %v6052_v50  ;;  %v6054_v0 = vunpack.i.h.bf16 %v6052_v50 }
 0x445   : > { %v2993_v47 = vadd.f32 %v8466_v6, %v2954_v19 }
 0x446   : > { %v2635_v62 = vsel %vm1112_vm1, %v2632_v54, %v6053_v58 }
 0x447   : > { %v2638_v16 = vsel %vm2581_vm3, %v2635_v62, %v6058_v49 }
 0x448   : > { %v2670_v55 = vpack.c.bf16 %v2638_v16, %v8495_v2  ;;  %v2949_v16 = vadd.f32 %v8563_v28, %v8401_v61 }
 0x44a   : > { %3023 = vmatmul.bf16.gmra.mxu2 %v2654_v8 }
 0x452   : > { %3062 = vmatmul.bf16.gmra.mxu3 %v2655_v25 }
 0x45a   : > { %3028 = vmatmul.bf16.gmra.mxu2 %v2658_v22 }
 0x462   : > { %3067 = vmatmul.bf16.gmra.mxu3 %v9769_v48 }
 0x46a   : > { %3033 = vmatmul.bf16.gmra.mxu2 %v2662_v26 }
 0x472   : > { %3072 = vmatmul.bf16.gmra.mxu3 %v2663_v45 }
 0x47a   : > { %3038 = vmatmul.bf16.gmra.mxu2 %v2666_v13  ;;  %v6049_v13 = vunpack.i.h.bf16 %v6047_v52 }
 0x47d   : > { %v2961_v37 = vpop.f32.mrf.mxu2 }
 0x47e   : > { %v2962_v32 = vadd.f32 %v8563_v28, %v2961_v37 }
 0x482   : > { %3077 = vmatmul.bf16.gmra.mxu3 %v2667_v18  ;;  %v2641_v18 = vsel %vm2556_vm2, %v2043_v44, %v6049_v13 }
 0x483   : > { %v2644_v23 = vsel %vm1112_vm1, %v2641_v18, %v6054_v0 }
 0x484   : > { %v2647_v40 = vsel %vm2581_vm3, %v2644_v23, %v6059_v39 }
 0x485   : > { %v3000_v4 = vpop.f32.mrf.mxu3  ;;  %v2671_v8 = vpack.c.bf16 %v2647_v40, %v8511_v9  ;;  %v8576_v7 = vpop.f32.mrf.mxu2  ;;  %v2944_v9 = vadd.f32 %v8563_v28, %v8066_v56 }
 0x486   : > { %v8567_v53 = vadd.f32 %v3000_v4, %v2962_v32 }
 0x487   : > { %v2983_v43 = vadd.f32 %v9771_v41, %v2944_v9 }
 0x48a   : > { %3043 = vmatmul.bf16.gmra.mxu2 %v2670_v55 }
 0x48d   : > { %v8578_v33 = vpop.f32.mrf.mxu3 }
 0x492   : > { %3082 = vmatmul.bf16.gmra.mxu3 %v2671_v8 }
 0x4ad   : > { %v2966_v10 = vpop.f32.mrf.mxu2 }
 0x4ae   : > { %v2967_v2 = vadd.f32 %v8563_v28, %v2966_v10 }
 0x4b5   : > { %v8581_v51 = vpop.f32.mrf.mxu2  ;;  %v3005_v59 = vpop.f32.mrf.mxu3 }
 0x4b6   : > { %v8583_v44 = vadd.f32 %v3005_v59, %v2967_v2 }
 0x4bd   : > { %v8585_v38 = vpop.f32.mrf.mxu3  ;;  %v3019_v24 = vpop.f32.mrf.mxu2 }
 0x4be   : > { %v3020_v42 = vadd.f32 %v3019_v24, %v8027_v5 }
 0x4c5   : > { %v3021_v25 = vpop.f32.mrf.mxu2  ;;  %v3058_v22 = vpop.f32.mrf.mxu3 }
 0x4c6   : > { %v3059_v14 = vadd.f32 %v3058_v22, %v3020_v42  ;;  %v3022_v11 = vadd.f32 %v3021_v25, %v2983_v43 }
 0x4c8   : > { %v8591_v31 = vmax.f32 %v3059_v14, 0.0  ;;  %v5411_v14 = vld [vmem:[%s9440_s5 + $0x30] sm:$0xff] }
 0x4ca   : > { %v3106_v21 = vrot.slane %v8591_v31, 1 }
 0x4cd   : > { %v3024_v29 = vpop.f32.mrf.mxu2  ;;  %v3060_v46 = vpop.f32.mrf.mxu3 }
 0x4ce   : > { %v3061_v48 = vadd.f32 %v3060_v46, %v3022_v11  ;;  %v3025_v26 = vadd.f32 %v3024_v29, %v9772_v60 }
 0x4d0   : > { %v8593_v35 = vmax.f32 %v3061_v48, 0.0  ;;  %v2964_v48 = vadd.f32 %v8563_v28, %v8576_v7  ;;  %v2959_v7 = vadd.f32 %v8563_v28, %v8549_v17 }
 0x4d2   : > { %v3108_v34 = vrot.slane %v8593_v35, 1  ;;  %v3003_v60 = vadd.f32 %v8578_v33, %v2964_v48  ;;  %v5409_v33 = vld [vmem:[%s9440_s5 + $0x20] sm:$0xff]  ;;  %v5415_v48 = vld [vmem:[%s9440_s5 + $0x50] sm:$0xff] }
 0x4d4   : > { %v6060_v5 = vpack.i.bf16 %v3108_v34, %v3106_v21 }
 0x4d5   : > { %v3026_v56 = vpop.f32.mrf.mxu2  ;;  %v3063_v3 = vpop.f32.mrf.mxu3 }
 0x4d6   : > { %v3064_v1 = vadd.f32 %v3063_v3, %v3025_v26  ;;  %6061 = vrot.lane.b32.xlu0 %v6060_v5, %s6174_s24 }
 0x4d8   : > { %v8601_v27 = vmax.f32 %v3064_v1, 0.0 }
 0x4da   : > { %v6075_v36 = vpack.i.bf16 %v8601_v27, %v8593_v35  ;;  %v3188_v61 = vrot.slane %v8601_v27, 2  ;;  %v3176_v43 = vrot.slane %v8601_v27, 1 }
 0x4dd   : > { %v3029_v63 = vpop.f32.mrf.mxu2  ;;  %v3065_v45 = vpop.f32.mrf.mxu3 }
 0x4de   : > { %6076 = vrot.lane.b32.xlu0 %v6075_v36, %s6174_s24  ;;  %v3030_v58 = vadd.f32 %v3029_v63, %v8418_v30  ;;  %v2988_v30 = vadd.f32 %v8415_v20, %v2949_v16  ;;  %v5412_v20 = vld [vmem:[%s9440_s5 + $0x38] sm:$0xff]  ;;  %v5410_v36 = vld [vmem:[%s9440_s5 + $0x28] sm:$0xff] }
 0x4df   : > { %3591 = vmatpush.bf16.msrb.mxu2 %v5412_v20  ;;  %v5420_v63 = vld [vmem:[%s9440_s5 + $0x78] sm:$0xff] }
 0x4e0   : > { %v3027_v39 = vadd.f32 %v3026_v56, %v2988_v30  ;;  %3615 = vmatpush.bf16.msrb.mxu3 %v5420_v63  ;;  %v2969_v30 = vadd.f32 %v8563_v28, %v8581_v51  ;;  %v5416_v28 = vld [vmem:[%s9440_s5 + $0x58] sm:$0xff] }
 0x4e2   : > { %v3066_v8 = vadd.f32 %v3065_v45, %v3027_v39  ;;  %v5419_v45 = vld [vmem:[%s9440_s5 + $0x70] sm:$0xff] }
 0x4e3   : > { %3592 = vmatpush.bf16.msrb.mxu2 %v5411_v14 }
 0x4e4   : > { %v8632_v24 = vmax.f32 %v3066_v8, 0.0  ;;  %3616 = vmatpush.bf16.msrb.mxu3 %v5419_v45 }
 0x4e5   : > { %v3031_v52 = vpop.f32.mrf.mxu2  ;;  %v3068_v50 = vpop.f32.mrf.mxu3 }
 0x4e6   : > { %v3069_v54 = vadd.f32 %v3068_v50, %v3030_v58  ;;  %v3032_v37 = vadd.f32 %v3031_v52, %v2993_v47  ;;  %v3215_v41 = vrot.slane %v8632_v24, 1  ;;  %v2998_v50 = vadd.f32 %v8554_v15, %v2959_v7  ;;  %v5418_v15 = vld [vmem:[%s9440_s5 + $0x68] sm:$0xff] }
 0x4e7   : > { %3593 = vmatpush.bf16.msrb.mxu2 %v5410_v36 }
 0x4e8   : > { %v8610_v32 = vmax.f32 %v3069_v54, 0.0  ;;  %v6105_v11 = vpack.i.bf16 %v3215_v41, %v3176_v43  ;;  %3617 = vmatpush.bf16.msrb.mxu3 %v5418_v15  ;;  %v5426_v15 = vld [vmem:[%s9440_s5 + $0xa8] sm:$0xff] }
 0x4ea   : > { %v3110_v0 = vrot.slane %v8610_v32, 1 }
 0x4eb   : > { %3594 = vmatpush.bf16.msrb.mxu2 %v5409_v33  ;;  %v5428_v33 = vld [vmem:[%s9440_s5 + $0xb8] sm:$0xff] }
 0x4ed   : > { %v3034_v62 = vpop.f32.mrf.mxu2  ;;  %v3070_v49 = vpop.f32.mrf.mxu3 }
 0x4ee   : > { %v3071_v13 = vadd.f32 %v3070_v49, %v3032_v37  ;;  %v3035_v6 = vadd.f32 %v3034_v62, %v8478_v57  ;;  %v3139_v57 = vrot.slane %v8593_v35, 2  ;;  %v5408_v37 = vld [vmem:[%s9440_s5 + $0x18] sm:$0xff] }
 0x4ef   : > { %3595 = vmatpush.bf16.msrb.mxu2 %v5408_v37 }
 0x4f0   : > { %v8612_v4 = vmax.f32 %v3071_v13, 0.0  ;;  %v6080_v25 = vpack.i.bf16 %v3188_v61, %v3139_v57 }
 0x4f2   : > { %v3112_v12 = vrot.slane %v8612_v4, 1  ;;  %v3143_v2 = vrot.slane %v8612_v4, 2 }
 0x4f4   : > { %v6065_v55 = vpack.i.bf16 %v3112_v12, %v3110_v0  ;;  %v5417_v0 = vld [vmem:[%s9440_s5 + $0x60] sm:$0xff] }
 0x4f5   : > { %v3036_v18 = vpop.f32.mrf.mxu2  ;;  %v3073_v23 = vpop.f32.mrf.mxu3  ;;  %3618 = vmatpush.bf16.msrb.mxu3 %v5417_v0  ;;  %v5435_v0 = vld [vmem:[%s9440_s5 + $0xf0] sm:$0xff] }
 0x4f6   : > { %v3074_v40 = vadd.f32 %v3073_v23, %v3035_v6  ;;  %6066 = vrot.lane.b32.xlu1 %v6065_v55, %s6174_s24  ;;  %v3037_v17 = vadd.f32 %v3036_v18, %v2998_v50  ;;  %v3008_v23 = vadd.f32 %v8585_v38, %v2969_v30 }
 0x4f8   : > { %v8623_v10 = vmax.f32 %v3074_v40, 0.0  ;;  %v5406_v40 = vld [vmem:[%s9440_s5 + $0x8] sm:$0xff] }
 0x4f9   : > { %3619 = vmatpush.bf16.msrb.mxu3 %v5416_v28  ;;  %v5433_v28 = vld [vmem:[%s9440_s5 + $0xe0] sm:$0xff] }
 0x4fa   : > { %v3190_v59 = vrot.slane %v8623_v10, 2  ;;  %v6085_v39 = vpack.i.bf16 %v8623_v10, %v8612_v4 }
 0x4fc   : > { %v6090_v22 = vpack.i.bf16 %v3190_v59, %v3143_v2 }
 0x4fd   : > { %v3039_v9 = vpop.f32.mrf.mxu2  ;;  %v3075_v42 = vpop.f32.mrf.mxu3  ;;  %3620 = vmatpush.bf16.msrb.mxu3 %v5415_v48 }
 0x4fe   : > { %6081 = vrot.lane.b32.xlu1 %v6080_v25, %s6174_s24  ;;  %6091 = vrot.lane.b32.xlu0 %v6090_v22, %s6174_s24  ;;  %v3040_v21 = vadd.f32 %v3039_v9, %v8567_v53  ;;  %v3076_v49 = vadd.f32 %v3075_v42, %v3037_v17  ;;  %v3178_v25 = vrot.slane %v8623_v10, 1  ;;  %v5427_v17 = vld [vmem:[%s9440_s5 + $0xb0] sm:$0xff] }
 0x500   : > { %v8697_v6 = vmax.f32 %v3076_v49, 0.0  ;;  %v5436_v49 = vld [vmem:[%s9440_s5 + $0xf8] sm:$0xff] }
 0x502   : > { %v3217_v38 = vrot.slane %v8697_v6, 1 }
 0x504   : > { %v6110_v9 = vpack.i.bf16 %v3217_v38, %v3178_v25  ;;  %v5432_v38 = vld [vmem:[%s9440_s5 + $0xd8] sm:$0xff] }
 0x505   : > { %v3078_v29 = vpop.f32.mrf.mxu3  ;;  %v3041_v46 = vpop.f32.mrf.mxu2 }
 0x506   : > { %6106 = vrot.lane.b32.xlu0 %v6105_v11, %s6174_s24  ;;  %v3079_v26 = vadd.f32 %v3078_v29, %v3040_v21  ;;  %v3042_v5 = vadd.f32 %v3041_v46, %v3003_v60  ;;  %v5405_v46 = vld [vmem:[%s9440_s5] sm:$0xff]  ;;  %v5414_v60 = vld [vmem:[%s9440_s5 + $0x48] sm:$0xff] }
 0x507   : > { %3621 = vmatpush.bf16.msrb.mxu3 %v5414_v60 }
 0x508   : > { %v8656_v3 = vmax.f32 %v3079_v26, 0.0  ;;  %v5413_v26 = vld [vmem:[%s9440_s5 + $0x40] sm:$0xff] }
 0x50a   : > { %v3114_v19 = vrot.slane %v8656_v3, 1 }
 0x50b   : > { %3622 = vmatpush.bf16.msrb.mxu3 %v5413_v26 }
 0x50d   : > { %v3080_v56 = vpop.f32.mrf.mxu3  ;;  %v3044_v52 = vpop.f32.mrf.mxu2 }
 0x50e   : > { %v3081_v1 = vadd.f32 %v3080_v56, %v3042_v5  ;;  %v3045_v47 = vadd.f32 %v3044_v52, %v8583_v44  ;;  %v5407_v44 = vld [vmem:[%s9440_s5 + $0x10] sm:$0xff]  ;;  %v3137_v52 = vrot.slane %v8591_v31, 2 }
 0x50f   : > { %3596 = vmatpush.bf16.msrb.mxu2 %v5407_v44  ;;  %3663 = vmatpush.bf16.msra.mxu3 %v5436_v49 }
 0x510   : > { %v8666_v53 = vmax.f32 %v3081_v1, 0.0 }
 0x512   : > { %v3116_v58 = vrot.slane %v8666_v53, 1  ;;  %v3147_v42 = vrot.slane %v8666_v53, 2 }
 0x513   : > { %3597 = vmatpush.bf16.msrb.mxu2 %v5406_v40  ;;  %3664 = vmatpush.bf16.msra.mxu3 %v5435_v0 }
 0x514   : > { %v6070_v54 = vpack.i.bf16 %v3116_v58, %v3114_v19 }
 0x515   : > { %v3083_v62 = vpop.f32.mrf.mxu3  ;;  %v3046_v18 = vpop.f32.mrf.mxu2 }
 0x516   : > { %v3084_v13 = vadd.f32 %v3083_v62, %v3045_v47  ;;  %6071 = vrot.lane.b32.xlu2 %v6070_v54, %s6174_s24  ;;  %v3047_v51 = vadd.f32 %v3046_v18, %v3008_v23  ;;  %v5424_v62 = vld [vmem:[%s9440_s5 + $0x98] sm:$0xff]  ;;  %v5421_v18 = vld [vmem:[%s9440_s5 + $0x80] sm:$0xff]  ;;  %v5434_v23 = vld [vmem:[%s9440_s5 + $0xe8] sm:$0xff] }
 0x517   : > { %3598 = vmatpush.bf16.msrb.mxu2 %v5405_v46  ;;  %3665 = vmatpush.bf16.msra.mxu3 %v5434_v23 }
 0x518   : > { %v8687_v16 = vmax.f32 %v3084_v13, 0.0  ;;  %v5422_v13 = vld [vmem:[%s9440_s5 + $0x88] sm:$0xff] }
 0x51a   : > { %v6095_v55 = vpack.i.bf16 %v8687_v16, %v8666_v53  ;;  %v3192_v22 = vrot.slane %v8687_v16, 2  ;;  %v3180_v29 = vrot.slane %v8687_v16, 1 }
 0x51b   : > { %3639 = vmatpush.bf16.msra.mxu2 %v5428_v33  ;;  %3666 = vmatpush.bf16.msra.mxu3 %v5433_v28  ;;  %v5440_v33 = vld [vmem:[%s9440_s5 + $0x118] sm:$0xff] }
 0x51c   : > { %6096 = vrot.lane.b32.xlu1 %v6095_v55, %s6174_s24  ;;  %v6100_v14 = vpack.i.bf16 %v3192_v22, %v3147_v42 }
 0x51d   : > { %v3085_v8 = vpop.f32.mrf.mxu3 }
 0x51e   : > { %6086 = vrot.lane.b32.xlu2 %v6085_v39, %s6174_s24  ;;  %v3086_v20 = vadd.f32 %v3085_v8, %v3047_v51 }
 0x51f   : > { %3640 = vmatpush.bf16.msra.mxu2 %v5427_v17  ;;  %3667 = vmatpush.bf16.msra.mxu3 %v5432_v38 }
 0x520   : > { %v8718_v41 = vmax.f32 %v3086_v20, 0.0 }
 0x522   : > { %v3219_v11 = vrot.slane %v8718_v41, 1 }
 0x523   : > { %3641 = vmatpush.bf16.msra.mxu2 %v5426_v15 }
 0x524   : > { %6111 = vrot.lane.b32.xlu1 %v6110_v9, %s6174_s24  ;;  %v6115_v21 = vpack.i.bf16 %v3219_v11, %v3180_v29  ;;  %v3141_v11 = vrot.slane %v8610_v32, 2 }
 0x526   : > { %6101 = vrot.lane.b32.xlu2 %v6100_v14, %s6174_s24  ;;  %v5431_v14 = vld [vmem:[%s9440_s5 + $0xd0] sm:$0xff] }
 0x527   : > { %3668 = vmatpush.bf16.msra.mxu3 %v5431_v14 }
 0x52e   : > { %6116 = vrot.lane.b32.xlu2 %v6115_v21, %s6174_s24 }
 0x548   : > { %v6062_v5 = vpop.permute.xlu0 %6061 }
 0x549   : > { %v6064_v56 = vunpack.i.h.bf16 %v6062_v5  ;;  %v6063_v1 = vunpack.i.l.bf16 %v6062_v5 }
 0x54b   : > { %v3252_v36 = vsel %vm1112_vm1, %v8593_v35, %v6064_v56  ;;  %v3251_v63 = vsel %vm1112_vm1, %v8591_v31, %v6063_v1  ;;  %v5425_v31 = vld [vmem:[%s9440_s5 + $0xa0] sm:$0xff] }
 0x54c   : > { %v3275_v7 = vpack.c.bf16 %v3252_v36, %v3251_v63  ;;  %3642 = vmatpush.bf16.msra.mxu2 %v5425_v31  ;;  %v5429_v63 = vld [vmem:[%s9440_s5 + $0xc0] sm:$0xff] }
 0x54e   : > { %3599 = vmatmul.bf16.vlgmr.msrb.gmra.mxu2 %v3275_v7 }
 0x550   : > { %v6077_v45 = vpop.permute.xlu0 %6076  ;;  %3643 = vmatpush.bf16.msra.mxu2 %v5424_v62 }
 0x551   : > { %v6079_v50 = vunpack.i.h.bf16 %v6077_v45  ;;  %v6078_v19 = vunpack.i.l.bf16 %v6077_v45 }
 0x553   : > { %v3258_v47 = vsel %vm1112_vm1, %v3139_v57, %v6079_v50  ;;  %v3257_v54 = vsel %vm1112_vm1, %v3137_v52, %v6078_v19  ;;  %v5423_v57 = vld [vmem:[%s9440_s5 + $0x90] sm:$0xff] }
 0x554   : > { %v3276_v37 = vpack.c.bf16 %v3258_v47, %v3257_v54  ;;  %3644 = vmatpush.bf16.msra.mxu2 %v5423_v57  ;;  %v5439_v54 = vld [vmem:[%s9440_s5 + $0x110] sm:$0xff] }
 0x556   : > { %3623 = vmatmul.bf16.vlgmr.msrb.gmra.mxu3 %v3276_v37  ;;  %v3145_v37 = vrot.slane %v8656_v3, 2 }
 0x558   : > { %3645 = vmatpush.bf16.msra.mxu2 %v5422_v13 }
 0x55c   : > { %3646 = vmatpush.bf16.msra.mxu2 %v5421_v18 }
 0x560   : > { %3691 = vmatpush.bf16.msrb.mxu2 %v5440_v33 }
 0x564   : > { %3692 = vmatpush.bf16.msrb.mxu2 %v5439_v54 }
 0x568   : > { %v6067_v44 = vpop.permute.xlu1 %6066 }
 0x569   : > { %v6069_v30 = vunpack.i.h.bf16 %v6067_v44  ;;  %v6068_v55 = vunpack.i.l.bf16 %v6067_v44 }
 0x56b   : > { %v3253_v39 = vsel %vm1112_vm1, %v8610_v32, %v6068_v55  ;;  %v3254_v40 = vsel %vm1112_vm1, %v8612_v4, %v6069_v30  ;;  %v5430_v32 = vld [vmem:[%s9440_s5 + $0xc8] sm:$0xff] }
 0x56c   : > { %v3280_v8 = vpack.c.bf16 %v3254_v40, %v3253_v39  ;;  %3669 = vmatpush.bf16.msra.mxu3 %v5430_v32 }
 0x56e   : > { %3604 = vmatmul.bf16.gmra.mxu2 %v3280_v8 }
 0x570   : > { %v6072_v51 = vpop.permute.xlu2 %6071  ;;  %v6082_v7 = vpop.permute.xlu1 %6081  ;;  %3670 = vmatpush.bf16.msra.mxu3 %v5429_v63 }
 0x571   : > { %v6074_v20 = vunpack.i.h.bf16 %v6072_v51  ;;  %v6073_v9 = vunpack.i.l.bf16 %v6072_v51  ;;  %v6083_v45 = vunpack.i.l.bf16 %v6082_v7  ;;  %v6092_v17 = vpop.permute.xlu0 %6091 }
 0x572   : > { %v6094_v57 = vunpack.i.h.bf16 %v6092_v17  ;;  %v6093_v49 = vunpack.i.l.bf16 %v6092_v17 }
 0x573   : > { %v3255_v60 = vsel %vm1112_vm1, %v8656_v3, %v6073_v9  ;;  %v3256_v26 = vsel %vm1112_vm1, %v8666_v53, %v6074_v20  ;;  %v3263_v50 = vsel %vm1112_vm1, %v3108_v34, %v6083_v45  ;;  %v5437_v3 = vld [vmem:[%s9440_s5 + $0x100] sm:$0xff]  ;;  %v3239_v53 = vrot.slane %v8632_v24, 2 }
 0x574   : > { %v3285_v1 = vpack.c.bf16 %v3256_v26, %v3255_v60  ;;  %v3265_v44 = vsel %vm1112_vm1, %v3112_v12, %v6093_v49 }
 0x578   : > { %v6087_v46 = vpop.permute.xlu2 %6086 }
 0x579   : > { %v6089_v48 = vunpack.i.h.bf16 %v6087_v46  ;;  %v6088_v21 = vunpack.i.l.bf16 %v6087_v46  ;;  %v6107_v13 = vpop.permute.xlu0 %6106 }
 0x57a   : > { %v6109_v0 = vunpack.i.h.bf16 %v6107_v13  ;;  %v6108_v30 = vunpack.i.l.bf16 %v6107_v13 }
 0x57b   : > { %v3259_v5 = vsel %vm1112_vm1, %v3141_v11, %v6088_v21  ;;  %v3260_v56 = vsel %vm1112_vm1, %v3143_v2, %v6089_v48  ;;  %v6084_v2 = vunpack.i.h.bf16 %v6082_v7 }
 0x57c   : > { %v3281_v36 = vpack.c.bf16 %v3260_v56, %v3259_v5  ;;  %v3270_v18 = vsel %vm1112_vm1, %v8632_v24, %v6109_v0  ;;  %v3269_v23 = vsel %vm1112_vm1, %v8601_v27, %v6108_v30  ;;  %v3241_v5 = vrot.slane %v8697_v6, 2  ;;  %v8871_v27 = vld [vmem:[%s9441_s6] ss:$0 sm:$0xff] }
 0x57d   : > { %v3264_v52 = vsel %vm1112_vm1, %v3176_v43, %v6084_v2  ;;  %v5438_v43 = vld [vmem:[%s9440_s5 + $0x108] sm:$0xff]  ;;  %v3278_v39 = vpack.c.bf16 %v3270_v18, %v3269_v23  ;;  %v3243_v56 = vrot.slane %v8718_v41, 2  ;;  %v5085_v18 = vld [vmem:[%s9442_s7 + $0xe0] sm:$0xf]  ;;  %v5471_v23 = vld [vmem:[%s9442_s7 + $0xec] sm:$0xf0] }
 0x57e   : > { %3609 = vmatmul.bf16.gmra.mxu2 %v3285_v1  ;;  %3628 = vmatmul.bf16.gmra.mxu3 %v3281_v36  ;;  %v3277_v19 = vpack.c.bf16 %v3264_v52, %v3263_v50  ;;  %v3284_v24 = vpack.c.bf16 %v3241_v5, %v3190_v59 }
 0x57f   : > { %3693 = vmatpush.bf16.msrb.mxu2 %v5438_v43 }
 0x580   : > { %v6102_v40 = vpop.permute.xlu2 %6101 }
 0x581   : > { %v6104_v4 = vunpack.i.h.bf16 %v6102_v40  ;;  %v6103_v12 = vunpack.i.l.bf16 %v6102_v40 }
 0x583   : > { %3694 = vmatpush.bf16.msrb.mxu2 %v5437_v3  ;;  %v3268_v28 = vsel %vm1112_vm1, %v3180_v29, %v6104_v4  ;;  %v3279_v29 = vpack.c.bf16 %v3239_v53, %v3188_v61 }
 0x588   : > { %v6117_v46 = vpop.permute.xlu2 %6116 }
 0x589   : > { %v6118_v48 = vunpack.i.l.bf16 %v6117_v46 }
 0x58b   : > { %v3273_v21 = vsel %vm1112_vm1, %v8687_v16, %v6118_v48  ;;  %v5053_v48 = vld [vmem:[%s9442_s7 + $0xa0] sm:$0xf] }
 0x58e   : > { %v6097_v47 = vpop.permute.xlu1 %6096  ;;  %3647 = vmatmul.bf16.vlgmr.msra.gmra.mxu2 %v3277_v19 }
 0x58f   : > { %v6099_v15 = vunpack.i.h.bf16 %v6097_v47  ;;  %v6098_v31 = vunpack.i.l.bf16 %v6097_v47 }
 0x591   : > { %v3261_v62 = vsel %vm1112_vm1, %v3145_v37, %v6098_v31  ;;  %v3262_v35 = vsel %vm1112_vm1, %v3147_v42, %v6099_v15  ;;  %v3266_v42 = vsel %vm1112_vm1, %v3178_v25, %v6094_v57  ;;  %v3267_v25 = vsel %vm1112_vm1, %v3116_v58, %v6103_v12 }
 0x592   : > { %v3286_v34 = vpack.c.bf16 %v3262_v35, %v3261_v62  ;;  %v3282_v55 = vpack.c.bf16 %v3266_v42, %v3265_v44  ;;  %v3287_v20 = vpack.c.bf16 %v3268_v28, %v3267_v25  ;;  %v6119_v58 = vunpack.i.h.bf16 %v6117_v46  ;;  %v5069_v25 = vld [vmem:[%s9442_s7 + $0xc0] sm:$0xf]  ;;  %v5467_v28 = vld [vmem:[%s9442_s7 + $0xcc] sm:$0xf0] }
 0x593   : > { %v5086_v12 = vor.u32 %v5471_v23, %v5085_v18  ;;  %v5070_v46 = vor.u32 %v5467_v28, %v5069_v25  ;;  %v5449_v18 = vld [vmem:[%s9442_s7 + $0x44] sm:$0xf]  ;;  %v5007_v23 = vld [vmem:[%s9442_s7 + $0x50] sm:$0xf0] }
 0x594   : > { %3633 = vmatmul.bf16.gmra.mxu3 %v3286_v34  ;;  %v3274_v60 = vsel %vm1112_vm1, %v8718_v41, %v6119_v58 }
 0x595   : > { %v3288_v26 = vpack.c.bf16 %v3274_v60, %v3273_v21  ;;  %4147 = vmatpush.bf16.msrb.mxu3 %v5086_v12 }
 0x596   : > { %v6112_v8 = vpop.permute.xlu1 %6111 }
 0x597   : > { %v6114_v51 = vunpack.i.h.bf16 %v6112_v8  ;;  %v6113_v38 = vunpack.i.l.bf16 %v6112_v8  ;;  %v5087_v8 = vld [vmem:[%s9442_s7 + $0xf0] sm:$0xf0] }
 0x599   : > { %v3271_v9 = vsel %vm1112_vm1, %v8623_v10, %v6113_v38  ;;  %v3272_v14 = vsel %vm1112_vm1, %v8697_v6, %v6114_v51  ;;  %v3289_v6 = vpack.c.bf16 %v3243_v56, %v3192_v22  ;;  %4148 = vmatpush.bf16.msrb.mxu3 %v5070_v46  ;;  %v4973_v46 = vld [vmem:[%s9442_s7] sm:$0xf] }
 0x59a   : > { %v3283_v11 = vpack.c.bf16 %v3272_v14, %v3271_v9  ;;  %v5071_v9 = vld [vmem:[%s9442_s7 + $0xd0] sm:$0xf0] }
 0x59e   : > { %3652 = vmatmul.bf16.gmra.mxu2 %v3282_v55 }
 0x5a4   : > { %3671 = vmatmul.bf16.vlgmr.msra.gmra.mxu3 %v3278_v39  ;;  %v5469_v39 = vld [vmem:[%s9442_s7 + $0xe4] sm:$0xf] }
 0x5a5   : > { %v5090_v38 = vor.u32 %v5469_v39, %v5087_v8  ;;  %v5010_v8 = vor.u32 %v5449_v18, %v5007_v23  ;;  %v5483_v18 = vld [vmem:[%s9442_s7 + $0x14c] sm:$0xf0] }
 0x5a7   : > { %4173 = vmatpush.bf16.msra.mxu2 %v5090_v38  ;;  %v4991_v38 = vld [vmem:[%s9442_s7 + $0x30] sm:$0xf0] }
 0x5ae   : > { %3657 = vmatmul.bf16.gmra.mxu2 %v3287_v20  ;;  %v5465_v20 = vld [vmem:[%s9442_s7 + $0xc4] sm:$0xf] }
 0x5af   : > { %v5074_v58 = vor.u32 %v5465_v20, %v5071_v9 }
 0x5b1   : > { %4174 = vmatpush.bf16.msra.mxu2 %v5074_v58  ;;  %v5443_v58 = vld [vmem:[%s9442_s7 + $0xc] sm:$0xf0] }
 0x5b4   : > { %3676 = vmatmul.bf16.gmra.mxu3 %v3283_v11 }
 0x5be   : > { %4968 = vmatmul.msk.bf16.vlgmr.msrb.gmra.mxu2 %vm1112_vm1, %v3279_v29  ;;  %v5463_v29 = vld [vmem:[%s9442_s7 + $0xac] sm:$0xf0] }
 0x5c4   : > { %3681 = vmatmul.bf16.gmra.mxu3 %v3288_v26 }
 0x5ce   : > { %4969 = vmatmul.msk.bf16.gmra.mxu2 %vm1112_vm1, %v3284_v24  ;;  %v5461_v24 = vld [vmem:[%s9442_s7 + $0xa4] sm:$0xf] }
 0x5d1   : > { %v3600_v61 = vpop.f32.mrf.mxu2 }
 0x5d2   : > { %v3601_v32 = vadd.f32 %v8871_v27, %v3600_v61  ;;  %v5055_v61 = vld [vmem:[%s9442_s7 + $0xb0] sm:$0xf0] }
 0x5d9   : > { %v3624_v1 = vpop.f32.mrf.mxu3  ;;  %v3602_v10 = vpop.f32.mrf.mxu2 }
 0x5da   : > { %v3625_v36 = vadd.f32 %v3624_v1, %v3601_v32  ;;  %v3603_v0 = vadd.f32 %v8871_v27, %v3602_v10  ;;  %v5054_v1 = vor.u32 %v5463_v29, %v5053_v48  ;;  %v5058_v10 = vor.u32 %v5461_v24, %v5055_v61  ;;  %v5213_v29 = vld [vmem:[%s9442_s7 + $0x1e0] sm:$0xf]  ;;  %v5093_v61 = vld [vmem:[%s9442_s7 + $0xe8] sm:$0xf] }
 0x5db   : > { %v4974_v24 = vor.u32 %v5443_v58, %v4973_v46  ;;  %v5215_v46 = vld [vmem:[%s9442_s7 + $0x1f0] sm:$0xf0]  ;;  %v5470_v58 = vld [vmem:[%s9442_s7 + $0xec] sm:$0xf] }
 0x5dc   : > { %4149 = vmatpush.bf16.msrb.mxu3 %v5054_v1  ;;  %4175 = vmatpush.bf16.msra.mxu2 %v5058_v10 }
 0x5de   : > { %4970 = vmatmul.msk.bf16.gmra.mxu2 %vm1112_vm1, %v3289_v6 }
 0x5e1   : > { %v3626_v33 = vpop.f32.mrf.mxu3 }
 0x5e2   : > { %v3627_v51 = vadd.f32 %v3626_v33, %v3603_v0  ;;  %v5451_v0 = vld [vmem:[%s9442_s7 + $0x4c] sm:$0xf0] }
 0x5f1   : > { %v3605_v59 = vpop.f32.mrf.mxu2 }
 0x5f2   : > { %v3606_v43 = vadd.f32 %v8871_v27, %v3605_v59  ;;  %v5037_v59 = vld [vmem:[%s9442_s7 + $0x80] sm:$0xf] }
 0x5f9   : > { %v3607_v63 = vpop.f32.mrf.mxu2 }
 0x5fa   : > { %v3608_v40 = vadd.f32 %v8871_v27, %v3607_v63  ;;  %v5459_v63 = vld [vmem:[%s9442_s7 + $0x8c] sm:$0xf0] }
 0x601   : > { %v8878_v7 = vpop.f32.mrf.mxu2  ;;  %v3629_v45 = vpop.f32.mrf.mxu3 }
 0x602   : > { %v3630_v49 = vadd.f32 %v3629_v45, %v3606_v43  ;;  %v3611_v33 = vadd.f32 %v8871_v27, %v8878_v7  ;;  %v5453_v43 = vld [vmem:[%s9442_s7 + $0x64] sm:$0xf] }
 0x609   : > { %v8880_v2 = vpop.f32.mrf.mxu2  ;;  %v3631_v50 = vpop.f32.mrf.mxu3 }
 0x60a   : > { %v3632_v14 = vadd.f32 %v3631_v50, %v3608_v40  ;;  %v5039_v50 = vld [vmem:[%s9442_s7 + $0x90] sm:$0xf0] }
 0x611   : > { %v3648_v52 = vpop.f32.mrf.mxu2 }
 0x612   : > { %v3649_v41 = vadd.f32 %v3648_v52, %v3625_v36 }
 0x617   : > { %v8882_v17 = vpop.f32.mrf.mxu3 }
 0x619   : > { %v3650_v19 = vpop.f32.mrf.mxu2 }
 0x61a   : > { %v3651_v21 = vadd.f32 %v3650_v19, %v3627_v51 }
 0x61f   : > { %v8884_v16 = vpop.f32.mrf.mxu3 }
 0x621   : > { %v3653_v47 = vpop.f32.mrf.mxu2 }
 0x622   : > { %v3654_v13 = vadd.f32 %v3653_v47, %v3630_v49  ;;  %v3635_v47 = vadd.f32 %v8882_v17, %v3611_v33 }
 0x627   : > { %v3672_v37 = vpop.f32.mrf.mxu3 }
 0x628   : > { %v3673_v57 = vadd.f32 %v3672_v37, %v3649_v41  ;;  %v5457_v41 = vld [vmem:[%s9442_s7 + $0x84] sm:$0xf]  ;;  %v5038_v37 = vor.u32 %v5459_v63, %v5037_v59  ;;  %v5197_v59 = vld [vmem:[%s9442_s7 + $0x1c0] sm:$0xf]  ;;  %v5499_v63 = vld [vmem:[%s9442_s7 + $0x1cc] sm:$0xf0] }
 0x629   : > { %v3655_v22 = vpop.f32.mrf.mxu2  ;;  %v5042_v7 = vor.u32 %v5457_v41, %v5039_v50  ;;  %v5077_v50 = vld [vmem:[%s9442_s7 + $0xc8] sm:$0xf] }
 0x62a   : > { %v3656_v60 = vadd.f32 %v3655_v22, %v3632_v14  ;;  %4150 = vmatpush.bf16.msrb.mxu3 %v5038_v37  ;;  %v5495_v37 = vld [vmem:[%s9442_s7 + $0x1ac] sm:$0xf0] }
 0x62b   : > { %4176 = vmatpush.bf16.msra.mxu2 %v5042_v7 }
 0x62f   : > { %v3674_v31 = vpop.f32.mrf.mxu3 }
 0x630   : > { %v3675_v56 = vadd.f32 %v3674_v31, %v3651_v21  ;;  %v5021_v31 = vld [vmem:[%s9442_s7 + $0x60] sm:$0xf]  ;;  %v5503_v21 = vld [vmem:[%s9442_s7 + $0x1ec] sm:$0xf0] }
 0x631   : > { %v8886_v54 = vpop.f32.mrf.mxu2  ;;  %v5214_v1 = vor.u32 %v5503_v21, %v5213_v29 }
 0x637   : > { %v3677_v35 = vpop.f32.mrf.mxu3 }
 0x638   : > { %v3678_v44 = vadd.f32 %v3677_v35, %v3654_v13  ;;  %v3659_v35 = vadd.f32 %v8886_v54, %v3635_v47 }
 0x639   : > { %v8888_v15 = vpop.f32.mrf.mxu2 }
 0x63f   : > { %v3679_v30 = vpop.f32.mrf.mxu3 }
 0x640   : > { %v3680_v32 = vadd.f32 %v3679_v30, %v3656_v60  ;;  %v3613_v30 = vadd.f32 %v8871_v27, %v8880_v2  ;;  %v4989_v27 = vld [vmem:[%s9442_s7 + $0x20] sm:$0xf]  ;;  %v5447_v2 = vld [vmem:[%s9442_s7 + $0x2c] sm:$0xf0]  ;;  %v5441_v60 = vld [vmem:[%s9442_s7 + $0x4] sm:$0xf] }
 0x641   : > { %v3696_v62 = vpop.f32.mrf.mxu2  ;;  %v4990_v14 = vor.u32 %v5447_v2, %v4989_v27  ;;  %v4997_v2 = vld [vmem:[%s9442_s7 + $0x28] sm:$0xf] }
 0x642   : > { %v3697_v3 = vadd.f32 %v3696_v62, %v3673_v57  ;;  %v5455_v62 = vld [vmem:[%s9442_s7 + $0x6c] sm:$0xf0]  ;;  %v5023_v57 = vld [vmem:[%s9442_s7 + $0x70] sm:$0xf0]  ;;  %v3637_v39 = vadd.f32 %v8884_v16, %v3613_v30  ;;  %v5445_v16 = vld [vmem:[%s9442_s7 + $0x24] sm:$0xf] }
 0x643   : > { %v5026_v54 = vor.u32 %v5453_v43, %v5023_v57  ;;  %v5045_v57 = vld [vmem:[%s9442_s7 + $0x88] sm:$0xf] }
 0x644   : > { %v3711_v42 = vmax.f32 %v3697_v3, 0.0  ;;  %v5022_v3 = vor.u32 %v5455_v62, %v5021_v31  ;;  %v3661_v25 = vadd.f32 %v8888_v15, %v3637_v39  ;;  %v4994_v15 = vor.u32 %v5445_v16, %v4991_v38  ;;  %v5061_v31 = vld [vmem:[%s9442_s7 + $0xa8] sm:$0xf]  ;;  %v5464_v62 = vld [vmem:[%s9442_s7 + $0xb4] sm:$0xf0] }
 0x645   : > { %4177 = vmatpush.bf16.msra.mxu2 %v5026_v54  ;;  %v5062_v43 = vor.u32 %v5464_v62, %v5061_v31  ;;  %v5013_v39 = vld [vmem:[%s9442_s7 + $0x48] sm:$0xf]  ;;  %v5101_v16 = vld [vmem:[%s9442_s7 + $0x100] sm:$0xf]  ;;  %v5475_v38 = vld [vmem:[%s9442_s7 + $0x10c] sm:$0xf0] }
 0x646   : > { %v3727_v11 = vrot.slane %v3711_v42, 1  ;;  %4151 = vmatpush.bf16.msrb.mxu3 %v5022_v3  ;;  %v5151_v31 = vld [vmem:[%s9442_s7 + $0x170] sm:$0xf0]  ;;  %v5454_v62 = vld [vmem:[%s9442_s7 + $0x6c] sm:$0xf] }
 0x647   : > { %v3682_v19 = vpop.f32.mrf.mxu3 }
 0x648   : > { %v3683_v49 = vadd.f32 %v3682_v19, %v3659_v35  ;;  %v5468_v19 = vld [vmem:[%s9442_s7 + $0xd4] sm:$0xf0] }
 0x649   : > { %v3698_v34 = vpop.f32.mrf.mxu2  ;;  %4178 = vmatpush.bf16.msra.mxu2 %v5010_v8  ;;  %v5078_v7 = vor.u32 %v5468_v19, %v5077_v50  ;;  %v5479_v8 = vld [vmem:[%s9442_s7 + $0x12c] sm:$0xf0]  ;;  %v5458_v50 = vld [vmem:[%s9442_s7 + $0x8c] sm:$0xf]  ;;  %v5047_v19 = vld [vmem:[%s9442_s7 + $0x98] sm:$0xf0] }
 0x64a   : > { %v8939_v45 = vadd.f32 %v3698_v34, %v3675_v56  ;;  %v5472_v56 = vld [vmem:[%s9442_s7 + $0xf4] sm:$0xf0] }
 0x64c   : > { %v3712_v34 = vmax.f32 %v8939_v45, 0.0  ;;  %v5094_v45 = vor.u32 %v5472_v56, %v5093_v61  ;;  %v5199_v61 = vld [vmem:[%s9442_s7 + $0x1d0] sm:$0xf0]  ;;  %v5466_v56 = vld [vmem:[%s9442_s7 + $0xcc] sm:$0xf] }
 0x64d   : > { %4179 = vmatpush.bf16.msra.mxu2 %v4994_v15  ;;  %v5501_v15 = vld [vmem:[%s9442_s7 + $0x1e4] sm:$0xf] }
 0x64f   : > { %v3684_v12 = vpop.f32.mrf.mxu3 }
 0x650   : > { %v3685_v20 = vadd.f32 %v3684_v12, %v3661_v25  ;;  %v5117_v12 = vld [vmem:[%s9442_s7 + $0x120] sm:$0xf]  ;;  %v5448_v25 = vld [vmem:[%s9442_s7 + $0x34] sm:$0xf0] }
 0x651   : > { %v3701_v55 = vpop.f32.mrf.mxu2 }
 0x652   : > { %v3702_v4 = vadd.f32 %v3701_v55, %v3678_v44 }
 0x654   : > { %v3713_v53 = vmax.f32 %v3702_v4, 0.0 }
 0x656   : > { %v3720_v26 = vrot.slane %v3713_v53, 7  ;;  %v3728_v5 = vsel %vm3721_vm4, %v3713_v53, %v3727_v11 }
 0x658   : > { %v3722_v36 = vsel %vm3721_vm4, %v3720_v26, %v3711_v42  ;;  %v5005_v42 = vld [vmem:[%s9442_s7 + $0x40] sm:$0xf]  ;;  %v4975_v26 = vld [vmem:[%s9442_s7 + $0x10] sm:$0xf0] }
 0x659   : > { %v3703_v6 = vpop.f32.mrf.mxu2  ;;  %v5006_v4 = vor.u32 %v5451_v0, %v5005_v42  ;;  %v4978_v10 = vor.u32 %v5441_v60, %v4975_v26  ;;  %v5029_v42 = vld [vmem:[%s9442_s7 + $0x68] sm:$0xf]  ;;  %v5456_v0 = vld [vmem:[%s9442_s7 + $0x74] sm:$0xf0]  ;;  %v5218_v60 = vor.u32 %v5501_v15, %v5215_v46 }
 0x65a   : > { %v8941_v52 = vadd.f32 %v3703_v6, %v3680_v32  ;;  %v3742_v32 = vrot.slane %v3712_v34, 1  ;;  %v5030_v23 = vor.u32 %v5456_v0, %v5029_v42  ;;  %v5477_v42 = vld [vmem:[%s9442_s7 + $0x124] sm:$0xf]  ;;  %v5119_v0 = vld [vmem:[%s9442_s7 + $0x130] sm:$0xf0] }
 0x65b   : > { %4152 = vmatpush.bf16.msrb.mxu3 %v5006_v4  ;;  %4180 = vmatpush.bf16.msra.mxu2 %v4978_v10  ;;  %v5462_v10 = vld [vmem:[%s9442_s7 + $0xac] sm:$0xf]  ;;  %v5492_v15 = vld [vmem:[%s9442_s7 + $0x194] sm:$0xf0] }
 0x65c   : > { %v3714_v22 = vmax.f32 %v8941_v52, 0.0  ;;  %v5198_v52 = vor.u32 %v5499_v63, %v5197_v59  ;;  %v5063_v59 = vld [vmem:[%s9442_s7 + $0xb8] sm:$0xf0] }
 0x65e   : > { %v3737_v17 = vrot.slane %v3714_v22, 7  ;;  %v3743_v33 = vsel %vm3721_vm4, %v3714_v22, %v3742_v32  ;;  %v5181_v22 = vld [vmem:[%s9442_s7 + $0x1a0] sm:$0xf] }
 0x65f   : > { %4153 = vmatpush.bf16.msrb.mxu3 %v4990_v14  ;;  %4199 = vmatpush.bf16.msrb.mxu2 %v5094_v45  ;;  %v5182_v35 = vor.u32 %v5495_v37, %v5181_v22  ;;  %v5444_v14 = vld [vmem:[%s9442_s7 + $0x14] sm:$0xf0]  ;;  %v5489_v45 = vld [vmem:[%s9442_s7 + $0x184] sm:$0xf]  ;;  %v5050_v37 = vor.u32 %v5458_v50, %v5047_v19  ;;  %v5511_v50 = vld [vmem:[%s9444_s9 + $0x30] sm:$0xff] }
 0x660   : > { %v3738_v13 = vsel %vm3721_vm4, %v3737_v17, %v3712_v34  ;;  %v5165_v34 = vld [vmem:[%s9442_s7 + $0x180] sm:$0xf]  ;;  %v5491_v17 = vld [vmem:[%s9442_s7 + $0x18c] sm:$0xf0] }
 0x661   : > { %v3706_v44 = vpop.f32.mrf.mxu2  ;;  %v5166_v3 = vor.u32 %v5491_v17, %v5165_v34 }
 0x662   : > { %v3707_v55 = vadd.f32 %v3706_v44, %v3683_v49  ;;  %v5460_v49 = vld [vmem:[%s9442_s7 + $0x94] sm:$0xf0]  ;;  %v5487_v44 = vld [vmem:[%s9442_s7 + $0x16c] sm:$0xf0] }
 0x663   : > { %4154 = vmatpush.bf16.msrb.mxu3 %v4974_v24  ;;  %4200 = vmatpush.bf16.msrb.mxu2 %v5078_v7  ;;  %v5046_v54 = vor.u32 %v5460_v49, %v5045_v57  ;;  %v5485_v7 = vld [vmem:[%s9442_s7 + $0x164] sm:$0xf] }
 0x664   : > { %v3715_v40 = vmax.f32 %v3707_v55, 0.0  ;;  %v5133_v55 = vld [vmem:[%s9442_s7 + $0x140] sm:$0xf]  ;;  %v5154_v17 = vor.u32 %v5485_v7, %v5151_v31  ;;  %v5481_v57 = vld [vmem:[%s9442_s7 + $0x144] sm:$0xf] }
 0x665   : > { %v5134_v4 = vor.u32 %v5483_v18, %v5133_v55  ;;  %v4999_v55 = vld [vmem:[%s9442_s7 + $0x38] sm:$0xf0]  ;;  %v5122_v18 = vor.u32 %v5477_v42, %v5119_v0  ;;  %v5486_v7 = vld [vmem:[%s9442_s7 + $0x16c] sm:$0xf]  ;;  %v5509_v42 = vld [vmem:[%s9444_s9 + $0x20] sm:$0xff] }
 0x666   : > { %v3723_v28 = vrot.slane %v3715_v40, 6  ;;  %v3729_v51 = vrot.slane %v3715_v40, 7  ;;  %v5452_v40 = vld [vmem:[%s9442_s7 + $0x54] sm:$0xf0]  ;;  %v5159_v31 = vld [vmem:[%s9442_s7 + $0x178] sm:$0xf0] }
 0x667   : > { %4160 = vmatpush.bf16.msra.mxu3 %v5214_v1  ;;  %4201 = vmatpush.bf16.msrb.mxu2 %v5062_v43  ;;  %v5014_v27 = vor.u32 %v5452_v40, %v5013_v39  ;;  %v5473_v39 = vld [vmem:[%s9442_s7 + $0x104] sm:$0xf]  ;;  %v5103_v40 = vld [vmem:[%s9442_s7 + $0x110] sm:$0xf0]  ;;  %v5508_v0 = vld [vmem:[%s9444_s9 + $0x18] sm:$0xff] }
 0x668   : > { %v3730_v9 = vsel %vm3724_vm5, %v3729_v51, %v3728_v5  ;;  %v8998_v11 = vsel %vm3724_vm5, %v3723_v28, %v3722_v36  ;;  %v5118_v28 = vor.u32 %v5479_v8, %v5117_v12  ;;  %v4998_v51 = vor.u32 %v5448_v25, %v4997_v2  ;;  %v4983_v12 = vld [vmem:[%s9442_s7 + $0x18] sm:$0xf0]  ;;  %v5221_v8 = vld [vmem:[%s9442_s7 + $0x1e8] sm:$0xf] }
 0x669   : > { %v3708_v53 = vpop.f32.mrf.mxu2  ;;  %3731 = vrot.lane.b32.xlu0 %v3730_v9, %s6174_s24  ;;  %v4981_v9 = vld [vmem:[%s9442_s7 + $0x8] sm:$0xf]  ;;  %v5106_v2 = vor.u32 %v5473_v39, %v5103_v40  ;;  %v5505_v39 = vld [vmem:[%s9444_s9] sm:$0xff] }
 0x66a   : > { %v3709_v48 = vadd.f32 %v3708_v53, %v3685_v20  ;;  %v5102_v20 = vor.u32 %v5475_v38, %v5101_v16  ;;  %v4982_v53 = vor.u32 %v5444_v14, %v4981_v9  ;;  %v5500_v16 = vld [vmem:[%s9442_s7 + $0x1d4] sm:$0xf0]  ;;  %v5517_v40 = vld [vmem:[%s9444_s9 + $0x60] sm:$0xff] }
 0x66b   : > { %4161 = vmatpush.bf16.msra.mxu3 %v5198_v52  ;;  %4202 = vmatpush.bf16.msrb.mxu2 %v5046_v54  ;;  %v5496_v9 = vld [vmem:[%s9442_s7 + $0x1b4] sm:$0xf0] }
 0x66c   : > { %v3716_v5 = vmax.f32 %v3709_v48, 0.0  ;;  %v5095_v48 = vld [vmem:[%s9442_s7 + $0xf8] sm:$0xf0] }
 0x66d   : > { %v5098_v26 = vor.u32 %v5470_v58, %v5095_v48  ;;  %v5157_v58 = vld [vmem:[%s9442_s7 + $0x168] sm:$0xf]  ;;  %v5488_v48 = vld [vmem:[%s9442_s7 + $0x174] sm:$0xf0] }
 0x66e   : > { %v3739_v36 = vrot.slane %v3716_v5, 6  ;;  %v3744_v6 = vrot.slane %v3716_v5, 7  ;;  %v5497_v5 = vld [vmem:[%s9442_s7 + $0x1c4] sm:$0xf] }
 0x66f   : > { %4162 = vmatpush.bf16.msra.mxu3 %v5182_v35  ;;  %4203 = vmatpush.bf16.msrb.mxu2 %v5030_v23  ;;  %v5202_v32 = vor.u32 %v5497_v5, %v5199_v61  ;;  %v5031_v35 = vld [vmem:[%s9442_s7 + $0x78] sm:$0xf0]  ;;  %v5125_v5 = vld [vmem:[%s9442_s7 + $0x128] sm:$0xf] }
 0x670   : > { %v3745_v41 = vsel %vm3724_vm5, %v3744_v6, %v3743_v33  ;;  %v9042_v47 = vsel %vm3724_vm5, %v3739_v36, %v3738_v13  ;;  %v5149_v13 = vld [vmem:[%s9442_s7 + $0x160] sm:$0xf]  ;;  %v5493_v36 = vld [vmem:[%s9442_s7 + $0x1a4] sm:$0xf]  ;;  %v5183_v6 = vld [vmem:[%s9442_s7 + $0x1b0] sm:$0xf0]  ;;  %v5066_v33 = vor.u32 %v5462_v10, %v5063_v59  ;;  %v5034_v43 = vor.u32 %v5454_v62, %v5031_v35 }
 0x671   : > { %3746 = vrot.lane.b32.xlu1 %v3745_v41, %s6174_s24  ;;  %v5150_v30 = vor.u32 %v5487_v44, %v5149_v13  ;;  %v5186_v63 = vor.u32 %v5493_v36, %v5183_v6  ;;  %v5167_v41 = vld [vmem:[%s9442_s7 + $0x190] sm:$0xf0]  ;;  %v5450_v13 = vld [vmem:[%s9442_s7 + $0x4c] sm:$0xf]  ;;  %v5207_v59 = vld [vmem:[%s9442_s7 + $0x1d8] sm:$0xf0]  ;;  %v5162_v62 = vor.u32 %v5486_v7, %v5159_v31 }
 0x672   : > { %v5170_v22 = vor.u32 %v5489_v45, %v5167_v41  ;;  %v5498_v10 = vld [vmem:[%s9442_s7 + $0x1cc] sm:$0xf]  ;;  %v5191_v41 = vld [vmem:[%s9442_s7 + $0x1b8] sm:$0xf0] }
 0x673   : > { %4163 = vmatpush.bf16.msra.mxu3 %v5166_v3  ;;  %4204 = vmatpush.bf16.msrb.mxu2 %v5014_v27  ;;  %v5135_v3 = vld [vmem:[%s9442_s7 + $0x150] sm:$0xf0]  ;;  %v5504_v27 = vld [vmem:[%s9442_s7 + $0x1f4] sm:$0xf0]  ;;  %v5494_v45 = vld [vmem:[%s9442_s7 + $0x1ac] sm:$0xf] }
 0x674   : > { %v5138_v44 = vor.u32 %v5481_v57, %v5135_v3  ;;  %v5194_v19 = vor.u32 %v5494_v45, %v5191_v41  ;;  %v5482_v35 = vld [vmem:[%s9442_s7 + $0x14c] sm:$0xf]  ;;  %v5127_v57 = vld [vmem:[%s9442_s7 + $0x138] sm:$0xf0] }
 0x675   : > { %v5534_v45 = vld [vmem:[%s9444_s9 + $0xe8] sm:$0xff] }
 0x676   : > { %v5530_v7 = vld [vmem:[%s9444_s9 + $0xc8] sm:$0xff] }
 0x677   : > { %4164 = vmatpush.bf16.msra.mxu3 %v5150_v30  ;;  %4205 = vmatpush.bf16.msrb.mxu2 %v4998_v51  ;;  %v5446_v30 = vld [vmem:[%s9442_s7 + $0x2c] sm:$0xf]  ;;  %v5205_v51 = vld [vmem:[%s9442_s7 + $0x1c8] sm:$0xf] }
 0x678   : > { %v5002_v23 = vor.u32 %v5446_v30, %v4999_v55  ;;  %v5206_v38 = vor.u32 %v5500_v16, %v5205_v51  ;;  %v5520_v30 = vld [vmem:[%s9444_s9 + $0x78] sm:$0xff]  ;;  %v5519_v55 = vld [vmem:[%s9444_s9 + $0x70] sm:$0xff]  ;;  %v3817_v16 = vld [vmem:[%s9443_s8] sm:$0xf] }
 0x679   : > { %v5527_v51 = vld [vmem:[%s9444_s9 + $0xb0] sm:$0xff] }
 0x67b   : > { %4165 = vmatpush.bf16.msra.mxu3 %v5134_v4  ;;  %4206 = vmatpush.bf16.msrb.mxu2 %v4982_v53  ;;  %v5442_v4 = vld [vmem:[%s9442_s7 + $0xc] sm:$0xf]  ;;  %v5173_v53 = vld [vmem:[%s9442_s7 + $0x188] sm:$0xf] }
 0x67c   : > { %v4986_v25 = vor.u32 %v5442_v4, %v4983_v12  ;;  %v5174_v46 = vor.u32 %v5492_v15, %v5173_v53  ;;  %v5516_v4 = vld [vmem:[%s9444_s9 + $0x58] sm:$0xff]  ;;  %v5515_v12 = vld [vmem:[%s9444_s9 + $0x50] sm:$0xff]  ;;  %v5525_v53 = vld [vmem:[%s9444_s9 + $0xa0] sm:$0xff] }
 0x67f   : > { %4166 = vmatpush.bf16.msra.mxu3 %v5118_v28  ;;  %v5222_v28 = vor.u32 %v5504_v27, %v5221_v8  ;;  %v5514_v8 = vld [vmem:[%s9444_s9 + $0x48] sm:$0xff] }
 0x683   : > { %4167 = vmatpush.bf16.msra.mxu3 %v5102_v20  ;;  %v5189_v20 = vld [vmem:[%s9442_s7 + $0x1a8] sm:$0xf] }
 0x684   : > { %v5190_v14 = vor.u32 %v5496_v9, %v5189_v20  ;;  %v5526_v9 = vld [vmem:[%s9444_s9 + $0xa8] sm:$0xff] }
 0x6db   : > { %v3732_v29 = vpop.permute.xlu0 %3731 }
 0x6dc   : > { %v3749_v21 = vsel %vm1112_vm1, %v8998_v11, %v3732_v29  ;;  %v5079_v11 = vld [vmem:[%s9442_s7 + $0xd8] sm:$0xf0]  ;;  %v5158_v29 = vor.u32 %v5488_v48, %v5157_v58 }
 0x6dd   : > { %v9134_v24 = vpack.c.bf16 %v3749_v21, %v3749_v21  ;;  %v5082_v1 = vor.u32 %v5466_v56, %v5079_v11  ;;  %v5141_v21 = vld [vmem:[%s9442_s7 + $0x148] sm:$0xf]  ;;  %v5476_v11 = vld [vmem:[%s9442_s7 + $0x114] sm:$0xf0] }
 0x6de   : > { %v5109_v56 = vld [vmem:[%s9442_s7 + $0x108] sm:$0xf] }
 0x6df   : > { %4155 = vmatmul.bf16.vlgmr.msrb.gmra.mxu3 %v9134_v24  ;;  %4181 = vmatmul.bf16.vlgmr.msra.gmra.mxu2 %v9134_v24  ;;  %v5110_v36 = vor.u32 %v5476_v11, %v5109_v56  ;;  %v5522_v56 = vld [vmem:[%s9444_s9 + $0x88] sm:$0xff] }
 0x6e0   : > { %4186 = vmatpush.bf16.msrb.mxu3 %v5218_v60  ;;  %4225 = vmatpush.bf16.msra.mxu2 %v5098_v26  ;;  %v5484_v60 = vld [vmem:[%s9442_s7 + $0x154] sm:$0xf0] }
 0x6e1   : > { %v5142_v26 = vor.u32 %v5484_v60, %v5141_v21 }
 0x6e3   : > { %v3747_v52 = vpop.permute.xlu1 %3746 }
 0x6e4   : > { %4187 = vmatpush.bf16.msrb.mxu3 %v5202_v32  ;;  %4226 = vmatpush.bf16.msra.mxu2 %v5082_v1  ;;  %v3750_v34 = vsel %vm1112_vm1, %v9042_v47, %v3747_v52  ;;  %v5015_v47 = vld [vmem:[%s9442_s7 + $0x58] sm:$0xf0]  ;;  %v5502_v32 = vld [vmem:[%s9442_s7 + $0x1ec] sm:$0xf] }
 0x6e5   : > { %v9188_v49 = vpack.c.bf16 %v3750_v34, %v3750_v34  ;;  %v5018_v54 = vor.u32 %v5450_v13, %v5015_v47  ;;  %v5223_v1 = vld [vmem:[%s9442_s7 + $0x1f8] sm:$0xf0]  ;;  %v5490_v52 = vld [vmem:[%s9442_s7 + $0x18c] sm:$0xf] }
 0x6e6   : > { %v5226_v6 = vor.u32 %v5502_v32, %v5223_v1  ;;  %v5143_v34 = vld [vmem:[%s9442_s7 + $0x158] sm:$0xf0]  ;;  %v5474_v13 = vld [vmem:[%s9442_s7 + $0x10c] sm:$0xf]  ;;  %v5521_v32 = vld [vmem:[%s9444_s9 + $0x80] sm:$0xff] }
 0x6e7   : > { %v5111_v47 = vld [vmem:[%s9442_s7 + $0x118] sm:$0xf0] }
 0x6e8   : > { %4188 = vmatpush.bf16.msrb.mxu3 %v5186_v63  ;;  %4227 = vmatpush.bf16.msra.mxu2 %v5066_v33  ;;  %v5512_v63 = vld [vmem:[%s9444_s9 + $0x38] sm:$0xff]  ;;  %v5210_v33 = vor.u32 %v5498_v10, %v5207_v59 }
 0x6ec   : > { %4189 = vmatpush.bf16.msrb.mxu3 %v5170_v22  ;;  %4228 = vmatpush.bf16.msra.mxu2 %v5050_v37  ;;  %v5175_v22 = vld [vmem:[%s9442_s7 + $0x198] sm:$0xf0] }
 0x6ed   : > { %v5178_v37 = vor.u32 %v5490_v52, %v5175_v22  ;;  %v5532_v52 = vld [vmem:[%s9444_s9 + $0xd8] sm:$0xff]  ;;  %v5531_v22 = vld [vmem:[%s9444_s9 + $0xd0] sm:$0xff] }
 0x6ef   : > { %4168 = vmatmul.bf16.vlgmr.msra.gmra.mxu3 %v9188_v49  ;;  %4207 = vmatmul.bf16.vlgmr.msrb.gmra.mxu2 %v9134_v24 }
 0x6f0   : > { %4190 = vmatpush.bf16.msrb.mxu3 %v5154_v17  ;;  %4229 = vmatpush.bf16.msra.mxu2 %v5034_v43  ;;  %v5146_v17 = vor.u32 %v5482_v35, %v5143_v34  ;;  %v5478_v43 = vld [vmem:[%s9442_s7 + $0x12c] sm:$0xf] }
 0x6f1   : > { %v5130_v3 = vor.u32 %v5478_v43, %v5127_v57 }
 0x6f4   : > { %4191 = vmatpush.bf16.msrb.mxu3 %v5138_v44  ;;  %4230 = vmatpush.bf16.msra.mxu2 %v5018_v54  ;;  %v5114_v44 = vor.u32 %v5474_v13, %v5111_v47  ;;  %v5510_v54 = vld [vmem:[%s9444_s9 + $0x28] sm:$0xff] }
 0x6f8   : > { %4192 = vmatpush.bf16.msrb.mxu3 %v5122_v18  ;;  %4231 = vmatpush.bf16.msra.mxu2 %v5002_v23  ;;  %v5506_v18 = vld [vmem:[%s9444_s9 + $0x8] sm:$0xff] }
 0x6f9   : > { %v5518_v23 = vld [vmem:[%s9444_s9 + $0x68] sm:$0xff] }
 0x6fc   : > { %4193 = vmatpush.bf16.msrb.mxu3 %v5106_v2  ;;  %4232 = vmatpush.bf16.msra.mxu2 %v4986_v25  ;;  %v5513_v25 = vld [vmem:[%s9444_s9 + $0x40] sm:$0xff] }
 0x6ff   : > { %4194 = vmatmul.bf16.vlgmr.msrb.gmra.mxu3 %v9188_v49  ;;  %4233 = vmatmul.bf16.vlgmr.msra.gmra.mxu2 %v9134_v24  ;;  %v5480_v24 = vld [vmem:[%s9442_s7 + $0x134] sm:$0xf0] }
 0x700   : > { %4212 = vmatpush.bf16.msra.mxu3 %v5222_v28  ;;  %v5126_v61 = vor.u32 %v5480_v24, %v5125_v5  ;;  %4519 = vmatpush.bf16.msrb.mxu2 %v5512_v63  ;;  %v5528_v28 = vld [vmem:[%s9444_s9 + $0xb8] sm:$0xff]  ;;  %v5535_v63 = vld [vmem:[%s9444_s9 + $0xf0] sm:$0xff] }
 0x704   : > { %4213 = vmatpush.bf16.msra.mxu3 %v5206_v38  ;;  %4520 = vmatpush.bf16.msrb.mxu2 %v5511_v50 }
 0x708   : > { %4214 = vmatpush.bf16.msra.mxu3 %v5190_v14  ;;  %4521 = vmatpush.bf16.msrb.mxu2 %v5510_v54  ;;  %v3819_v14 = vperm.slane %v3817_v16, 0 }
 0x70c   : > { %4215 = vmatpush.bf16.msra.mxu3 %v5174_v46  ;;  %4522 = vmatpush.bf16.msrb.mxu2 %v5509_v42 }
 0x710   : > { %4216 = vmatpush.bf16.msra.mxu3 %v5158_v29  ;;  %4523 = vmatpush.bf16.msrb.mxu2 %v5508_v0  ;;  %v5524_v29 = vld [vmem:[%s9444_s9 + $0x98] sm:$0xff] }
 0x714   : > { %4217 = vmatpush.bf16.msra.mxu3 %v5142_v26  ;;  %v5523_v26 = vld [vmem:[%s9444_s9 + $0x90] sm:$0xff] }
 0x718   : > { %4218 = vmatpush.bf16.msra.mxu3 %v5126_v61  ;;  %v3820_v61 = vperm.slane %v3817_v16, 1 }
 0x71c   : > { %4219 = vmatpush.bf16.msra.mxu3 %v5110_v36 }
 0x71f   : > { %4220 = vmatmul.bf16.vlgmr.msra.gmra.mxu3 %v9188_v49 }
 0x720   : > { %4238 = vmatpush.bf16.msrb.mxu3 %v5226_v6  ;;  %v5536_v6 = vld [vmem:[%s9444_s9 + $0xf8] sm:$0xff] }
 0x724   : > { %4239 = vmatpush.bf16.msrb.mxu3 %v5210_v33 }
 0x728   : > { %4240 = vmatpush.bf16.msrb.mxu3 %v5194_v19  ;;  %v5533_v19 = vld [vmem:[%s9444_s9 + $0xe0] sm:$0xff] }
 0x72c   : > { %4241 = vmatpush.bf16.msrb.mxu3 %v5178_v37  ;;  %v3821_v37 = vperm.slane %v3817_v16, 2 }
 0x730   : > { %4242 = vmatpush.bf16.msrb.mxu3 %v5162_v62  ;;  %v5529_v62 = vld [vmem:[%s9444_s9 + $0xc0] sm:$0xff] }
 0x734   : > { %4243 = vmatpush.bf16.msrb.mxu3 %v5146_v17 }
 0x738   : > { %4244 = vmatpush.bf16.msrb.mxu3 %v5130_v3  ;;  %v3822_v3 = vperm.slane %v3817_v16, 3 }
 0x73c   : > { %4245 = vmatpush.bf16.msrb.mxu3 %v5114_v44 }
 0x73f   : > { %4246 = vmatmul.bf16.vlgmr.msrb.gmra.mxu3 %v9188_v49  ;;  %v5507_v49 = vld [vmem:[%s9444_s9 + $0x10] sm:$0xff] }
 0x740   : > { %4532 = vmatpush.bf16.msra.mxu3 %v5520_v30  ;;  %4524 = vmatpush.bf16.msrb.mxu2 %v5507_v49 }
 0x744   : > { %4533 = vmatpush.bf16.msra.mxu3 %v5519_v55  ;;  %4525 = vmatpush.bf16.msrb.mxu2 %v5506_v18 }
 0x748   : > { %4534 = vmatpush.bf16.msra.mxu3 %v5518_v23  ;;  %4526 = vmatpush.bf16.msrb.mxu2 %v5505_v39 }
 0x74c   : > { %4535 = vmatpush.bf16.msra.mxu3 %v5517_v40  ;;  %4545 = vmatpush.bf16.msra.mxu2 %v5528_v28  ;;  %v6123_v40 = vld [vmem:[%s9445_s10] ss:$0 sm:$0xff] }
 0x750   : > { %4536 = vmatpush.bf16.msra.mxu3 %v5516_v4  ;;  %4546 = vmatpush.bf16.msra.mxu2 %v5527_v51 }
 0x754   : > { %4537 = vmatpush.bf16.msra.mxu3 %v5515_v12  ;;  %4547 = vmatpush.bf16.msra.mxu2 %v5526_v9 }
 0x758   : > { %4538 = vmatpush.bf16.msra.mxu3 %v5514_v8  ;;  %4548 = vmatpush.bf16.msra.mxu2 %v5525_v53 }
 0x75c   : > { %4539 = vmatpush.bf16.msra.mxu3 %v5513_v25  ;;  %4549 = vmatpush.bf16.msra.mxu2 %v5524_v29 }
 0x760   : > { %4550 = vmatpush.bf16.msra.mxu2 %v5523_v26  ;;  %4558 = vmatpush.bf16.msrb.mxu3 %v5536_v6 }
 0x762   : > { %v4156_v27 = vpop.f32.mrf.mxu3  ;;  %v4182_v2 = vpop.f32.mrf.mxu2 }
 0x763   : > { %v4157_v15 = vadd.f32 %v4156_v27, %v3819_v14  ;;  %v4183_v11 = vadd.f32 %v4182_v2, %v3820_v61 }
 0x764   : > { %4551 = vmatpush.bf16.msra.mxu2 %v5522_v56  ;;  %4559 = vmatpush.bf16.msrb.mxu3 %v5535_v63 }
 0x768   : > { %4552 = vmatpush.bf16.msra.mxu2 %v5521_v32  ;;  %4560 = vmatpush.bf16.msrb.mxu3 %v5534_v45 }
 0x76a   : > { %v4158_v38 = vpop.f32.mrf.mxu3  ;;  %v4184_v20 = vpop.f32.mrf.mxu2 }
 0x76c   : > { %4561 = vmatpush.bf16.msrb.mxu3 %v5533_v19 }
 0x770   : > { %4562 = vmatpush.bf16.msrb.mxu3 %v5532_v52 }
 0x772   : > { %v4169_v46 = vpop.f32.mrf.mxu3  ;;  %v4208_v58 = vpop.f32.mrf.mxu2 }
 0x773   : > { %v4170_v48 = vadd.f32 %v4169_v46, %v4157_v15  ;;  %v4209_v31 = vadd.f32 %v4208_v58, %v3821_v37 }
 0x774   : > { %4563 = vmatpush.bf16.msrb.mxu3 %v5531_v22 }
 0x775   : > { %v4251_v21 = vmax.f32 %v4170_v48, 0.0 }
 0x777   : > { %v4255_v60 = vpack.c.bf16 %v4251_v21, %v4251_v21 }
 0x778   : > { %4564 = vmatpush.bf16.msrb.mxu3 %v5530_v7 }
 0x779   : > { %4527 = vmatmul.bf16.vlgmr.msrb.gmra.mxu2 %v4255_v60 }
 0x77a   : > { %v4171_v5 = vpop.f32.mrf.mxu3  ;;  %v4210_v24 = vpop.f32.mrf.mxu2 }
 0x77c   : > { %4565 = vmatpush.bf16.msrb.mxu3 %v5529_v62 }
 0x782   : > { %v4195_v1 = vpop.f32.mrf.mxu3  ;;  %v4234_v36 = vpop.f32.mrf.mxu2 }
 0x783   : > { %v4196_v10 = vadd.f32 %v4195_v1, %v4183_v11  ;;  %v4235_v13 = vadd.f32 %v4234_v36, %v3822_v3 }
 0x785   : > { %v4252_v59 = vmax.f32 %v4196_v10, 0.0 }
 0x787   : > { %v4256_v33 = vpack.c.bf16 %v4252_v59, %v4252_v59 }
 0x789   : > { %4540 = vmatmul.bf16.vlgmr.msra.gmra.mxu3 %v4256_v33 }
 0x78a   : > { %v4197_v41 = vpop.f32.mrf.mxu3  ;;  %v4236_v50 = vpop.f32.mrf.mxu2 }
 0x7a2   : > { %v4221_v35 = vpop.f32.mrf.mxu3 }
 0x7a3   : > { %v4222_v34 = vadd.f32 %v4221_v35, %v4209_v31 }
 0x7a5   : > { %v4253_v17 = vmax.f32 %v4222_v34, 0.0 }
 0x7a7   : > { %v4257_v43 = vpack.c.bf16 %v4253_v17, %v4253_v17 }
 0x7a9   : > { %4553 = vmatmul.bf16.vlgmr.msra.gmra.mxu2 %v4257_v43 }
 0x7aa   : > { %v4223_v57 = vpop.f32.mrf.mxu3 }
 0x7c2   : > { %v4247_v47 = vpop.f32.mrf.mxu3 }
 0x7c3   : > { %v4248_v44 = vadd.f32 %v4247_v47, %v4235_v13 }
 0x7c5   : > { %v4254_v54 = vmax.f32 %v4248_v44, 0.0 }
 0x7c7   : > { %v4258_v42 = vpack.c.bf16 %v4254_v54, %v4254_v54 }
 0x7c9   : > { %4566 = vmatmul.bf16.vlgmr.msrb.gmra.mxu3 %v4258_v42 }
 0x7ca   : > { %v4249_v0 = vpop.f32.mrf.mxu3 }
 0x7fc   : > { %v4528_v30 = vpop.f32.mrf.mxu2 }
 0x7fd   : > { %v4529_v4 = vadd.f32 %v6123_v40, %v4528_v30 }
 0x804   : > { %v4530_v49 = vpop.f32.mrf.mxu2 }
 0x80c   : > { %v4541_v55 = vpop.f32.mrf.mxu3 }
 0x80d   : > { %v4542_v12 = vadd.f32 %v4541_v55, %v4529_v4 }
 0x814   : > { %v4543_v18 = vpop.f32.mrf.mxu3 }
 0x82c   : > { %v4554_v23 = vpop.f32.mrf.mxu2 }
 0x82d   : > { %v4555_v8 = vadd.f32 %v4554_v23, %v4542_v12 }
 0x834   : > { %v4556_v39 = vpop.f32.mrf.mxu2 }
 0x84c   : > { %v4567_v27 = vpop.f32.mrf.mxu3 }
 0x84d   : > { %v4568_v2 = vadd.f32 %v4567_v27, %v4555_v8 }
 0x84f   : > { %4571 = vst [vmem:[%s389_s29] sm:$0x7] %v4568_v2 }
 0x854   : > { %v4569_v25 = vpop.f32.mrf.mxu3 }
 0x855 PF: > { %s21_s17 = sadd.s32 1, %s6172_s17  }
 0x856   : > { %p18_p5 = scmp.ge.s32.totalorder %s21_s17, 4  }
 0x858   :  { %20 = sbr.rel (!%p18_p5) target bundleno = 1 (0x1), region = 94 }

</bundles_post_ra>
